<compile_context>
chip_gen: v5e
topology: v5e:2x2
jax: 0.10.0
libtpu: 0.0.40
codegen_flags: <defaults>
</compile_context>

<pallas_src>
import functools
import math

import jax
import jax.numpy as jnp
from jax import lax
from jax.experimental import pallas as pl
from jax.experimental.pallas import tpu as pltpu

# ---- configuration (mirrors the PyTorch module defaults) ---------------------
DIM = 8            # dim
HEADS = 1          # heads
DEPTH = 2          # depth
FF = 2048          # nn.TransformerEncoderLayer default dim_feedforward
NUM_TOKENS = 64    # synthetic vocab size
NUM_TAGS = 13      # wnut_17 has 13 NER tags
TAGS_PAD = 128     # lane-dense padded logits width (sliced to NUM_TAGS in the wrapper)
EPS = 1e-5         # LayerNorm default eps
FF_CHUNK = 512     # FF-dim tile for the chunked hidden path (FF % FF_CHUNK == 0)
FF_FULL_MAX_TOK = 512     # full-width FFN when n_tok <= this (f32 hidden <= 4 MiB)
MIN_SPLIT_TOKENS = 8192   # only split the grid when total tokens are at least this
MAX_TOK_PER_STEP = 4096   # target per-step token count when splitting

# ---- packed-slab row layout ---------------------------------------------------
# w_small  (bf16, width D):   embed | per-layer [w_q, w_k, w_v, w_out] | per-layer w_ff2
EMB_OFF = 0
ATT_OFF = NUM_TOKENS                       # per-layer stride 4*DIM
FF2_OFF = NUM_TOKENS + DEPTH * 4 * DIM
W_SMALL_ROWS = FF2_OFF + DEPTH * FF
# w_wide   (bf16, width FF):  per-layer w_ff1 rows | head weight (lanes 0:TAGS_PAD)
HEAD_W_ROW = DEPTH * DIM
W_WIDE_ROWS = HEAD_W_ROW + DIM
# bias_small (f32, width D):  per-layer 9 rows
#   [b_q(scaled), b_k, b_v, b_out, ln1_g, ln1_b, b_ff2, ln2_g, ln2_b] | lnf_g, lnf_b
BSM_PER_LAYER = 9
BSM_ROWS = DEPTH * BSM_PER_LAYER + 2
# bias_wide (f32, width FF):  per-layer b_ff1 rows | head bias (lanes 0:TAGS_PAD)
BWD_ROWS = DEPTH + 1


def _layernorm(v, g, b):
    """Biased-variance LayerNorm over the last axis (f32 math)."""
    mu = jnp.mean(v, axis=-1, keepdims=True)
    var = jnp.mean((v - mu) ** 2, axis=-1, keepdims=True)
    return (v - mu) * lax.rsqrt(var + EPS) * g + b


def transformer_ner_kernel(ids_ref, wsm_ref, wwd_ref, bsm_ref, bwd_ref, out_ref,
                           *, tb, seq, ff_full):
    D = DIM
    n_tok = tb * seq
    bf16, f32 = jnp.bfloat16, jnp.float32

    # ---- fused embedding lookup: one-hot (n_tok, V) @ table (V, D) on the MXU ----
    ids = ids_ref[...]                                                   # (n_tok, 1) i32
    vocab = lax.broadcasted_iota(jnp.int32, (n_tok, NUM_TOKENS), 1)
    onehot = jnp.where(ids == vocab, 1.0, 0.0).astype(bf16)
    emb = wsm_ref[EMB_OFF:EMB_OFF + NUM_TOKENS, :]                       # (V, D) bf16
    x = jnp.dot(onehot, emb, preferred_element_type=f32)                 # (n_tok, D) f32

    for l in range(DEPTH):  # static unrolled layer loop
        wbase = ATT_OFF + l * 4 * D
        bbase = l * BSM_PER_LAYER
        bq = bsm_ref[bbase + 0:bbase + 1, :]        # (1, D) f32 (already 1/sqrt(d) scaled)
        bk = bsm_ref[bbase + 1:bbase + 2, :]
        bv = bsm_ref[bbase + 2:bbase + 3, :]
        bo = bsm_ref[bbase + 3:bbase + 4, :]
        ln1g = bsm_ref[bbase + 4:bbase + 5, :]
        ln1b = bsm_ref[bbase + 5:bbase + 6, :]
        bff2 = bsm_ref[bbase + 6:bbase + 7, :]
        ln2g = bsm_ref[bbase + 7:bbase + 8, :]
        ln2b = bsm_ref[bbase + 8:bbase + 9, :]

        # ---- self-attention block (post-norm; dropout = identity, eval mode) ----
        xb = x.astype(bf16)
        # Three lane-0-aligned projections; Q weight/bias carry the 1/sqrt(d) scale.
        q = (jnp.dot(xb, wsm_ref[wbase:wbase + D, :],
                     preferred_element_type=f32) + bq)
        k = (jnp.dot(xb, wsm_ref[wbase + D:wbase + 2 * D, :],
                     preferred_element_type=f32) + bk)
        v = (jnp.dot(xb, wsm_ref[wbase + 2 * D:wbase + 3 * D, :],
                     preferred_element_type=f32) + bv)
        q = q.reshape(tb, seq, D).astype(bf16)
        k = k.reshape(tb, seq, D).astype(bf16)
        v = v.reshape(tb, seq, D).astype(bf16)

        s = jnp.einsum('bqd,bkd->bqk', q, k,
                       preferred_element_type=f32)                       # (tb, S, S)
        s = s - jnp.max(s, axis=-1, keepdims=True)
        p = jnp.exp(s)
        p = p * pl.reciprocal(jnp.sum(p, axis=-1, keepdims=True), approx=True)
        o = jnp.einsum('bqk,bkd->bqd', p.astype(bf16), v,
                       preferred_element_type=f32)                       # (tb, S, D)
        o = o.reshape(n_tok, D).astype(bf16)

        attn = jnp.dot(o, wsm_ref[wbase + 3 * D:wbase + 4 * D, :],
                       preferred_element_type=f32) + bo
        x = _layernorm(x + attn, ln1g, ln1b)

        # ---- feed-forward block (ReLU) ----
        xb = x.astype(bf16)
        ff2_base = FF2_OFF + l * FF
        if ff_full:
            # Single full-width matmul pair: (n_tok, FF) f32 hidden is small here.
            h = jnp.dot(xb, wwd_ref[l * D:(l + 1) * D, :],
                        preferred_element_type=f32) + bwd_ref[l:l + 1, :]
            h = jnp.maximum(h, 0.0).astype(bf16)
            ff = jnp.dot(h, wsm_ref[ff2_base:ff2_base + FF, :],
                         preferred_element_type=f32) + bff2
        else:
            # FF-chunked path for large per-step token counts (weights sliced
            # directly from the refs per chunk so full values never stay live).
            ff = jnp.zeros((n_tok, D), f32) + bff2
            for c in range(FF // FF_CHUNK):
                lo = c * FF_CHUNK
                h = jnp.dot(xb, wwd_ref[l * D:(l + 1) * D, lo:lo + FF_CHUNK],
                            preferred_element_type=f32) + bwd_ref[l:l + 1, lo:lo + FF_CHUNK]
                h = jnp.maximum(h, 0.0).astype(bf16)
                ff = ff + jnp.dot(h, wsm_ref[ff2_base + lo:ff2_base + lo + FF_CHUNK, :],
                                  preferred_element_type=f32)
        x = _layernorm(x + ff, ln2g, ln2b)

    # ---- final LayerNorm + lane-dense (padded) output head ----
    lnfg = bsm_ref[DEPTH * BSM_PER_LAYER + 0:DEPTH * BSM_PER_LAYER + 1, :]
    lnfb = bsm_ref[DEPTH * BSM_PER_LAYER + 1:DEPTH * BSM_PER_LAYER + 2, :]
    x = _layernorm(x, lnfg, lnfb)
    wh = wwd_ref[HEAD_W_ROW:HEAD_W_ROW + D, 0:TAGS_PAD]                  # (D, 128) bf16
    bh = bwd_ref[DEPTH:DEPTH + 1, 0:TAGS_PAD]                            # (1, 128) f32
    out_ref[...] = jnp.dot(x.astype(bf16), wh, preferred_element_type=f32) + bh


def _choose_num_blocks(B, S):
    """grid=(1,) unless total work is big enough to amortize per-step overhead and
    feed both v7x TensorCores; keep tb*S a sublane multiple when splitting."""
    total = B * S
    if total < MIN_SPLIT_TOKENS:
        return 1
    nb = min(B, max(2, pl.cdiv(total, MAX_TOK_PER_STEP)))
    while nb > 1:
        tb = pl.cdiv(B, nb)
        if (tb * S) % 8 == 0:
            return nb
        nb -= 1
    return 1


def regular_transformer_ner(tokens_sb, packed, *, num_blocks=None):
    """tokens_sb: (S, B) int32, packed: slabs from pack_params()
    -> logits (S, B, NUM_TAGS) float32."""
    w_small, w_wide, bias_small, bias_wide = packed
    S, B = tokens_sb.shape
    nb = _choose_num_blocks(B, S) if num_blocks is None else max(1, min(num_blocks, B))
    tb = pl.cdiv(B, nb)
    b_pad = nb * tb
    n_tok = tb * S
    ff_full = (n_tok <= FF_FULL_MAX_TOK)

    # Token ids only (tiny): transpose to batch-major, pad batch, flatten.
    ids = jnp.transpose(tokens_sb).astype(jnp.int32)                     # (B, S)
    if b_pad != B:
        ids = jnp.pad(ids, ((0, b_pad - B), (0, 0)))
    ids = ids.reshape(b_pad * S, 1)

    slabs = [w_small, w_wide, bias_small, bias_wide]

    def full_spec(a):
        nd = a.ndim
        return pl.BlockSpec(a.shape, lambda b_, _nd=nd: (0,) * _nd)

    in_specs = [pl.BlockSpec((n_tok, 1), lambda b_: (b_, 0))]
    in_specs += [full_spec(a) for a in slabs]
    out_specs = pl.BlockSpec((n_tok, TAGS_PAD), lambda b_: (b_, 0))

    # Advisory cost estimate (helps XLA schedule the tiny surrounding ops).
    t_total = b_pad * S
    flops = (t_total * (2 * NUM_TOKENS * DIM
                        + DEPTH * 2 * (4 * DIM * DIM + 2 * DIM * FF)
                        + 2 * DIM * TAGS_PAD)
             + DEPTH * b_pad * 2 * (2 * S * S * DIM))
    transcendentals = DEPTH * b_pad * S * S + (2 * DEPTH + 1) * t_total
    bytes_accessed = (ids.size * 4
                      + sum(int(a.size) * a.dtype.itemsize for a in slabs)
                      + t_total * TAGS_PAD * 4)

    kernel = functools.partial(transformer_ner_kernel, tb=tb, seq=S, ff_full=ff_full)

    out = pl.pallas_call(
        kernel,
        out_shape=jax.ShapeDtypeStruct((b_pad * S, TAGS_PAD), jnp.float32),
        grid_spec=pltpu.PrefetchScalarGridSpec(
            num_scalar_prefetch=0,
            grid=(nb,),
            in_specs=in_specs,
            out_specs=out_specs,
        ),
        compiler_params=pltpu.CompilerParams(
            dimension_semantics=("parallel",),
            vmem_limit_bytes=32 * 1024 * 1024),
        cost_estimate=pl.CostEstimate(flops=flops,
                                      transcendentals=transcendentals,
                                      bytes_accessed=bytes_accessed),
    )(ids, *slabs)

    logits = out.reshape(b_pad, S, TAGS_PAD)[:B, :, :NUM_TAGS]           # (B, S, 13)
    return jnp.transpose(logits, (1, 0, 2))                              # (S, B, 13)


def pack_params(p):
    """Pack the logical parameters into 4 contiguous slabs (few DMA descriptors):
      w_small  bf16 (W_SMALL_ROWS, D):  embed | [w_q*scale, w_k, w_v, w_out]/layer | w_ff2/layer
      w_wide   bf16 (W_WIDE_ROWS, FF):  w_ff1/layer | head weight in lanes 0:TAGS_PAD
      bias_small f32 (BSM_ROWS, D):     per-layer [b_q*scale, b_k, b_v, b_out, ln1_g, ln1_b,
                                                   b_ff2, ln2_g, ln2_b] | lnf_g, lnf_b
      bias_wide  f32 (BWD_ROWS, FF):    b_ff1/layer | head bias in lanes 0:TAGS_PAD
    The 1/sqrt(d_head) attention scale is folded into the Q projection here."""
    f32, bf = jnp.float32, jnp.bfloat16
    scale = 1.0 / math.sqrt(DIM // HEADS)

    w_small = jnp.zeros((W_SMALL_ROWS, DIM), f32)
    w_small = w_small.at[EMB_OFF:EMB_OFF + NUM_TOKENS].set(p['embed'].astype(f32))
    w_wide = jnp.zeros((W_WIDE_ROWS, FF), f32)
    bias_wide = jnp.zeros((BWD_ROWS, FF), f32)
    bsm_rows = []
    for l in range(DEPTH):
        w_in = p['w_in'][l].astype(f32)                                  # (D, 3D)
        base = ATT_OFF + l * 4 * DIM
        w_small = w_small.at[base:base + DIM].set(w_in[:, 0:DIM] * scale)
        w_small = w_small.at[base + DIM:base + 2 * DIM].set(w_in[:, DIM:2 * DIM])
        w_small = w_small.at[base + 2 * DIM:base + 3 * DIM].set(w_in[:, 2 * DIM:3 * DIM])
        w_small = w_small.at[base + 3 * DIM:base + 4 * DIM].set(p['w_out'][l].astype(f32))
        w_small = w_small.at[FF2_OFF + l * FF:FF2_OFF + (l + 1) * FF].set(
            p['w_ff2'][l].astype(f32))
        w_wide = w_wide.at[l * DIM:(l + 1) * DIM].set(p['w_ff1'][l].astype(f32))
        bias_wide = bias_wide.at[l].set(p['b_ff1'][l].reshape(FF).astype(f32))

        b_in = p['b_in'][l].reshape(3 * DIM).astype(f32)
        bsm_rows += [b_in[0:DIM] * scale, b_in[DIM:2 * DIM], b_in[2 * DIM:3 * DIM],
                     p['b_out'][l].reshape(DIM).astype(f32),
                     p['ln1_g'][l].reshape(DIM).astype(f32),
                     p['ln1_b'][l].reshape(DIM).astype(f32),
                     p['b_ff2'][l].reshape(DIM).astype(f32),
                     p['ln2_g'][l].reshape(DIM).astype(f32),
                     p['ln2_b'][l].reshape(DIM).astype(f32)]

    w_wide = w_wide.at[HEAD_W_ROW:HEAD_W_ROW + DIM, 0:TAGS_PAD].set(
        p['w_head'].astype(f32))
    bias_wide = bias_wide.at[DEPTH, 0:TAGS_PAD].set(p['b_head'].reshape(TAGS_PAD))
    bsm_rows += [p['lnf_g'].reshape(DIM).astype(f32), p['lnf_b'].reshape(DIM).astype(f32)]
    bias_small = jnp.stack(bsm_rows).astype(f32)                         # (BSM_ROWS, D)

    return (w_small.astype(bf), w_wide.astype(bf), bias_small, bias_wide)


def init_params(key):
    """Logical weights, MXU-friendly layout: (in_features, out_features), bf16 matmul
    operands, f32 biases / LayerNorm params (head padded to 128 lanes)."""
    ks = jax.random.split(key, 11)
    bf = jnp.bfloat16

    def n(k, shape, scale=0.1, dtype=jnp.float32):
        return (scale * jax.random.normal(k, shape)).astype(dtype)

    w_head = n(ks[9], (DIM, NUM_TAGS))
    b_head = n(ks[10], (1, NUM_TAGS))
    w_head_p = jnp.zeros((DIM, TAGS_PAD), jnp.float32).at[:, :NUM_TAGS].set(w_head)
    b_head_p = jnp.zeros((1, TAGS_PAD), jnp.float32).at[:, :NUM_TAGS].set(b_head)

    return {
        'embed':  n(ks[0], (NUM_TOKENS, DIM), dtype=bf),
        # MultiheadAttention in_proj (D, 3D) + out_proj (D, D)  [= PyTorch weights.T]
        'w_in':   n(ks[1], (DEPTH, DIM, 3 * DIM), dtype=bf),
        'b_in':   n(ks[2], (DEPTH, 1, 3 * DIM)),
        'w_out':  n(ks[3], (DEPTH, DIM, DIM), dtype=bf),
        'b_out':  n(ks[4], (DEPTH, 1, DIM)),
        'ln1_g':  jnp.ones((DEPTH, 1, DIM), jnp.float32),
        'ln1_b':  jnp.zeros((DEPTH, 1, DIM), jnp.float32),
        # Feed-forward: linear1 (D, FF), linear2 (FF, D)  [= PyTorch weights.T]
        'w_ff1':  n(ks[5], (DEPTH, DIM, FF), dtype=bf),
        'b_ff1':  n(ks[6], (DEPTH, 1, FF)),
        'w_ff2':  n(ks[7], (DEPTH, FF, DIM), scale=0.02, dtype=bf),
        'b_ff2':  n(ks[8], (DEPTH, 1, DIM)),
        'ln2_g':  jnp.ones((DEPTH, 1, DIM), jnp.float32),
        'ln2_b':  jnp.zeros((DEPTH, 1, DIM), jnp.float32),
        # Final norm + padded output head.
        'lnf_g':  jnp.ones((1, DIM), jnp.float32),
        'lnf_b':  jnp.zeros((1, DIM), jnp.float32),
        'w_head': w_head_p.astype(bf),
        'b_head': b_head_p,
    }


def reference_forward(tokens_sb, params):
    """Pure-JAX f32 reference (same math, same weights) for a correctness check."""
    f = lambda a: a.astype(jnp.float32)

    def ln(v, g, b):
        mu = v.mean(-1, keepdims=True)
        var = ((v - mu) ** 2).mean(-1, keepdims=True)
        return (v - mu) / jnp.sqrt(var + EPS) * g + b

    emb = jnp.take(f(params['embed']), tokens_sb, axis=0)                # (S, B, D)
    x = jnp.transpose(emb, (1, 0, 2))                                    # (B, S, D)
    for l in range(DEPTH):
        qkv = x @ f(params['w_in'][l]) + params['b_in'][l]
        q, k, v = qkv[..., :DIM], qkv[..., DIM:2 * DIM], qkv[..., 2 * DIM:]
        s = jnp.einsum('bqd,bkd->bqk', q, k) / math.sqrt(DIM // HEADS)
        p = jax.nn.softmax(s, axis=-1)
        o = jnp.einsum('bqk,bkd->bqd', p, v)
        attn = o @ f(params['w_out'][l]) + params['b_out'][l]
        x = ln(x + attn, params['ln1_g'][l], params['ln1_b'][l])
        h = jnp.maximum(x @ f(params['w_ff1'][l]) + params['b_ff1'][l], 0.0)
        ff = h @ f(params['w_ff2'][l]) + params['b_ff2'][l]
        x = ln(x + ff, params['ln2_g'][l], params['ln2_b'][l])
    x = ln(x, params['lnf_g'], params['lnf_b'])
    logits = x @ f(params['w_head']) + params['b_head']                  # (B, S, 128)
    return jnp.transpose(logits[..., :NUM_TAGS], (1, 0, 2))              # (S, B, 13)


if __name__ == "__main__":
    key = jax.random.PRNGKey(0)
    pkey, tkey = jax.random.split(key)
    params = init_params(pkey)
    packed = pack_params(params)
    jax.block_until_ready(packed)

    S, B = 16, 2
    tokens = jax.random.randint(tkey, (S, B), 0, NUM_TOKENS, dtype=jnp.int32)

    fwd = jax.jit(regular_transformer_ner)
    out = fwd(tokens, packed)
    jax.block_until_ready(out)
    assert out.shape == (S, B, NUM_TAGS) and out.dtype == jnp.float32

    # Loose tolerance: kernel uses bf16 MXU operands (f32 accumulation) + approx recip.
    ref = reference_forward(tokens, params)
    err = float(jnp.max(jnp.abs(out - ref)))
    assert err < 0.15, f"mismatch vs f32 reference: max|diff|={err}"

    print("KERNEL_OK")
</pallas_src>

<mosaic_0001>
module attributes {stable_mosaic.version = 11 : i64} {
  func.func @transformer_ner_kernel(%arg0: i32, %arg1: memref<32x1xi32, #tpu.memory_space<vmem>>, %arg2: memref<4224x8xbf16, #tpu.memory_space<vmem>>, %arg3: memref<24x2048xbf16, #tpu.memory_space<vmem>>, %arg4: memref<20x8xf32, #tpu.memory_space<vmem>>, %arg5: memref<3x2048xf32, #tpu.memory_space<vmem>>, %arg6: memref<32x128xf32, #tpu.memory_space<vmem>>) attributes {dimension_semantics = [#tpu.dimension_semantics<parallel>], iteration_bounds = array<i64: 1>, scalar_prefetch = 0 : i64, scratch_operands = 0 : i64, tpu.core_type = #tpu.core_type<tc>, window_params = [{transform_indices = @transform_0, window_bounds = array<i64: 32, 1>}, {pipeline_mode = #tpu.pipeline_mode<synchronous>, transform_indices = @transform_1, window_bounds = array<i64: 4224, 8>}, {pipeline_mode = #tpu.pipeline_mode<synchronous>, transform_indices = @transform_2, window_bounds = array<i64: 24, 2048>}, {pipeline_mode = #tpu.pipeline_mode<synchronous>, transform_indices = @transform_3, window_bounds = array<i64: 20, 8>}, {pipeline_mode = #tpu.pipeline_mode<synchronous>, transform_indices = @transform_4, window_bounds = array<i64: 3, 2048>}, {transform_indices = @transform_5, window_bounds = array<i64: 32, 128>}]} {
    %c0 = arith.constant 0 : index
    %c0_0 = arith.constant 0 : index
    %0 = vector.load %arg1[%c0, %c0_0] : memref<32x1xi32, #tpu.memory_space<vmem>>, vector<32x1xi32>
    %1 = tpu.iota {dimensions = array<i32: 1>} : vector<32x64xi32>
    %2 = vector.broadcast %0 : vector<32x1xi32> to vector<32x64xi32>
    %3 = arith.cmpi eq, %2, %1 : vector<32x64xi32>
    %cst = arith.constant 1.000000e+00 : f32
    %cst_1 = arith.constant 0.000000e+00 : f32
    %4 = vector.broadcast %cst : f32 to vector<32x64xf32>
    %5 = vector.broadcast %cst_1 : f32 to vector<32x64xf32>
    %6 = arith.select %3, %4, %5 : vector<32x64xi1>, vector<32x64xf32>
    %7 = arith.truncf %6 : vector<32x64xf32> to vector<32x64xbf16>
    %c0_2 = arith.constant 0 : index
    %c0_3 = arith.constant 0 : index
    %8 = vector.load %arg2[%c0_2, %c0_3] : memref<4224x8xbf16, #tpu.memory_space<vmem>>, vector<64x8xbf16>
    %cst_4 = arith.constant dense<0.000000e+00> : vector<32x8xf32>
    %9 = tpu.matmul %7, %8, %cst_4 {dimension_numbers = #tpu.dot_dimension_numbers<[1], [0], [0], [1], [0, 0, 1, 1], [], []>} : vector<32x64xbf16>, vector<64x8xbf16>, vector<32x8xf32> -> vector<32x8xf32>
    %c0_5 = arith.constant 0 : index
    %c0_6 = arith.constant 0 : index
    %10 = vector.load %arg4[%c0_5, %c0_6] : memref<20x8xf32, #tpu.memory_space<vmem>>, vector<1x8xf32>
    %c1 = arith.constant 1 : index
    %c0_7 = arith.constant 0 : index
    %11 = vector.load %arg4[%c1, %c0_7] : memref<20x8xf32, #tpu.memory_space<vmem>>, vector<1x8xf32>
    %c2 = arith.constant 2 : index
    %c0_8 = arith.constant 0 : index
    %12 = vector.load %arg4[%c2, %c0_8] : memref<20x8xf32, #tpu.memory_space<vmem>>, vector<1x8xf32>
    %c3 = arith.constant 3 : index
    %c0_9 = arith.constant 0 : index
    %13 = vector.load %arg4[%c3, %c0_9] : memref<20x8xf32, #tpu.memory_space<vmem>>, vector<1x8xf32>
    %c4 = arith.constant 4 : index
    %c0_10 = arith.constant 0 : index
    %14 = vector.load %arg4[%c4, %c0_10] : memref<20x8xf32, #tpu.memory_space<vmem>>, vector<1x8xf32>
    %c5 = arith.constant 5 : index
    %c0_11 = arith.constant 0 : index
    %15 = vector.load %arg4[%c5, %c0_11] : memref<20x8xf32, #tpu.memory_space<vmem>>, vector<1x8xf32>
    %c6 = arith.constant 6 : index
    %c0_12 = arith.constant 0 : index
    %16 = vector.load %arg4[%c6, %c0_12] : memref<20x8xf32, #tpu.memory_space<vmem>>, vector<1x8xf32>
    %c7 = arith.constant 7 : index
    %c0_13 = arith.constant 0 : index
    %17 = vector.load %arg4[%c7, %c0_13] : memref<20x8xf32, #tpu.memory_space<vmem>>, vector<1x8xf32>
    %c8 = arith.constant 8 : index
    %c0_14 = arith.constant 0 : index
    %18 = vector.load %arg4[%c8, %c0_14] : memref<20x8xf32, #tpu.memory_space<vmem>>, vector<1x8xf32>
    %19 = arith.truncf %9 : vector<32x8xf32> to vector<32x8xbf16>
    %c64 = arith.constant 64 : index
    %c0_15 = arith.constant 0 : index
    %20 = vector.load %arg2[%c64, %c0_15] : memref<4224x8xbf16, #tpu.memory_space<vmem>>, vector<8x8xbf16>
    %cst_16 = arith.constant dense<0.000000e+00> : vector<32x8xf32>
    %21 = tpu.matmul %19, %20, %cst_16 {dimension_numbers = #tpu.dot_dimension_numbers<[1], [0], [0], [1], [0, 0, 1, 1], [], []>} : vector<32x8xbf16>, vector<8x8xbf16>, vector<32x8xf32> -> vector<32x8xf32>
    %22 = vector.broadcast %10 : vector<1x8xf32> to vector<32x8xf32>
    %23 = arith.addf %21, %22 : vector<32x8xf32>
    %c72 = arith.constant 72 : index
    %c0_17 = arith.constant 0 : index
    %24 = vector.load %arg2[%c72, %c0_17] : memref<4224x8xbf16, #tpu.memory_space<vmem>>, vector<8x8xbf16>
    %cst_18 = arith.constant dense<0.000000e+00> : vector<32x8xf32>
    %25 = tpu.matmul %19, %24, %cst_18 {dimension_numbers = #tpu.dot_dimension_numbers<[1], [0], [0], [1], [0, 0, 1, 1], [], []>} : vector<32x8xbf16>, vector<8x8xbf16>, vector<32x8xf32> -> vector<32x8xf32>
    %26 = vector.broadcast %11 : vector<1x8xf32> to vector<32x8xf32>
    %27 = arith.addf %25, %26 : vector<32x8xf32>
    %c80 = arith.constant 80 : index
    %c0_19 = arith.constant 0 : index
    %28 = vector.load %arg2[%c80, %c0_19] : memref<4224x8xbf16, #tpu.memory_space<vmem>>, vector<8x8xbf16>
    %cst_20 = arith.constant dense<0.000000e+00> : vector<32x8xf32>
    %29 = tpu.matmul %19, %28, %cst_20 {dimension_numbers = #tpu.dot_dimension_numbers<[1], [0], [0], [1], [0, 0, 1, 1], [], []>} : vector<32x8xbf16>, vector<8x8xbf16>, vector<32x8xf32> -> vector<32x8xf32>
    %30 = vector.broadcast %12 : vector<1x8xf32> to vector<32x8xf32>
    %31 = arith.addf %29, %30 : vector<32x8xf32>
    %32 = vector.shape_cast %23 : vector<32x8xf32> to vector<2x16x8xf32>
    %33 = arith.truncf %32 : vector<2x16x8xf32> to vector<2x16x8xbf16>
    %34 = vector.shape_cast %27 : vector<32x8xf32> to vector<2x16x8xf32>
    %35 = arith.truncf %34 : vector<2x16x8xf32> to vector<2x16x8xbf16>
    %36 = vector.shape_cast %31 : vector<32x8xf32> to vector<2x16x8xf32>
    %37 = arith.truncf %36 : vector<2x16x8xf32> to vector<2x16x8xbf16>
    "tpu.trace_start"() <{level = 10 : i32, message = "bqd,bkd->bqk"}> : () -> ()
    %cst_21 = arith.constant dense<0.000000e+00> : vector<2x16x16xf32>
    %38 = tpu.matmul %33, %35, %cst_21 {dimension_numbers = #tpu.dot_dimension_numbers<[2], [2], [1], [1], [0, 0, 0, 1, 1, 1], [0], [0]>} : vector<2x16x8xbf16>, vector<2x16x8xbf16>, vector<2x16x16xf32> -> vector<2x16x16xf32>
    "tpu.trace_stop"() : () -> ()
    %cst_22 = arith.constant dense<0xFF800000> : vector<2x16xf32>
    %39 = vector.multi_reduction <maximumf>, %38, %cst_22 [2] : vector<2x16x16xf32> to vector<2x16xf32>
    %40 = vector.shape_cast %39 : vector<2x16xf32> to vector<2x16x1xf32>
    %41 = vector.broadcast %40 : vector<2x16x1xf32> to vector<2x16x16xf32>
    %42 = arith.subf %38, %41 : vector<2x16x16xf32>
    %43 = math.exp %42 : vector<2x16x16xf32>
    %cst_23 = arith.constant dense<0.000000e+00> : vector<2x16xf32>
    %44 = vector.multi_reduction <add>, %43, %cst_23 [2] : vector<2x16x16xf32> to vector<2x16xf32>
    %45 = vector.shape_cast %44 : vector<2x16xf32> to vector<2x16x1xf32>
    %46 = tpu.reciprocal %45 {approx = true} : vector<2x16x1xf32> -> vector<2x16x1xf32>
    %47 = vector.broadcast %46 : vector<2x16x1xf32> to vector<2x16x16xf32>
    %48 = arith.mulf %43, %47 : vector<2x16x16xf32>
    %49 = arith.truncf %48 : vector<2x16x16xf32> to vector<2x16x16xbf16>
    "tpu.trace_start"() <{level = 10 : i32, message = "bqk,bkd->bqd"}> : () -> ()
    %cst_24 = arith.constant dense<0.000000e+00> : vector<2x16x8xf32>
    %50 = tpu.matmul %49, %37, %cst_24 {dimension_numbers = #tpu.dot_dimension_numbers<[2], [1], [1], [2], [0, 0, 0, 1, 1, 2], [0], [0]>} : vector<2x16x16xbf16>, vector<2x16x8xbf16>, vector<2x16x8xf32> -> vector<2x16x8xf32>
    "tpu.trace_stop"() : () -> ()
    %51 = vector.shape_cast %50 : vector<2x16x8xf32> to vector<32x8xf32>
    %52 = arith.truncf %51 : vector<32x8xf32> to vector<32x8xbf16>
    %c88 = arith.constant 88 : index
    %c0_25 = arith.constant 0 : index
    %53 = vector.load %arg2[%c88, %c0_25] : memref<4224x8xbf16, #tpu.memory_space<vmem>>, vector<8x8xbf16>
    %cst_26 = arith.constant dense<0.000000e+00> : vector<32x8xf32>
    %54 = tpu.matmul %52, %53, %cst_26 {dimension_numbers = #tpu.dot_dimension_numbers<[1], [0], [0], [1], [0, 0, 1, 1], [], []>} : vector<32x8xbf16>, vector<8x8xbf16>, vector<32x8xf32> -> vector<32x8xf32>
    %55 = vector.broadcast %13 : vector<1x8xf32> to vector<32x8xf32>
    %56 = arith.addf %54, %55 : vector<32x8xf32>
    %57 = arith.addf %9, %56 : vector<32x8xf32>
    %cst_27 = arith.constant dense<0.000000e+00> : vector<32xf32>
    %58 = vector.multi_reduction <add>, %57, %cst_27 [1] : vector<32x8xf32> to vector<32xf32>
    %59 = vector.shape_cast %58 : vector<32xf32> to vector<32x1xf32>
    %cst_28 = arith.constant 8.000000e+00 : f32
    %60 = vector.broadcast %cst_28 : f32 to vector<32x1xf32>
    %61 = arith.divf %59, %60 : vector<32x1xf32>
    %62 = vector.broadcast %61 : vector<32x1xf32> to vector<32x8xf32>
    %63 = arith.subf %57, %62 : vector<32x8xf32>
    %64 = arith.mulf %63, %63 : vector<32x8xf32>
    %cst_29 = arith.constant dense<0.000000e+00> : vector<32xf32>
    %65 = vector.multi_reduction <add>, %64, %cst_29 [1] : vector<32x8xf32> to vector<32xf32>
    %66 = vector.shape_cast %65 : vector<32xf32> to vector<32x1xf32>
    %cst_30 = arith.constant 8.000000e+00 : f32
    %67 = vector.broadcast %cst_30 : f32 to vector<32x1xf32>
    %68 = arith.divf %66, %67 : vector<32x1xf32>
    %69 = vector.broadcast %61 : vector<32x1xf32> to vector<32x8xf32>
    %70 = arith.subf %57, %69 : vector<32x8xf32>
    %cst_31 = arith.constant 9.99999974E-6 : f32
    %71 = vector.broadcast %cst_31 : f32 to vector<32x1xf32>
    %72 = arith.addf %68, %71 : vector<32x1xf32>
    %73 = math.rsqrt %72 : vector<32x1xf32>
    %74 = vector.broadcast %73 : vector<32x1xf32> to vector<32x8xf32>
    %75 = arith.mulf %70, %74 : vector<32x8xf32>
    %76 = vector.broadcast %14 : vector<1x8xf32> to vector<32x8xf32>
    %77 = arith.mulf %75, %76 : vector<32x8xf32>
    %78 = vector.broadcast %15 : vector<1x8xf32> to vector<32x8xf32>
    %79 = arith.addf %77, %78 : vector<32x8xf32>
    %80 = arith.truncf %79 : vector<32x8xf32> to vector<32x8xbf16>
    %c0_32 = arith.constant 0 : index
    %c0_33 = arith.constant 0 : index
    %81 = vector.load %arg3[%c0_32, %c0_33] : memref<24x2048xbf16, #tpu.memory_space<vmem>>, vector<8x2048xbf16>
    %cst_34 = arith.constant dense<0.000000e+00> : vector<32x2048xf32>
    %82 = tpu.matmul %80, %81, %cst_34 {dimension_numbers = #tpu.dot_dimension_numbers<[1], [0], [0], [1], [0, 0, 1, 1], [], []>} : vector<32x8xbf16>, vector<8x2048xbf16>, vector<32x2048xf32> -> vector<32x2048xf32>
    %c0_35 = arith.constant 0 : index
    %c0_36 = arith.constant 0 : index
    %83 = vector.load %arg5[%c0_35, %c0_36] : memref<3x2048xf32, #tpu.memory_space<vmem>>, vector<1x2048xf32>
    %84 = vector.broadcast %83 : vector<1x2048xf32> to vector<32x2048xf32>
    %85 = arith.addf %82, %84 : vector<32x2048xf32>
    %cst_37 = arith.constant 0.000000e+00 : f32
    %86 = vector.broadcast %cst_37 : f32 to vector<32x2048xf32>
    %87 = arith.maximumf %85, %86 : vector<32x2048xf32>
    %88 = arith.truncf %87 : vector<32x2048xf32> to vector<32x2048xbf16>
    %c128 = arith.constant 128 : index
    %c0_38 = arith.constant 0 : index
    %89 = vector.load %arg2[%c128, %c0_38] : memref<4224x8xbf16, #tpu.memory_space<vmem>>, vector<2048x8xbf16>
    %cst_39 = arith.constant dense<0.000000e+00> : vector<32x8xf32>
    %90 = tpu.matmul %88, %89, %cst_39 {dimension_numbers = #tpu.dot_dimension_numbers<[1], [0], [0], [1], [0, 0, 1, 1], [], []>} : vector<32x2048xbf16>, vector<2048x8xbf16>, vector<32x8xf32> -> vector<32x8xf32>
    %91 = vector.broadcast %16 : vector<1x8xf32> to vector<32x8xf32>
    %92 = arith.addf %90, %91 : vector<32x8xf32>
    %93 = arith.addf %79, %92 : vector<32x8xf32>
    %cst_40 = arith.constant dense<0.000000e+00> : vector<32xf32>
    %94 = vector.multi_reduction <add>, %93, %cst_40 [1] : vector<32x8xf32> to vector<32xf32>
    %95 = vector.shape_cast %94 : vector<32xf32> to vector<32x1xf32>
    %cst_41 = arith.constant 8.000000e+00 : f32
    %96 = vector.broadcast %cst_41 : f32 to vector<32x1xf32>
    %97 = arith.divf %95, %96 : vector<32x1xf32>
    %98 = vector.broadcast %97 : vector<32x1xf32> to vector<32x8xf32>
    %99 = arith.subf %93, %98 : vector<32x8xf32>
    %100 = arith.mulf %99, %99 : vector<32x8xf32>
    %cst_42 = arith.constant dense<0.000000e+00> : vector<32xf32>
    %101 = vector.multi_reduction <add>, %100, %cst_42 [1] : vector<32x8xf32> to vector<32xf32>
    %102 = vector.shape_cast %101 : vector<32xf32> to vector<32x1xf32>
    %cst_43 = arith.constant 8.000000e+00 : f32
    %103 = vector.broadcast %cst_43 : f32 to vector<32x1xf32>
    %104 = arith.divf %102, %103 : vector<32x1xf32>
    %105 = vector.broadcast %97 : vector<32x1xf32> to vector<32x8xf32>
    %106 = arith.subf %93, %105 : vector<32x8xf32>
    %cst_44 = arith.constant 9.99999974E-6 : f32
    %107 = vector.broadcast %cst_44 : f32 to vector<32x1xf32>
    %108 = arith.addf %104, %107 : vector<32x1xf32>
    %109 = math.rsqrt %108 : vector<32x1xf32>
    %110 = vector.broadcast %109 : vector<32x1xf32> to vector<32x8xf32>
    %111 = arith.mulf %106, %110 : vector<32x8xf32>
    %112 = vector.broadcast %17 : vector<1x8xf32> to vector<32x8xf32>
    %113 = arith.mulf %111, %112 : vector<32x8xf32>
    %114 = vector.broadcast %18 : vector<1x8xf32> to vector<32x8xf32>
    %115 = arith.addf %113, %114 : vector<32x8xf32>
    %c9 = arith.constant 9 : index
    %c0_45 = arith.constant 0 : index
    %116 = vector.load %arg4[%c9, %c0_45] : memref<20x8xf32, #tpu.memory_space<vmem>>, vector<1x8xf32>
    %c10 = arith.constant 10 : index
    %c0_46 = arith.constant 0 : index
    %117 = vector.load %arg4[%c10, %c0_46] : memref<20x8xf32, #tpu.memory_space<vmem>>, vector<1x8xf32>
    %c11 = arith.constant 11 : index
    %c0_47 = arith.constant 0 : index
    %118 = vector.load %arg4[%c11, %c0_47] : memref<20x8xf32, #tpu.memory_space<vmem>>, vector<1x8xf32>
    %c12 = arith.constant 12 : index
    %c0_48 = arith.constant 0 : index
    %119 = vector.load %arg4[%c12, %c0_48] : memref<20x8xf32, #tpu.memory_space<vmem>>, vector<1x8xf32>
    %c13 = arith.constant 13 : index
    %c0_49 = arith.constant 0 : index
    %120 = vector.load %arg4[%c13, %c0_49] : memref<20x8xf32, #tpu.memory_space<vmem>>, vector<1x8xf32>
    %c14 = arith.constant 14 : index
    %c0_50 = arith.constant 0 : index
    %121 = vector.load %arg4[%c14, %c0_50] : memref<20x8xf32, #tpu.memory_space<vmem>>, vector<1x8xf32>
    %c15 = arith.constant 15 : index
    %c0_51 = arith.constant 0 : index
    %122 = vector.load %arg4[%c15, %c0_51] : memref<20x8xf32, #tpu.memory_space<vmem>>, vector<1x8xf32>
    %c16 = arith.constant 16 : index
    %c0_52 = arith.constant 0 : index
    %123 = vector.load %arg4[%c16, %c0_52] : memref<20x8xf32, #tpu.memory_space<vmem>>, vector<1x8xf32>
    %c17 = arith.constant 17 : index
    %c0_53 = arith.constant 0 : index
    %124 = vector.load %arg4[%c17, %c0_53] : memref<20x8xf32, #tpu.memory_space<vmem>>, vector<1x8xf32>
    %125 = arith.truncf %115 : vector<32x8xf32> to vector<32x8xbf16>
    %c96 = arith.constant 96 : index
    %c0_54 = arith.constant 0 : index
    %126 = vector.load %arg2[%c96, %c0_54] : memref<4224x8xbf16, #tpu.memory_space<vmem>>, vector<8x8xbf16>
    %cst_55 = arith.constant dense<0.000000e+00> : vector<32x8xf32>
    %127 = tpu.matmul %125, %126, %cst_55 {dimension_numbers = #tpu.dot_dimension_numbers<[1], [0], [0], [1], [0, 0, 1, 1], [], []>} : vector<32x8xbf16>, vector<8x8xbf16>, vector<32x8xf32> -> vector<32x8xf32>
    %128 = vector.broadcast %116 : vector<1x8xf32> to vector<32x8xf32>
    %129 = arith.addf %127, %128 : vector<32x8xf32>
    %c104 = arith.constant 104 : index
    %c0_56 = arith.constant 0 : index
    %130 = vector.load %arg2[%c104, %c0_56] : memref<4224x8xbf16, #tpu.memory_space<vmem>>, vector<8x8xbf16>
    %cst_57 = arith.constant dense<0.000000e+00> : vector<32x8xf32>
    %131 = tpu.matmul %125, %130, %cst_57 {dimension_numbers = #tpu.dot_dimension_numbers<[1], [0], [0], [1], [0, 0, 1, 1], [], []>} : vector<32x8xbf16>, vector<8x8xbf16>, vector<32x8xf32> -> vector<32x8xf32>
    %132 = vector.broadcast %117 : vector<1x8xf32> to vector<32x8xf32>
    %133 = arith.addf %131, %132 : vector<32x8xf32>
    %c112 = arith.constant 112 : index
    %c0_58 = arith.constant 0 : index
    %134 = vector.load %arg2[%c112, %c0_58] : memref<4224x8xbf16, #tpu.memory_space<vmem>>, vector<8x8xbf16>
    %cst_59 = arith.constant dense<0.000000e+00> : vector<32x8xf32>
    %135 = tpu.matmul %125, %134, %cst_59 {dimension_numbers = #tpu.dot_dimension_numbers<[1], [0], [0], [1], [0, 0, 1, 1], [], []>} : vector<32x8xbf16>, vector<8x8xbf16>, vector<32x8xf32> -> vector<32x8xf32>
    %136 = vector.broadcast %118 : vector<1x8xf32> to vector<32x8xf32>
    %137 = arith.addf %135, %136 : vector<32x8xf32>
    %138 = vector.shape_cast %129 : vector<32x8xf32> to vector<2x16x8xf32>
    %139 = arith.truncf %138 : vector<2x16x8xf32> to vector<2x16x8xbf16>
    %140 = vector.shape_cast %133 : vector<32x8xf32> to vector<2x16x8xf32>
    %141 = arith.truncf %140 : vector<2x16x8xf32> to vector<2x16x8xbf16>
    %142 = vector.shape_cast %137 : vector<32x8xf32> to vector<2x16x8xf32>
    %143 = arith.truncf %142 : vector<2x16x8xf32> to vector<2x16x8xbf16>
    "tpu.trace_start"() <{level = 10 : i32, message = "bqd,bkd->bqk"}> : () -> ()
    %cst_60 = arith.constant dense<0.000000e+00> : vector<2x16x16xf32>
    %144 = tpu.matmul %139, %141, %cst_60 {dimension_numbers = #tpu.dot_dimension_numbers<[2], [2], [1], [1], [0, 0, 0, 1, 1, 1], [0], [0]>} : vector<2x16x8xbf16>, vector<2x16x8xbf16>, vector<2x16x16xf32> -> vector<2x16x16xf32>
    "tpu.trace_stop"() : () -> ()
    %cst_61 = arith.constant dense<0xFF800000> : vector<2x16xf32>
    %145 = vector.multi_reduction <maximumf>, %144, %cst_61 [2] : vector<2x16x16xf32> to vector<2x16xf32>
    %146 = vector.shape_cast %145 : vector<2x16xf32> to vector<2x16x1xf32>
    %147 = vector.broadcast %146 : vector<2x16x1xf32> to vector<2x16x16xf32>
    %148 = arith.subf %144, %147 : vector<2x16x16xf32>
    %149 = math.exp %148 : vector<2x16x16xf32>
    %cst_62 = arith.constant dense<0.000000e+00> : vector<2x16xf32>
    %150 = vector.multi_reduction <add>, %149, %cst_62 [2] : vector<2x16x16xf32> to vector<2x16xf32>
    %151 = vector.shape_cast %150 : vector<2x16xf32> to vector<2x16x1xf32>
    %152 = tpu.reciprocal %151 {approx = true} : vector<2x16x1xf32> -> vector<2x16x1xf32>
    %153 = vector.broadcast %152 : vector<2x16x1xf32> to vector<2x16x16xf32>
    %154 = arith.mulf %149, %153 : vector<2x16x16xf32>
    %155 = arith.truncf %154 : vector<2x16x16xf32> to vector<2x16x16xbf16>
    "tpu.trace_start"() <{level = 10 : i32, message = "bqk,bkd->bqd"}> : () -> ()
    %cst_63 = arith.constant dense<0.000000e+00> : vector<2x16x8xf32>
    %156 = tpu.matmul %155, %143, %cst_63 {dimension_numbers = #tpu.dot_dimension_numbers<[2], [1], [1], [2], [0, 0, 0, 1, 1, 2], [0], [0]>} : vector<2x16x16xbf16>, vector<2x16x8xbf16>, vector<2x16x8xf32> -> vector<2x16x8xf32>
    "tpu.trace_stop"() : () -> ()
    %157 = vector.shape_cast %156 : vector<2x16x8xf32> to vector<32x8xf32>
    %158 = arith.truncf %157 : vector<32x8xf32> to vector<32x8xbf16>
    %c120 = arith.constant 120 : index
    %c0_64 = arith.constant 0 : index
    %159 = vector.load %arg2[%c120, %c0_64] : memref<4224x8xbf16, #tpu.memory_space<vmem>>, vector<8x8xbf16>
    %cst_65 = arith.constant dense<0.000000e+00> : vector<32x8xf32>
    %160 = tpu.matmul %158, %159, %cst_65 {dimension_numbers = #tpu.dot_dimension_numbers<[1], [0], [0], [1], [0, 0, 1, 1], [], []>} : vector<32x8xbf16>, vector<8x8xbf16>, vector<32x8xf32> -> vector<32x8xf32>
    %161 = vector.broadcast %119 : vector<1x8xf32> to vector<32x8xf32>
    %162 = arith.addf %160, %161 : vector<32x8xf32>
    %163 = arith.addf %115, %162 : vector<32x8xf32>
    %cst_66 = arith.constant dense<0.000000e+00> : vector<32xf32>
    %164 = vector.multi_reduction <add>, %163, %cst_66 [1] : vector<32x8xf32> to vector<32xf32>
    %165 = vector.shape_cast %164 : vector<32xf32> to vector<32x1xf32>
    %cst_67 = arith.constant 8.000000e+00 : f32
    %166 = vector.broadcast %cst_67 : f32 to vector<32x1xf32>
    %167 = arith.divf %165, %166 : vector<32x1xf32>
    %168 = vector.broadcast %167 : vector<32x1xf32> to vector<32x8xf32>
    %169 = arith.subf %163, %168 : vector<32x8xf32>
    %170 = arith.mulf %169, %169 : vector<32x8xf32>
    %cst_68 = arith.constant dense<0.000000e+00> : vector<32xf32>
    %171 = vector.multi_reduction <add>, %170, %cst_68 [1] : vector<32x8xf32> to vector<32xf32>
    %172 = vector.shape_cast %171 : vector<32xf32> to vector<32x1xf32>
    %cst_69 = arith.constant 8.000000e+00 : f32
    %173 = vector.broadcast %cst_69 : f32 to vector<32x1xf32>
    %174 = arith.divf %172, %173 : vector<32x1xf32>
    %175 = vector.broadcast %167 : vector<32x1xf32> to vector<32x8xf32>
    %176 = arith.subf %163, %175 : vector<32x8xf32>
    %cst_70 = arith.constant 9.99999974E-6 : f32
    %177 = vector.broadcast %cst_70 : f32 to vector<32x1xf32>
    %178 = arith.addf %174, %177 : vector<32x1xf32>
    %179 = math.rsqrt %178 : vector<32x1xf32>
    %180 = vector.broadcast %179 : vector<32x1xf32> to vector<32x8xf32>
    %181 = arith.mulf %176, %180 : vector<32x8xf32>
    %182 = vector.broadcast %120 : vector<1x8xf32> to vector<32x8xf32>
    %183 = arith.mulf %181, %182 : vector<32x8xf32>
    %184 = vector.broadcast %121 : vector<1x8xf32> to vector<32x8xf32>
    %185 = arith.addf %183, %184 : vector<32x8xf32>
    %186 = arith.truncf %185 : vector<32x8xf32> to vector<32x8xbf16>
    %c8_71 = arith.constant 8 : index
    %c0_72 = arith.constant 0 : index
    %187 = vector.load %arg3[%c8_71, %c0_72] : memref<24x2048xbf16, #tpu.memory_space<vmem>>, vector<8x2048xbf16>
    %cst_73 = arith.constant dense<0.000000e+00> : vector<32x2048xf32>
    %188 = tpu.matmul %186, %187, %cst_73 {dimension_numbers = #tpu.dot_dimension_numbers<[1], [0], [0], [1], [0, 0, 1, 1], [], []>} : vector<32x8xbf16>, vector<8x2048xbf16>, vector<32x2048xf32> -> vector<32x2048xf32>
    %c1_74 = arith.constant 1 : index
    %c0_75 = arith.constant 0 : index
    %189 = vector.load %arg5[%c1_74, %c0_75] : memref<3x2048xf32, #tpu.memory_space<vmem>>, vector<1x2048xf32>
    %190 = vector.broadcast %189 : vector<1x2048xf32> to vector<32x2048xf32>
    %191 = arith.addf %188, %190 : vector<32x2048xf32>
    %cst_76 = arith.constant 0.000000e+00 : f32
    %192 = vector.broadcast %cst_76 : f32 to vector<32x2048xf32>
    %193 = arith.maximumf %191, %192 : vector<32x2048xf32>
    %194 = arith.truncf %193 : vector<32x2048xf32> to vector<32x2048xbf16>
    %c2176 = arith.constant 2176 : index
    %c0_77 = arith.constant 0 : index
    %195 = vector.load %arg2[%c2176, %c0_77] : memref<4224x8xbf16, #tpu.memory_space<vmem>>, vector<2048x8xbf16>
    %cst_78 = arith.constant dense<0.000000e+00> : vector<32x8xf32>
    %196 = tpu.matmul %194, %195, %cst_78 {dimension_numbers = #tpu.dot_dimension_numbers<[1], [0], [0], [1], [0, 0, 1, 1], [], []>} : vector<32x2048xbf16>, vector<2048x8xbf16>, vector<32x8xf32> -> vector<32x8xf32>
    %197 = vector.broadcast %122 : vector<1x8xf32> to vector<32x8xf32>
    %198 = arith.addf %196, %197 : vector<32x8xf32>
    %199 = arith.addf %185, %198 : vector<32x8xf32>
    %cst_79 = arith.constant dense<0.000000e+00> : vector<32xf32>
    %200 = vector.multi_reduction <add>, %199, %cst_79 [1] : vector<32x8xf32> to vector<32xf32>
    %201 = vector.shape_cast %200 : vector<32xf32> to vector<32x1xf32>
    %cst_80 = arith.constant 8.000000e+00 : f32
    %202 = vector.broadcast %cst_80 : f32 to vector<32x1xf32>
    %203 = arith.divf %201, %202 : vector<32x1xf32>
    %204 = vector.broadcast %203 : vector<32x1xf32> to vector<32x8xf32>
    %205 = arith.subf %199, %204 : vector<32x8xf32>
    %206 = arith.mulf %205, %205 : vector<32x8xf32>
    %cst_81 = arith.constant dense<0.000000e+00> : vector<32xf32>
    %207 = vector.multi_reduction <add>, %206, %cst_81 [1] : vector<32x8xf32> to vector<32xf32>
    %208 = vector.shape_cast %207 : vector<32xf32> to vector<32x1xf32>
    %cst_82 = arith.constant 8.000000e+00 : f32
    %209 = vector.broadcast %cst_82 : f32 to vector<32x1xf32>
    %210 = arith.divf %208, %209 : vector<32x1xf32>
    %211 = vector.broadcast %203 : vector<32x1xf32> to vector<32x8xf32>
    %212 = arith.subf %199, %211 : vector<32x8xf32>
    %cst_83 = arith.constant 9.99999974E-6 : f32
    %213 = vector.broadcast %cst_83 : f32 to vector<32x1xf32>
    %214 = arith.addf %210, %213 : vector<32x1xf32>
    %215 = math.rsqrt %214 : vector<32x1xf32>
    %216 = vector.broadcast %215 : vector<32x1xf32> to vector<32x8xf32>
    %217 = arith.mulf %212, %216 : vector<32x8xf32>
    %218 = vector.broadcast %123 : vector<1x8xf32> to vector<32x8xf32>
    %219 = arith.mulf %217, %218 : vector<32x8xf32>
    %220 = vector.broadcast %124 : vector<1x8xf32> to vector<32x8xf32>
    %221 = arith.addf %219, %220 : vector<32x8xf32>
    %c18 = arith.constant 18 : index
    %c0_84 = arith.constant 0 : index
    %222 = vector.load %arg4[%c18, %c0_84] : memref<20x8xf32, #tpu.memory_space<vmem>>, vector<1x8xf32>
    %c19 = arith.constant 19 : index
    %c0_85 = arith.constant 0 : index
    %223 = vector.load %arg4[%c19, %c0_85] : memref<20x8xf32, #tpu.memory_space<vmem>>, vector<1x8xf32>
    %cst_86 = arith.constant dense<0.000000e+00> : vector<32xf32>
    %224 = vector.multi_reduction <add>, %221, %cst_86 [1] : vector<32x8xf32> to vector<32xf32>
    %225 = vector.shape_cast %224 : vector<32xf32> to vector<32x1xf32>
    %cst_87 = arith.constant 8.000000e+00 : f32
    %226 = vector.broadcast %cst_87 : f32 to vector<32x1xf32>
    %227 = arith.divf %225, %226 : vector<32x1xf32>
    %228 = vector.broadcast %227 : vector<32x1xf32> to vector<32x8xf32>
    %229 = arith.subf %221, %228 : vector<32x8xf32>
    %230 = arith.mulf %229, %229 : vector<32x8xf32>
    %cst_88 = arith.constant dense<0.000000e+00> : vector<32xf32>
    %231 = vector.multi_reduction <add>, %230, %cst_88 [1] : vector<32x8xf32> to vector<32xf32>
    %232 = vector.shape_cast %231 : vector<32xf32> to vector<32x1xf32>
    %cst_89 = arith.constant 8.000000e+00 : f32
    %233 = vector.broadcast %cst_89 : f32 to vector<32x1xf32>
    %234 = arith.divf %232, %233 : vector<32x1xf32>
    %235 = vector.broadcast %227 : vector<32x1xf32> to vector<32x8xf32>
    %236 = arith.subf %221, %235 : vector<32x8xf32>
    %cst_90 = arith.constant 9.99999974E-6 : f32
    %237 = vector.broadcast %cst_90 : f32 to vector<32x1xf32>
    %238 = arith.addf %234, %237 : vector<32x1xf32>
    %239 = math.rsqrt %238 : vector<32x1xf32>
    %240 = vector.broadcast %239 : vector<32x1xf32> to vector<32x8xf32>
    %241 = arith.mulf %236, %240 : vector<32x8xf32>
    %242 = vector.broadcast %222 : vector<1x8xf32> to vector<32x8xf32>
    %243 = arith.mulf %241, %242 : vector<32x8xf32>
    %244 = vector.broadcast %223 : vector<1x8xf32> to vector<32x8xf32>
    %245 = arith.addf %243, %244 : vector<32x8xf32>
    %c16_91 = arith.constant 16 : index
    %c0_92 = arith.constant 0 : index
    %246 = vector.load %arg3[%c16_91, %c0_92] : memref<24x2048xbf16, #tpu.memory_space<vmem>>, vector<8x128xbf16>
    %c2_93 = arith.constant 2 : index
    %c0_94 = arith.constant 0 : index
    %247 = vector.load %arg5[%c2_93, %c0_94] : memref<3x2048xf32, #tpu.memory_space<vmem>>, vector<1x128xf32>
    %248 = arith.truncf %245 : vector<32x8xf32> to vector<32x8xbf16>
    %cst_95 = arith.constant dense<0.000000e+00> : vector<32x128xf32>
    %249 = tpu.matmul %248, %246, %cst_95 {dimension_numbers = #tpu.dot_dimension_numbers<[1], [0], [0], [1], [0, 0, 1, 1], [], []>} : vector<32x8xbf16>, vector<8x128xbf16>, vector<32x128xf32> -> vector<32x128xf32>
    %250 = vector.broadcast %247 : vector<1x128xf32> to vector<32x128xf32>
    %251 = arith.addf %249, %250 : vector<32x128xf32>
    %c0_96 = arith.constant 0 : index
    %c0_97 = arith.constant 0 : index
    %252 = vector.load %arg6[%c0_96, %c0_97] : memref<32x128xf32, #tpu.memory_space<vmem>>, vector<32x128xf32>
    tpu.vector_store %arg6[%c0_96, %c0_97], %251 {strides = array<i32>} : memref<32x128xf32, #tpu.memory_space<vmem>>, vector<32x128xf32>,
    return
  }
  func.func @transform_0(%arg0: i32) -> (i32, i32) {
    %c0_i32 = arith.constant 0 : i32
    %c0_i32_0 = arith.constant 0 : i32
    return %arg0, %c0_i32 : i32, i32
  }
  func.func @transform_1(%arg0: i32) -> (i32, i32) {
    %c0_i32 = arith.constant 0 : i32
    %c0_i32_0 = arith.constant 0 : i32
    %c0_i32_1 = arith.constant 0 : i32
    return %c0_i32, %c0_i32_0 : i32, i32
  }
  func.func @transform_2(%arg0: i32) -> (i32, i32) {
    %c0_i32 = arith.constant 0 : i32
    %c0_i32_0 = arith.constant 0 : i32
    %c0_i32_1 = arith.constant 0 : i32
    return %c0_i32, %c0_i32_0 : i32, i32
  }
  func.func @transform_3(%arg0: i32) -> (i32, i32) {
    %c0_i32 = arith.constant 0 : i32
    %c0_i32_0 = arith.constant 0 : i32
    %c0_i32_1 = arith.constant 0 : i32
    return %c0_i32, %c0_i32_0 : i32, i32
  }
  func.func @transform_4(%arg0: i32) -> (i32, i32) {
    %c0_i32 = arith.constant 0 : i32
    %c0_i32_0 = arith.constant 0 : i32
    %c0_i32_1 = arith.constant 0 : i32
    return %c0_i32, %c0_i32_0 : i32, i32
  }
  func.func @transform_5(%arg0: i32) -> (i32, i32) {
    %c0_i32 = arith.constant 0 : i32
    %c0_i32_0 = arith.constant 0 : i32
    return %arg0, %c0_i32 : i32, i32
  }
}

</mosaic_0001>

<bundles_post_ra>
// kernel: regular_transformer_ner.1
= control target key start
LH: loop header
LB: loop body
LE: loop exit
PB: predicated region body
PF: predicated region fallthrough
CT: control target
= control target key end

     0   :  { %v6498_v0 = vmov 0   ;;  %v25_v9 = vlaneseq  ;;  %v6499_v14 = vmov 0.0   ;;  %vm81_vm2 = vcmask 523264   ;;  %s8132_s0 = inlined_call_operand.vmem [shape: s32[32,1], index: 0, kind: input, shape index: {}]   ;;  %s8133_s1 = inlined_call_operand.vmem [shape: bf16[4224,8], index: 1, kind: input, shape index: {}]   ;;  %s8134_s3 = inlined_call_operand.vmem [shape: f32[20,8], index: 3, kind: input, shape index: {}]   ;;  %s8135_s2 = inlined_call_operand.vmem [shape: bf16[24,2048], index: 2, kind: input, shape index: {}]   ;;  %s8136_s4 = inlined_call_operand.vmem [shape: f32[3,2048], index: 4, kind: input, shape index: {}]   ;;  %s8137_s5 = inlined_call_operand.vmem [shape: f32[32,128], index: 5, kind: output, shape index: {}]  }
   0x1   :  { %6401 = vset.pattern.permute.xlu0 %v6498_v0  ;;  %v21_v1 = vld [vmem:[%s8132_s0] sm:$0xff]  ;;  %6402 = vset.pattern.permute.xlu1 %v6498_v0  ;;  %v23_v2 = vld [vmem:[%s8132_s0 + $0x10] sm:$0xff]  ;;  %v6139_v3 = vld [vmem:[%s8133_s1 + $0x18] sm:$0xff]  ;;  %vm127_vm5 = vcmask 1043456   ;;  %vm120_vm6 = vcmask 64512   ;;  %vm270_vm7 = vcmask 130048  }
   0x2   :  { %28 = vperm.xlu0 %6401, %v21_v1   ;;  %34 = vperm.xlu1 %6402, %v23_v2   ;;  %v22_v4 = vld [vmem:[%s8132_s0 + $0x8] sm:$0xff]  ;;  %v24_v5 = vld [vmem:[%s8132_s0 + $0x18] sm:$0xff]  ;;  %v6138_v6 = vld [vmem:[%s8133_s1 + $0x10] sm:$0xff]  ;;  %v26_v11 = vand.u32 127, %v25_v9 }
   0x3   :  { %92 = vmatpush.bf16.msra.mxu0 %v6139_v3  ;;  %v6137_v7 = vld [vmem:[%s8133_s1 + $0x8] sm:$0xff]  ;;  %v6136_v8 = vld [vmem:[%s8133_s1] sm:$0xff] }
   0x4   :  { %v118_v22 = vld [vmem:[%s8133_s1 + $0x20] sm:$0xf]  ;;  %v150_v23 = vld [vmem:[%s8133_s1 + $0x24] sm:$0xf]  ;;  %v174_v26 = vld [vmem:[%s8133_s1 + $0x28] sm:$0xf] }
   0x5   :  { %v129_v24 = vsel %vm127_vm5, %v118_v22, 0  ;;  %v153_v25 = vsel %vm127_vm5, %v150_v23, 0  ;;  %v177_v27 = vsel %vm127_vm5, %v174_v26, 0  ;;  %v6404_v36 = vld [vmem:[%s8134_s3 + $0x1] ss:$0 sm:$0xff] }
   0x6   :  { %138 = vmatpush.bf16.msra.mxu1 %v129_v24  ;;  %6396 = vmatpush.bf16.msra.mxu3 %v129_v24  ;;  %v6403_v40 = vld [vmem:[%s8134_s3] ss:$0 sm:$0xff] }
   0x7   :  { %93 = vmatpush.bf16.msra.mxu0 %v6138_v6  ;;  %6397 = vmatpush.bf16.msra.mxu2 %v153_v25 }
   0xa   :  { %31 = vperm.xlu0 %6401, %v22_v4   ;;  %37 = vperm.xlu1 %6402, %v24_v5  }
   0xb   :  { %94 = vmatpush.bf16.msra.mxu0 %v6137_v7  ;;  %186 = vmatpush.bf16.msrb.mxu3 %v177_v27  ;;  %v6405_v7 = vld [vmem:[%s8134_s3 + $0x2] ss:$0 sm:$0xff] }
   0xf   :  { %95 = vmatpush.bf16.msra.mxu0 %v6136_v8 }
  0x13   :  { %162 = vmatpush.bf16.msrb.mxu0 %v153_v25 }
  0x74   :  { %v29_v10 = vpop.permute.xlu0 %28  ;;  %v35_v12 = vpop.permute.xlu1 %34 }
  0x75   :  { %vm39_vm0 = vcmp.eq.s32.totalorder %v29_v10, %v26_v11  ;;  %vm41_vm3 = vcmp.eq.s32.totalorder %v35_v12, %v26_v11 }
  0x76   :  { %v43_v15 = vsel %vm39_vm0, 1.0, %v6499_v14  ;;  %v45_v19 = vsel %vm41_vm3, 1.0, %v6499_v14 }
  0x7c   :  { %v32_v13 = vpop.permute.xlu0 %31  ;;  %v38_v18 = vpop.permute.xlu1 %37 }
  0x7d   :  { %vm40_vm1 = vcmp.eq.s32.totalorder %v32_v13, %v26_v11  ;;  %vm42_vm4 = vcmp.eq.s32.totalorder %v38_v18, %v26_v11 }
  0x7e   :  { %v44_v16 = vsel %vm40_vm1, 1.0, %v6499_v14  ;;  %v46_v20 = vsel %vm42_vm4, 1.0, %v6499_v14 }
  0x7f   :  { %v47_v17 = vpack.c.bf16 %v44_v16, %v43_v15  ;;  %v48_v21 = vpack.c.bf16 %v46_v20, %v45_v19 }
  0x81   :  { %5017 = vmatmul.msk.bf16.vlgmr.msra.gmra.mxu0 %vm81_vm2, %v47_v17 }
  0x91   :  { %5018 = vmatmul.msk.bf16.gmra.mxu0 %vm81_vm2, %v48_v21 }
  0xfe   :  { %v6567_v28 = vpop.f32.mrf.mxu0 }
 0x106   :  { %v6569_v29 = vpop.f32.mrf.mxu0 }
 0x107   :  { %v116_v30 = vpack.c.bf16 %v6569_v29, %v6567_v28 }
 0x109   :  { %5019 = vmatmul.msk.bf16.vlgmr.msra.gmra.mxu1 %vm120_vm6, %v116_v30  ;;  %5021 = vmatmul.msk.bf16.vlgmr.msrb.gmra.mxu0 %vm120_vm6, %v116_v30 }
 0x10e   :  { %v6575_v31 = vpop.f32.mrf.mxu0 }
 0x116   :  { %v6577_v32 = vpop.f32.mrf.mxu0 }
 0x117   :  { %v117_v33 = vpack.c.bf16 %v6577_v32, %v6575_v31 }
 0x119   :  { %5020 = vmatmul.msk.bf16.vlgmr.msra.gmra.mxu3 %vm120_vm6, %v117_v33  ;;  %5022 = vmatmul.msk.bf16.vlgmr.msra.gmra.mxu2 %vm120_vm6, %v117_v33 }
 0x129   :  { %5023 = vmatmul.msk.bf16.vlgmr.msrb.gmra.mxu3 %vm120_vm6, %v116_v30 }
 0x139   :  { %5024 = vmatmul.msk.bf16.gmra.mxu3 %vm120_vm6, %v117_v33 }
 0x186   :  { %v140_v34 = vpop.f32.mrf.mxu1  ;;  %v164_v35 = vpop.f32.mrf.mxu0 }
 0x187   :  { %v165_v37 = vadd.f32 %v6404_v36, %v164_v35  ;;  %v141_v45 = vadd.f32 %v6403_v40, %v140_v34 }
 0x189   :  { %v202_v41 = vpack.c.bf16 %v165_v37, %v165_v37  ;;  %v198_v50 = vpack.c.bf16 %v141_v45, %v141_v45 }
 0x18b   :  { %v217_v46 = vunpack.c.l.b16 %v202_v41  ;;  %v212_v53 = vunpack.c.l.b16 %v198_v50 }
 0x18e   :  { %v142_v38 = vpop.f32.mrf.mxu1  ;;  %v166_v39 = vpop.f32.mrf.mxu0 }
 0x18f   :  { %v167_v42 = vadd.f32 %v6404_v36, %v166_v39  ;;  %v143_v43 = vadd.f32 %v6403_v40, %v142_v38 }
 0x191   :  { %v203_v44 = vpack.c.bf16 %v167_v42, %v167_v42  ;;  %v199_v48 = vpack.c.bf16 %v143_v43, %v143_v43 }
 0x193   :  { %v218_v47 = vunpack.c.l.b16 %v203_v44  ;;  %v213_v52 = vunpack.c.l.b16 %v199_v48 }
 0x195   :  { %v219_v49 = vpack.c.b16 %v218_v47, %v217_v46  ;;  %v214_v56 = vpack.c.b16 %v213_v52, %v212_v53 }
 0x197   :  { %v224_v51 = vsel %vm120_vm6, %v219_v49, 0 }
 0x198   :  { %233 = vmatpush.bf16.xpose.msrb.mxu1 %v224_v51 }
 0x19c   :  { %v145_v54 = vpop.f32.mrf.mxu3  ;;  %v169_v55 = vpop.f32.mrf.mxu2 }
 0x19d   :  { %v170_v57 = vadd.f32 %v6404_v36, %v169_v55  ;;  %v146_v0 = vadd.f32 %v6403_v40, %v145_v54 }
 0x19f   :  { %5025 = vmatmul.msk.bf16.vlgmr.msrb.gmra.mxu1 %vm120_vm6, %v214_v56  ;;  %v204_v60 = vpack.c.bf16 %v170_v57, %v170_v57  ;;  %v200_v6 = vpack.c.bf16 %v146_v0, %v146_v0 }
 0x1a1   :  { %v247_v1 = vunpack.c.l.b16 %v204_v60  ;;  %v242_v10 = vunpack.c.l.b16 %v200_v6 }
 0x1a4   :  { %v147_v58 = vpop.f32.mrf.mxu3  ;;  %v171_v59 = vpop.f32.mrf.mxu2 }
 0x1a5   :  { %v172_v61 = vadd.f32 %v6404_v36, %v171_v59  ;;  %v148_v62 = vadd.f32 %v6403_v40, %v147_v58 }
 0x1a7   :  { %v205_v63 = vpack.c.bf16 %v172_v61, %v172_v61  ;;  %v201_v3 = vpack.c.bf16 %v148_v62, %v148_v62 }
 0x1a9   :  { %v248_v2 = vunpack.c.l.b16 %v205_v63  ;;  %v243_v9 = vunpack.c.l.b16 %v201_v3 }
 0x1ab   :  { %v249_v4 = vpack.c.b16 %v248_v2, %v247_v1  ;;  %v244_v12 = vpack.c.b16 %v243_v9, %v242_v10 }
 0x1ac   :  { %v188_v5 = vpop.f32.mrf.mxu3 }
 0x1ad   :  { %v254_v8 = vsel %vm120_vm6, %v249_v4, 0  ;;  %v189_v11 = vadd.f32 %v6405_v7, %v188_v5 }
 0x1ae   :  { %263 = vmatpush.bf16.xpose.msrb.mxu2 %v254_v8 }
 0x1af   :  { %v206_v14 = vpack.c.bf16 %v189_v11, %v189_v11 }
 0x1b1   :  { %v326_v17 = vunpack.c.l.b16 %v206_v14 }
 0x1b4   :  { %v190_v13 = vpop.f32.mrf.mxu3 }
 0x1b5   :  { %v191_v15 = vadd.f32 %v6405_v7, %v190_v13  ;;  %5026 = vmatmul.msk.bf16.vlgmr.msrb.gmra.mxu2 %vm120_vm6, %v244_v12 }
 0x1b7   :  { %v207_v16 = vpack.c.bf16 %v191_v15, %v191_v15 }
 0x1b9   :  { %v327_v18 = vunpack.c.l.b16 %v207_v16 }
 0x1bb   :  { %v328_v19 = vpack.c.b16 %v327_v18, %v326_v17 }
 0x1bc   :  { %v193_v20 = vpop.f32.mrf.mxu3 }
 0x1bd   :  { %340 = vmatpush.bf16.msra.mxu3 %v328_v19  ;;  %v194_v21 = vadd.f32 %v6405_v7, %v193_v20  ;;  %v377_v19 = vld [vmem:[%s8133_s1 + $0x2c] sm:$0xf] }
 0x1be   :  { %v386_v20 = vsel %vm127_vm5, %v377_v19, 0 }
 0x1bf   :  { %v208_v23 = vpack.c.bf16 %v194_v21, %v194_v21  ;;  %395 = vmatpush.bf16.msra.mxu1 %v386_v20 }
 0x1c1   :  { %v354_v26 = vunpack.c.l.b16 %v208_v23 }
 0x1c4   :  { %v195_v22 = vpop.f32.mrf.mxu3 }
 0x1c5   :  { %v196_v24 = vadd.f32 %v6405_v7, %v195_v22 }
 0x1c7   :  { %v209_v25 = vpack.c.bf16 %v196_v24, %v196_v24 }
 0x1c9   :  { %v355_v27 = vunpack.c.l.b16 %v209_v25 }
 0x1cb   :  { %v356_v30 = vpack.c.b16 %v355_v27, %v354_v26  ;;  %v6406_v27 = vld [vmem:[%s8134_s3 + $0x3] ss:$0 sm:$0xff] }
 0x1cd   :  { %368 = vmatpush.bf16.msra.mxu0 %v356_v30 }
 0x21c   :  { %v235_v33 = vpop.f32.mrf.mxu1 }
 0x21d   :  { %v271_v34 = vsel %vm270_vm7, %v235_v33, -inf }
 0x21e   :  { %272 = vmax.xlane.f32.xlu2 %v271_v34 }
 0x224   :  { %v237_v35 = vpop.f32.mrf.mxu1 }
 0x225   :  { %v274_v36 = vsel %vm270_vm7, %v237_v35, -inf }
 0x226   :  { %275 = vmax.xlane.f32.xlu2 %v274_v36 }
 0x238   :  { %v265_v37 = vpop.f32.mrf.mxu2 }
 0x239   :  { %v277_v38 = vsel %vm270_vm7, %v265_v37, -inf }
 0x23a   :  { %278 = vmax.xlane.f32.xlu0 %v277_v38 }
 0x240   :  { %v267_v39 = vpop.f32.mrf.mxu2 }
 0x241   :  { %v280_v40 = vsel %vm270_vm7, %v267_v39, -inf }
 0x242   :  { %281 = vmax.xlane.f32.xlu1 %v280_v40 }
 0x291   :  { %v273_v41 = vpop.xlane.xlu2 %272 }
 0x292   :  { %v283_v42 = vsub.f32 %v235_v33, %v273_v41 }
 0x294   :  { %v287_v43 = vmul.f32 1.442695, %v283_v42 }
 0x296   :  { %6424 = vpow2.f32 %v287_v43 }
 0x299   :  { %v276_v44 = vpop.xlane.xlu2 %275 }
 0x29a   :  { %v284_v45 = vsub.f32 %v237_v35, %v276_v44 }
 0x29c   :  { %v6425_v46 = vpop.eup %6424  ;;  %v289_v47 = vmul.f32 1.442695, %v284_v45 }
 0x29d   :  { %v295_v48 = vsel %vm270_vm7, %v6425_v46, 0.0 }
 0x29e   :  { %6426 = vpow2.f32 %v289_v47  ;;  %296 = vadd.xlane.f32.xlu2 %v295_v48  ;;  %v6500_v47 = vmov 8.0  }
 0x2a4   :  { %v6427_v49 = vpop.eup %6426 }
 0x2a5   :  { %v298_v50 = vsel %vm270_vm7, %v6427_v49, 0.0 }
 0x2a6   :  { %299 = vadd.xlane.f32.xlu2 %v298_v50 }
 0x2ad   :  { %v279_v51 = vpop.xlane.xlu0 %278 }
 0x2ae   :  { %v285_v52 = vsub.f32 %v265_v37, %v279_v51 }
 0x2b0   :  { %v291_v53 = vmul.f32 1.442695, %v285_v52 }
 0x2b2   :  { %6428 = vpow2.f32 %v291_v53 }
 0x2b5   :  { %v282_v54 = vpop.xlane.xlu1 %281 }
 0x2b6   :  { %v286_v55 = vsub.f32 %v267_v39, %v282_v54 }
 0x2b8   :  { %v6429_v56 = vpop.eup %6428  ;;  %v293_v57 = vmul.f32 1.442695, %v286_v55 }
 0x2b9   :  { %v301_v58 = vsel %vm270_vm7, %v6429_v56, 0.0 }
 0x2ba   :  { %6430 = vpow2.f32 %v293_v57  ;;  %302 = vadd.xlane.f32.xlu2 %v301_v58 }
 0x2c0   :  { %v6431_v59 = vpop.eup %6430 }
 0x2c1   :  { %v304_v60 = vsel %vm270_vm7, %v6431_v59, 0.0 }
 0x2c2   :  { %305 = vadd.xlane.f32.xlu2 %v304_v60 }
 0x311   :  { %v297_v61 = vpop.xlane.xlu2 %296 }
 0x312   :  { %6432 = vrcp.f32 %v297_v61 }
 0x318   :  { %v6433_v63 = vpop.eup %6432 }
 0x319   :  { %v300_v62 = vpop.xlane.xlu2 %299  ;;  %v311_v0 = vmul.f32 %v6433_v63, %v6425_v46 }
 0x31a   :  { %6434 = vrcp.f32 %v300_v62 }
 0x31b   :  { %v315_v2 = vpack.c.bf16 %v311_v0, %v311_v0 }
 0x31d   :  { %v321_v5 = vunpack.c.l.b16 %v315_v2 }
 0x320   :  { %v6435_v1 = vpop.eup %6434 }
 0x321   :  { %v312_v3 = vmul.f32 %v6435_v1, %v6427_v49 }
 0x323   :  { %v316_v4 = vpack.c.bf16 %v312_v3, %v312_v3 }
 0x325   :  { %v322_v6 = vunpack.c.l.b16 %v316_v4 }
 0x327   :  { %v323_v7 = vpack.c.b16 %v322_v6, %v321_v5 }
 0x329   :  { %5027 = vmatmul.msk.bf16.vlgmr.msra.gmra.mxu3 %vm270_vm7, %v323_v7  ;;  %v518_v7 = vld [vmem:[%s8135_s2] sm:$0xff] }
 0x32d   :  { %v303_v8 = vpop.xlane.xlu2 %302 }
 0x32e   :  { %6436 = vrcp.f32 %v303_v8  ;;  %v519_v8 = vld [vmem:[%s8135_s2 + $0x8] sm:$0xff] }
 0x334   :  { %v6437_v10 = vpop.eup %6436 }
 0x335   :  { %v306_v9 = vpop.xlane.xlu2 %305  ;;  %v313_v11 = vmul.f32 %v6437_v10, %v6429_v56  ;;  %v572_v10 = vunpack.c.h.b16 %v518_v7 }
 0x336   :  { %6438 = vrcp.f32 %v306_v9  ;;  %v571_v9 = vunpack.c.l.b16 %v518_v7 }
 0x337   :  { %v317_v13 = vpack.c.bf16 %v313_v11, %v313_v11  ;;  %6440 = vrcp.f32 %v6500_v47  ;;  %v573_v11 = vunpack.c.l.b16 %v519_v8 }
 0x339   :  { %v349_v16 = vunpack.c.l.b16 %v317_v13 }
 0x33c   :  { %v6439_v12 = vpop.eup %6438 }
 0x33d   :  { %v314_v14 = vmul.f32 %v6439_v12, %v6431_v59  ;;  %v574_v12 = vunpack.c.h.b16 %v519_v8 }
 0x33f   :  { %v318_v15 = vpack.c.bf16 %v314_v14, %v314_v14 }
 0x341   :  { %v350_v17 = vunpack.c.l.b16 %v318_v15  ;;  %v587_v15 = vpack.c.b16 %v571_v9, %v571_v9 }
 0x343   :  { %v351_v18 = vpack.c.b16 %v350_v17, %v349_v16  ;;  %v588_v16 = vpack.c.b16 %v572_v10, %v572_v10  ;;  %v589_v17 = vpack.c.b16 %v573_v11, %v573_v11  ;;  %v610_v20 = vsel %vm127_vm5, %v587_v15, 0 }
 0x344   :  { %664 = vmatpush.bf16.msra.mxu2 %v610_v20 }
 0x345   :  { %5028 = vmatmul.msk.bf16.vlgmr.msra.gmra.mxu0 %vm270_vm7, %v351_v18  ;;  %v590_v18 = vpack.c.b16 %v574_v12, %v574_v12 }
 0x3ac   :  { %v342_v21 = vpop.f32.mrf.mxu3 }
 0x3b4   :  { %v344_v22 = vpop.f32.mrf.mxu3 }
 0x3b5   :  { %v375_v23 = vpack.c.bf16 %v344_v22, %v342_v21  ;;  %v613_v21 = vsel %vm127_vm5, %v588_v16, 0  ;;  %v616_v22 = vsel %vm127_vm5, %v589_v17, 0 }
 0x3b6   :  { %683 = vmatpush.bf16.msrb.mxu3 %v613_v21  ;;  %702 = vmatpush.bf16.msrb.mxu0 %v616_v22 }
 0x3b7   :  { %5029 = vmatmul.msk.bf16.vlgmr.msra.gmra.mxu1 %vm120_vm6, %v375_v23  ;;  %v619_v23 = vsel %vm127_vm5, %v590_v18, 0 }
 0x3b8   :  { %721 = vmatpush.bf16.msrb.mxu1 %v619_v23 }
 0x3c2   :  { %v370_v24 = vpop.f32.mrf.mxu0 }
 0x3ca   :  { %v372_v25 = vpop.f32.mrf.mxu0 }
 0x3cb   :  { %v376_v26 = vpack.c.bf16 %v372_v25, %v370_v24 }
 0x3cd   :  { %5030 = vmatmul.msk.bf16.gmra.mxu1 %vm120_vm6, %v376_v26 }
 0x434   :  { %v397_v30 = vpop.f32.mrf.mxu1 }
 0x435   :  { %v398_v33 = vadd.f32 %v6406_v27, %v397_v30 }
 0x437   :  { %v407_v34 = vadd.f32 %v398_v33, %v6567_v28 }
 0x439   :  { %v411_v35 = vsel %vm120_vm6, %v407_v34, 0.0 }
 0x43a   :  { %412 = vadd.xlane.f32.xlu2 %v411_v35 }
 0x43c   :  { %v399_v36 = vpop.f32.mrf.mxu1 }
 0x43d   :  { %v400_v37 = vadd.f32 %v6406_v27, %v399_v36 }
 0x43f   :  { %v408_v38 = vadd.f32 %v400_v37, %v6569_v29  ;;  %v6441_v29 = vpop.eup %6440 }
 0x440   :  { %v424_v48 = vmul.f32 8.0, %v6441_v29  ;;  %vm428_vm8 = vweird.f32 %v6441_v29 }
 0x441   :  { %v414_v39 = vsel %vm120_vm6, %v408_v38, 0.0 }
 0x442   :  { %415 = vadd.xlane.f32.xlu2 %v414_v39  ;;  %v425_v49 = vsub.f32 1.0, %v424_v48 }
 0x444   :  { %v426_v50 = vmul.f32 %v6441_v29, %v425_v49 }
 0x446   :  { %v427_v51 = vadd.f32 %v6441_v29, %v426_v50  ;;  %v520_v50 = vld [vmem:[%s8135_s2 + $0x10] sm:$0xff] }
 0x448   :  { %v6625_v52 = vsel %vm428_vm8, %v6441_v29, %v427_v51  ;;  %v521_v51 = vld [vmem:[%s8135_s2 + $0x18] sm:$0xff] }
 0x44a   :  { %v402_v40 = vpop.f32.mrf.mxu1 }
 0x44b   :  { %v403_v41 = vadd.f32 %v6406_v27, %v402_v40 }
 0x44d   :  { %v409_v42 = vadd.f32 %v403_v41, %v6575_v31 }
 0x44f   :  { %v417_v43 = vsel %vm120_vm6, %v409_v42, 0.0 }
 0x450   :  { %418 = vadd.xlane.f32.xlu0 %v417_v43 }
 0x452   :  { %v404_v44 = vpop.f32.mrf.mxu1 }
 0x453   :  { %v405_v45 = vadd.f32 %v6406_v27, %v404_v44 }
 0x455   :  { %v410_v28 = vadd.f32 %v405_v45, %v6577_v32  ;;  %v6667_v45 = vld [vmem:[%s8134_s3 + $0x4] ss:$0 sm:$0xff] }
 0x457   :  { %v420_v46 = vsel %vm120_vm6, %v410_v28, 0.0 }
 0x458   :  { %421 = vadd.xlane.f32.xlu1 %v420_v46 }
 0x4ad   :  { %v413_v31 = vpop.xlane.xlu2 %412 }
 0x4ae   :  { %v430_v53 = vmul.f32 %v6625_v52, %v413_v31  ;;  %v6408_v31 = vld [vmem:[%s8134_s3 + $0x5] ss:$0 sm:$0xff] }
 0x4b0   :  { %v6628_v54 = vsub.f32 %v407_v34, %v430_v53 }
 0x4b2   :  { %v438_v32 = vmul.f32 %v6628_v54, %v6628_v54 }
 0x4b4   :  { %v442_v55 = vsel %vm120_vm6, %v438_v32, 0.0  ;;  %v575_v32 = vunpack.c.l.b16 %v520_v50 }
 0x4b5   :  { %443 = vadd.xlane.f32.xlu2 %v442_v55  ;;  %v416_v56 = vpop.xlane.xlu2 %415  ;;  %v576_v55 = vunpack.c.h.b16 %v520_v50 }
 0x4b6   :  { %v431_v57 = vmul.f32 %v6625_v52, %v416_v56  ;;  %v577_v56 = vunpack.c.l.b16 %v521_v51 }
 0x4b8   :  { %v6634_v58 = vsub.f32 %v408_v38, %v431_v57  ;;  %v578_v57 = vunpack.c.h.b16 %v521_v51 }
 0x4ba   :  { %v439_v59 = vmul.f32 %v6634_v58, %v6634_v58 }
 0x4bc   :  { %v445_v60 = vsel %vm120_vm6, %v439_v59, 0.0 }
 0x4bd   :  { %446 = vadd.xlane.f32.xlu0 %v445_v60 }
 0x4c3   :  { %v419_v61 = vpop.xlane.xlu0 %418 }
 0x4c4   :  { %v432_v62 = vmul.f32 %v6625_v52, %v419_v61 }
 0x4c6   :  { %v6640_v63 = vsub.f32 %v409_v42, %v432_v62  ;;  %v591_v62 = vpack.c.b16 %v575_v32, %v575_v32 }
 0x4c8   :  { %v440_v0 = vmul.f32 %v6640_v63, %v6640_v63 }
 0x4ca   :  { %v448_v1 = vsel %vm120_vm6, %v440_v0, 0.0  ;;  %v592_v0 = vpack.c.b16 %v576_v55, %v576_v55 }
 0x4cb   :  { %v422_v2 = vpop.xlane.xlu1 %421  ;;  %449 = vadd.xlane.f32.xlu1 %v448_v1 }
 0x4cc   :  { %v433_v3 = vmul.f32 %v6625_v52, %v422_v2  ;;  %v593_v2 = vpack.c.b16 %v577_v56, %v577_v56  ;;  %v625_v8 = vsel %vm127_vm5, %v592_v0, 0  ;;  %v6170_v0 = vld [vmem:[%s8133_s1 + $0x130] sm:$0xff] }
 0x4cd   :  { %759 = vmatpush.bf16.msra.mxu3 %v625_v8  ;;  %v6168_v8 = vld [vmem:[%s8133_s1 + $0x120] sm:$0xff] }
 0x4ce   :  { %v6646_v4 = vsub.f32 %v410_v28, %v433_v3  ;;  %v594_v3 = vpack.c.b16 %v578_v57, %v578_v57  ;;  %v628_v9 = vsel %vm127_vm5, %v593_v2, 0  ;;  %v6163_v57 = vld [vmem:[%s8133_s1 + $0xf8] sm:$0xff]  ;;  %v6169_v2 = vld [vmem:[%s8133_s1 + $0x128] sm:$0xff] }
 0x4cf   :  { %778 = vmatpush.bf16.msra.mxu0 %v628_v9  ;;  %v6145_v9 = vld [vmem:[%s8133_s1 + $0x68] sm:$0xff] }
 0x4d0   :  { %v441_v5 = vmul.f32 %v6646_v4, %v6646_v4  ;;  %v631_v10 = vsel %vm127_vm5, %v594_v3, 0  ;;  %v6146_v3 = vld [vmem:[%s8133_s1 + $0x70] sm:$0xff] }
 0x4d1   :  { %797 = vmatpush.bf16.msra.mxu1 %v631_v10  ;;  %v6153_v10 = vld [vmem:[%s8133_s1 + $0xa8] sm:$0xff] }
 0x4d2   :  { %v451_v6 = vsel %vm120_vm6, %v441_v5, 0.0 }
 0x4d3   :  { %452 = vadd.xlane.f32.xlu2 %v451_v6 }
 0x528   :  { %v444_v13 = vpop.xlane.xlu2 %443 }
 0x529   :  { %v454_v14 = vmul.f32 %v444_v13, %v6625_v52 }
 0x52b   :  { %v458_v19 = vadd.f32 1e-05, %v454_v14 }
 0x52d   :  { %6442 = vrsqrt.f32 %v458_v19  ;;  %vm468_vm10 = vweird.f32 %v458_v19 }
 0x530   :  { %v447_v24 = vpop.xlane.xlu0 %446 }
 0x531   :  { %v455_v25 = vmul.f32 %v447_v24, %v6625_v52 }
 0x533   :  { %v6443_v26 = vpop.eup %6442  ;;  %v459_v27 = vadd.f32 1e-05, %v455_v25 }
 0x534   :  { %v463_v30 = vmul.f32 %v6443_v26, %v458_v19  ;;  %vm469_vm9 = vweird.f32 %v6443_v26 }
 0x535   :  { %6444 = vrsqrt.f32 %v459_v27  ;;  %vm470_vm11 = vmor %vm468_vm10, %vm469_vm9  ;;  %vm478_vm13 = vweird.f32 %v459_v27 }
 0x536   :  { %v464_v33 = vmul.f32 %v6443_v26, %v463_v30 }
 0x538   :  { %v465_v34 = vmul.f32 0.5, %v464_v33 }
 0x53a   :  { %v466_v35 = vsub.f32 1.5, %v465_v34 }
 0x53b   :  { %v6445_v36 = vpop.eup %6444 }
 0x53c   :  { %v467_v37 = vmul.f32 %v6443_v26, %v466_v35  ;;  %v473_v38 = vmul.f32 %v6445_v36, %v459_v27  ;;  %vm479_vm12 = vweird.f32 %v6445_v36 }
 0x53d   :  { %vm480_vm14 = vmor %vm478_vm13, %vm479_vm12 }
 0x53e   :  { %v474_v39 = vmul.f32 %v6445_v36, %v473_v38  ;;  %v450_v40 = vpop.xlane.xlu1 %449  ;;  %v471_v41 = vsel %vm470_vm11, %v6443_v26, %v467_v37 }
 0x53f   :  { %v456_v42 = vmul.f32 %v450_v40, %v6625_v52  ;;  %v502_v28 = vmul.f32 %v471_v41, %v6628_v54 }
 0x540   :  { %v475_v43 = vmul.f32 0.5, %v474_v39 }
 0x541   :  { %v460_v44 = vadd.f32 1e-05, %v456_v42  ;;  %v507_v29 = vmul.f32 %v6667_v45, %v502_v28  ;;  %v524_v28 = vld [vmem:[%s8135_s2 + $0x30] sm:$0xff] }
 0x542   :  { %v476_v46 = vsub.f32 1.5, %v475_v43 }
 0x543   :  { %6446 = vrsqrt.f32 %v460_v44  ;;  %v6683_v5 = vadd.f32 %v6408_v31, %v507_v29  ;;  %vm488_vm0 = vweird.f32 %v460_v44  ;;  %v584_v29 = vunpack.c.h.b16 %v524_v28 }
 0x544   :  { %v477_v47 = vmul.f32 %v6445_v36, %v476_v46  ;;  %v525_v46 = vld [vmem:[%s8135_s2 + $0x38] sm:$0xff] }
 0x545   :  { %v600_v51 = vpack.c.b16 %v584_v29, %v584_v29  ;;  %v6185_v29 = vld [vmem:[%s8133_s1 + $0x1a8] sm:$0xff] }
 0x546   :  { %v481_v48 = vsel %vm480_vm14, %v6445_v36, %v477_v47  ;;  %v453_v49 = vpop.xlane.xlu2 %452  ;;  %v583_v47 = vunpack.c.l.b16 %v524_v28  ;;  %v6192_v28 = vld [vmem:[%s8133_s1 + $0x1e0] sm:$0xff] }
 0x547   :  { %v503_v53 = vmul.f32 %v481_v48, %v6634_v58  ;;  %v457_v54 = vmul.f32 %v453_v49, %v6625_v52  ;;  %v622_v58 = vsel %vm127_vm5, %v591_v62, 0  ;;  %v585_v48 = vunpack.c.l.b16 %v525_v46  ;;  %v6162_v62 = vld [vmem:[%s8133_s1 + $0xf0] sm:$0xff] }
 0x548   :  { %740 = vmatpush.bf16.msrb.mxu2 %v622_v58  ;;  %v586_v49 = vunpack.c.h.b16 %v525_v46  ;;  %v599_v50 = vpack.c.b16 %v583_v47, %v583_v47  ;;  %v649_v32 = vsel %vm127_vm5, %v600_v51, 0  ;;  %v6154_v58 = vld [vmem:[%s8133_s1 + $0xb0] sm:$0xff]  ;;  %v6200_v46 = vld [vmem:[%s8133_s1 + $0x220] sm:$0xff]  ;;  %v6177_v47 = vld [vmem:[%s8133_s1 + $0x168] sm:$0xff] }
 0x549   :  { %v6447_v59 = vpop.eup %6446  ;;  %v508_v60 = vmul.f32 %v6667_v45, %v503_v53  ;;  %v461_v61 = vadd.f32 1e-05, %v457_v54  ;;  %v6199_v51 = vld [vmem:[%s8133_s1 + $0x218] sm:$0xff] }
 0x54a   :  { %v483_v1 = vmul.f32 %v6447_v59, %v460_v44  ;;  %vm489_vm15 = vweird.f32 %v6447_v59  ;;  %v602_v53 = vpack.c.b16 %v586_v49, %v586_v49  ;;  %v646_v54 = vsel %vm127_vm5, %v599_v50, 0  ;;  %v6191_v50 = vld [vmem:[%s8133_s1 + $0x1d8] sm:$0xff] }
 0x54b   :  { %v6685_v6 = vadd.f32 %v6408_v31, %v508_v60  ;;  %6448 = vrsqrt.f32 %v461_v61  ;;  %vm490_vm1 = vmor %vm488_vm0, %vm489_vm15  ;;  %vm498_vm3 = vweird.f32 %v461_v61  ;;  %v6147_v60 = vld [vmem:[%s8133_s1 + $0x78] sm:$0xff] }
 0x54c   :  { %v484_v7 = vmul.f32 %v6447_v59, %v483_v1  ;;  %v655_v56 = vsel %vm127_vm5, %v602_v53, 0  ;;  %v6161_v1 = vld [vmem:[%s8133_s1 + $0xe8] sm:$0xff] }
 0x54d   :  { %v6693_v11 = vpack.c.bf16 %v6685_v6, %v6683_v5 }
 0x54e   :  { %v485_v12 = vmul.f32 0.5, %v484_v7  ;;  %v6160_v7 = vld [vmem:[%s8133_s1 + $0xe0] sm:$0xff] }
 0x54f   :  { %5032 = vmatmul.msk.bf16.vlgmr.msra.gmra.mxu2 %vm120_vm6, %v6693_v11  ;;  %5034 = vmatmul.msk.bf16.vlgmr.msrb.gmra.mxu3 %vm120_vm6, %v6693_v11 }
 0x550   :  { %v486_v13 = vsub.f32 1.5, %v485_v12  ;;  %5036 = vmatmul.msk.bf16.vlgmr.msrb.gmra.mxu0 %vm120_vm6, %v6693_v11  ;;  %5038 = vmatmul.msk.bf16.vlgmr.msrb.gmra.mxu1 %vm120_vm6, %v6693_v11  ;;  %v6159_v12 = vld [vmem:[%s8133_s1 + $0xd8] sm:$0xff] }
 0x551   :  { %v6449_v14 = vpop.eup %6448 }
 0x552   :  { %v487_v15 = vmul.f32 %v6447_v59, %v486_v13  ;;  %v493_v16 = vmul.f32 %v6449_v14, %v461_v61  ;;  %vm499_vm2 = vweird.f32 %v6449_v14  ;;  %v6155_v61 = vld [vmem:[%s8133_s1 + $0xb8] sm:$0xff] }
 0x553   :  { %vm500_vm4 = vmor %vm498_vm3, %vm499_vm2  ;;  %v6167_v13 = vld [vmem:[%s8133_s1 + $0x118] sm:$0xff] }
 0x554   :  { %v494_v17 = vmul.f32 %v6449_v14, %v493_v16  ;;  %v491_v18 = vsel %vm490_vm1, %v6447_v59, %v487_v15  ;;  %v6171_v59 = vld [vmem:[%s8133_s1 + $0x138] sm:$0xff]  ;;  %v6152_v15 = vld [vmem:[%s8133_s1 + $0xa0] sm:$0xff]  ;;  %v6158_v16 = vld [vmem:[%s8133_s1 + $0xd0] sm:$0xff] }
 0x555   :  { %v504_v21 = vmul.f32 %v491_v18, %v6640_v63  ;;  %v522_v63 = vld [vmem:[%s8135_s2 + $0x20] sm:$0xff]  ;;  %v6143_v18 = vld [vmem:[%s8133_s1 + $0x58] sm:$0xff] }
 0x556   :  { %v495_v19 = vmul.f32 0.5, %v494_v17  ;;  %v579_v34 = vunpack.c.l.b16 %v522_v63  ;;  %v580_v35 = vunpack.c.h.b16 %v522_v63  ;;  %v6166_v17 = vld [vmem:[%s8133_s1 + $0x110] sm:$0xff]  ;;  %v6140_v63 = vld [vmem:[%s8133_s1 + $0x40] sm:$0xff] }
 0x557   :  { %v509_v24 = vmul.f32 %v6667_v45, %v504_v21  ;;  %v6165_v21 = vld [vmem:[%s8133_s1 + $0x108] sm:$0xff] }
 0x558   :  { %v496_v20 = vsub.f32 1.5, %v495_v19  ;;  %v595_v38 = vpack.c.b16 %v579_v34, %v579_v34  ;;  %v596_v39 = vpack.c.b16 %v580_v35, %v580_v35  ;;  %v6151_v19 = vld [vmem:[%s8133_s1 + $0x98] sm:$0xff] }
 0x559   :  { %v6707_v27 = vadd.f32 %v6408_v31, %v509_v24  ;;  %v6156_v24 = vld [vmem:[%s8133_s1 + $0xc0] sm:$0xff]  ;;  %v6195_v34 = vld [vmem:[%s8133_s1 + $0x1f8] sm:$0xff] }
 0x55a   :  { %v497_v22 = vmul.f32 %v6449_v14, %v496_v20  ;;  %v634_v42 = vsel %vm127_vm5, %v595_v38, 0  ;;  %v637_v43 = vsel %vm127_vm5, %v596_v39, 0  ;;  %v6157_v20 = vld [vmem:[%s8133_s1 + $0xc8] sm:$0xff]  ;;  %v6203_v35 = vld [vmem:[%s8133_s1 + $0x238] sm:$0xff] }
 0x55b   :  { %816 = vmatpush.bf16.msra.mxu2 %v634_v42  ;;  %835 = vmatpush.bf16.msrb.mxu3 %v637_v43  ;;  %v6179_v38 = vld [vmem:[%s8133_s1 + $0x178] sm:$0xff]  ;;  %v6186_v42 = vld [vmem:[%s8133_s1 + $0x1b0] sm:$0xff] }
 0x55c   :  { %v501_v23 = vsel %vm500_vm4, %v6449_v14, %v497_v22  ;;  %v6144_v14 = vld [vmem:[%s8133_s1 + $0x60] sm:$0xff]  ;;  %v6142_v22 = vld [vmem:[%s8133_s1 + $0x50] sm:$0xff]  ;;  %v6187_v39 = vld [vmem:[%s8133_s1 + $0x1b8] sm:$0xff] }
 0x55d   :  { %v505_v25 = vmul.f32 %v501_v23, %v6646_v4  ;;  %v523_v4 = vld [vmem:[%s8135_s2 + $0x28] sm:$0xff]  ;;  %v6150_v23 = vld [vmem:[%s8133_s1 + $0x90] sm:$0xff] }
 0x55e   :  { %v581_v36 = vunpack.c.l.b16 %v523_v4  ;;  %v582_v37 = vunpack.c.h.b16 %v523_v4  ;;  %v6148_v4 = vld [vmem:[%s8133_s1 + $0x80] sm:$0xff] }
 0x55f   :  { %v510_v26 = vmul.f32 %v6667_v45, %v505_v25  ;;  %v6164_v25 = vld [vmem:[%s8133_s1 + $0x100] sm:$0xff] }
 0x560   :  { %v597_v40 = vpack.c.b16 %v581_v36, %v581_v36  ;;  %v598_v41 = vpack.c.b16 %v582_v37, %v582_v37  ;;  %v6194_v36 = vld [vmem:[%s8133_s1 + $0x1f0] sm:$0xff] }
 0x561   :  { %v6709_v30 = vadd.f32 %v6408_v31, %v510_v26  ;;  %v601_v31 = vpack.c.b16 %v585_v48, %v585_v48  ;;  %v6141_v26 = vld [vmem:[%s8133_s1 + $0x48] sm:$0xff]  ;;  %v6202_v37 = vld [vmem:[%s8133_s1 + $0x230] sm:$0xff] }
 0x562   :  { %v640_v44 = vsel %vm127_vm5, %v597_v40, 0  ;;  %v643_v45 = vsel %vm127_vm5, %v598_v41, 0  ;;  %v6193_v40 = vld [vmem:[%s8133_s1 + $0x1e8] sm:$0xff]  ;;  %v6178_v41 = vld [vmem:[%s8133_s1 + $0x170] sm:$0xff] }
 0x563   :  { %v6713_v33 = vpack.c.bf16 %v6709_v30, %v6707_v27  ;;  %854 = vmatpush.bf16.msrb.mxu0 %v640_v44  ;;  %873 = vmatpush.bf16.msrb.mxu1 %v643_v45  ;;  %v652_v55 = vsel %vm127_vm5, %v601_v31, 0  ;;  %v6920_v43 = vld [vmem:[%s8136_s4] ss:$4 sm:$0xff] }
 0x564   :  { %v6935_v48 = vperm.slane %v6920_v43, 2  ;;  %v6938_v49 = vperm.slane %v6920_v43, 3 }
 0x565   :  { %5033 = vmatmul.msk.bf16.gmra.mxu2 %vm120_vm6, %v6713_v33  ;;  %5035 = vmatmul.msk.bf16.gmra.mxu3 %vm120_vm6, %v6713_v33 }
 0x566   :  { %5037 = vmatmul.msk.bf16.gmra.mxu0 %vm120_vm6, %v6713_v33  ;;  %5039 = vmatmul.msk.bf16.gmra.mxu1 %vm120_vm6, %v6713_v33 }
 0x575   :  { %5040 = vmatmul.msk.bf16.vlgmr.msrb.gmra.mxu2 %vm120_vm6, %v6693_v11  ;;  %5042 = vmatmul.msk.bf16.vlgmr.msra.gmra.mxu3 %vm120_vm6, %v6693_v11 }
 0x576   :  { %5044 = vmatmul.msk.bf16.vlgmr.msra.gmra.mxu0 %vm120_vm6, %v6693_v11  ;;  %5046 = vmatmul.msk.bf16.vlgmr.msra.gmra.mxu1 %vm120_vm6, %v6693_v11 }
 0x577   :  { %892 = vmatpush.bf16.msrb.mxu2 %v646_v54  ;;  %911 = vmatpush.bf16.msra.mxu3 %v649_v32  ;;  %v6176_v54 = vld [vmem:[%s8133_s1 + $0x160] sm:$0xff] }
 0x578   :  { %930 = vmatpush.bf16.msra.mxu0 %v652_v55  ;;  %949 = vmatpush.bf16.msra.mxu1 %v655_v56  ;;  %v6184_v32 = vld [vmem:[%s8133_s1 + $0x1a0] sm:$0xff] }
 0x585   :  { %5041 = vmatmul.msk.bf16.gmra.mxu2 %vm120_vm6, %v6713_v33  ;;  %5043 = vmatmul.msk.bf16.gmra.mxu3 %vm120_vm6, %v6713_v33 }
 0x586   :  { %5045 = vmatmul.msk.bf16.gmra.mxu0 %vm120_vm6, %v6713_v33  ;;  %5047 = vmatmul.msk.bf16.gmra.mxu1 %vm120_vm6, %v6713_v33 }
 0x595   :  { %5048 = vmatmul.msk.bf16.vlgmr.msra.gmra.mxu2 %vm120_vm6, %v6693_v11  ;;  %5050 = vmatmul.msk.bf16.vlgmr.msrb.gmra.mxu3 %vm120_vm6, %v6693_v11 }
 0x596   :  { %5052 = vmatmul.msk.bf16.vlgmr.msrb.gmra.mxu0 %vm120_vm6, %v6693_v11  ;;  %5054 = vmatmul.msk.bf16.vlgmr.msrb.gmra.mxu1 %vm120_vm6, %v6693_v11 }
 0x597   :  { %2120 = vmatpush.bf16.msrb.mxu0 %v6163_v57  ;;  %2139 = vmatpush.bf16.msrb.mxu1 %v6171_v59  ;;  %v6955_v57 = vperm.slane %v6920_v43, 0  ;;  %v6958_v59 = vperm.slane %v6920_v43, 1 }
 0x598   :  { %2082 = vmatpush.bf16.msra.mxu2 %v6147_v60  ;;  %2101 = vmatpush.bf16.msrb.mxu3 %v6155_v61 }
 0x59b   :  { %2121 = vmatpush.bf16.msrb.mxu0 %v6162_v62  ;;  %2140 = vmatpush.bf16.msrb.mxu1 %v6170_v0  ;;  %v6190_v62 = vld [vmem:[%s8133_s1 + $0x1d0] sm:$0xff] }
 0x59c   :  { %2083 = vmatpush.bf16.msra.mxu2 %v6146_v3  ;;  %2102 = vmatpush.bf16.msrb.mxu3 %v6154_v58  ;;  %v6198_v0 = vld [vmem:[%s8133_s1 + $0x210] sm:$0xff]  ;;  %v6175_v3 = vld [vmem:[%s8133_s1 + $0x158] sm:$0xff] }
 0x59d   :  { %v6183_v58 = vld [vmem:[%s8133_s1 + $0x198] sm:$0xff] }
 0x59f   :  { %2122 = vmatpush.bf16.msrb.mxu0 %v6161_v1  ;;  %2141 = vmatpush.bf16.msrb.mxu1 %v6169_v2 }
 0x5a0   :  { %2084 = vmatpush.bf16.msra.mxu2 %v6145_v9  ;;  %2103 = vmatpush.bf16.msrb.mxu3 %v6153_v10 }
 0x5a3   :  { %2123 = vmatpush.bf16.msrb.mxu0 %v6160_v7  ;;  %2142 = vmatpush.bf16.msrb.mxu1 %v6168_v8 }
 0x5a4   :  { %2085 = vmatpush.bf16.msra.mxu2 %v6144_v14  ;;  %2104 = vmatpush.bf16.msrb.mxu3 %v6152_v15  ;;  %v6189_v14 = vld [vmem:[%s8133_s1 + $0x1c8] sm:$0xff] }
 0x5a5   :  { %5049 = vmatmul.msk.bf16.gmra.mxu2 %vm120_vm6, %v6713_v33  ;;  %5051 = vmatmul.msk.bf16.gmra.mxu3 %vm120_vm6, %v6713_v33  ;;  %v6197_v15 = vld [vmem:[%s8133_s1 + $0x208] sm:$0xff] }
 0x5a6   :  { %5053 = vmatmul.msk.bf16.gmra.mxu0 %vm120_vm6, %v6713_v33  ;;  %5055 = vmatmul.msk.bf16.gmra.mxu1 %vm120_vm6, %v6713_v33 }
 0x5a7   :  { %2124 = vmatpush.bf16.msrb.mxu0 %v6159_v12  ;;  %2143 = vmatpush.bf16.msrb.mxu1 %v6167_v13 }
 0x5a8   :  { %2086 = vmatpush.bf16.msra.mxu2 %v6143_v18  ;;  %2105 = vmatpush.bf16.msrb.mxu3 %v6151_v19 }
 0x5ab   :  { %2125 = vmatpush.bf16.msrb.mxu0 %v6158_v16  ;;  %2144 = vmatpush.bf16.msrb.mxu1 %v6166_v17 }
 0x5ac   :  { %2087 = vmatpush.bf16.msra.mxu2 %v6142_v22  ;;  %2106 = vmatpush.bf16.msrb.mxu3 %v6150_v23  ;;  %v6174_v22 = vld [vmem:[%s8133_s1 + $0x150] sm:$0xff] }
 0x5ad   :  { %v6182_v23 = vld [vmem:[%s8133_s1 + $0x190] sm:$0xff] }
 0x5af   :  { %2126 = vmatpush.bf16.msrb.mxu0 %v6157_v20  ;;  %2145 = vmatpush.bf16.msrb.mxu1 %v6165_v21 }
 0x5b0   :  { %2088 = vmatpush.bf16.msra.mxu2 %v6141_v26 }
 0x5b3   :  { %2127 = vmatpush.bf16.msrb.mxu0 %v6156_v24  ;;  %2146 = vmatpush.bf16.msrb.mxu1 %v6164_v25 }
 0x5b4   :  { %2089 = vmatpush.bf16.msra.mxu2 %v6140_v63  ;;  %v6188_v63 = vld [vmem:[%s8133_s1 + $0x1c0] sm:$0xff] }
 0x5b5   :  { %5056 = vmatmul.msk.bf16.vlgmr.msrb.gmra.mxu2 %vm120_vm6, %v6693_v11  ;;  %5058 = vmatmul.msk.bf16.vlgmr.msra.gmra.mxu3 %vm120_vm6, %v6693_v11 }
 0x5b6   :  { %5060 = vmatmul.msk.bf16.vlgmr.msra.gmra.mxu0 %vm120_vm6, %v6693_v11  ;;  %5062 = vmatmul.msk.bf16.vlgmr.msra.gmra.mxu1 %vm120_vm6, %v6693_v11  ;;  %v6149_v11 = vld [vmem:[%s8133_s1 + $0x88] sm:$0xff] }
 0x5b7   :  { %2107 = vmatpush.bf16.msrb.mxu3 %v6149_v11  ;;  %2196 = vmatpush.bf16.msra.mxu0 %v6195_v34 }
 0x5b8   :  { %2215 = vmatpush.bf16.msra.mxu1 %v6203_v35  ;;  %2158 = vmatpush.bf16.msrb.mxu2 %v6179_v38  ;;  %v6227_v38 = vld [vmem:[%s8133_s1 + $0x2f8] sm:$0xff] }
 0x5bb   :  { %2108 = vmatpush.bf16.msrb.mxu3 %v6148_v4  ;;  %2197 = vmatpush.bf16.msra.mxu0 %v6194_v36  ;;  %v6196_v4 = vld [vmem:[%s8133_s1 + $0x200] sm:$0xff]  ;;  %v6173_v36 = vld [vmem:[%s8133_s1 + $0x148] sm:$0xff] }
 0x5bc   :  { %2216 = vmatpush.bf16.msra.mxu1 %v6202_v37  ;;  %2159 = vmatpush.bf16.msrb.mxu2 %v6178_v41  ;;  %v6181_v37 = vld [vmem:[%s8133_s1 + $0x188] sm:$0xff]  ;;  %v6172_v41 = vld [vmem:[%s8133_s1 + $0x140] sm:$0xff] }
 0x5bf   :  { %2177 = vmatpush.bf16.msra.mxu3 %v6187_v39  ;;  %2198 = vmatpush.bf16.msra.mxu0 %v6193_v40  ;;  %v6235_v39 = vld [vmem:[%s8133_s1 + $0x338] sm:$0xff] }
 0x5c0   :  { %2160 = vmatpush.bf16.msrb.mxu2 %v6177_v47 }
 0x5c3   :  { %2178 = vmatpush.bf16.msra.mxu3 %v6186_v42  ;;  %2199 = vmatpush.bf16.msra.mxu0 %v6192_v28  ;;  %v6180_v42 = vld [vmem:[%s8133_s1 + $0x180] sm:$0xff]  ;;  %v6211_v28 = vld [vmem:[%s8133_s1 + $0x278] sm:$0xff] }
 0x5c4   :  { %2161 = vmatpush.bf16.msrb.mxu2 %v6176_v54 }
 0x5c5   :  { %5057 = vmatmul.msk.bf16.gmra.mxu2 %vm120_vm6, %v6713_v33  ;;  %5059 = vmatmul.msk.bf16.gmra.mxu3 %vm120_vm6, %v6713_v33 }
 0x5c6   :  { %5061 = vmatmul.msk.bf16.gmra.mxu0 %vm120_vm6, %v6713_v33  ;;  %5063 = vmatmul.msk.bf16.gmra.mxu1 %vm120_vm6, %v6713_v33  ;;  %v6201_v33 = vld [vmem:[%s8133_s1 + $0x228] sm:$0xff] }
 0x5c7   :  { %2217 = vmatpush.bf16.msra.mxu1 %v6201_v33  ;;  %2179 = vmatpush.bf16.msra.mxu3 %v6185_v29 }
 0x5c8   :  { %2200 = vmatpush.bf16.msra.mxu0 %v6191_v50  ;;  %2162 = vmatpush.bf16.msrb.mxu2 %v6175_v3  ;;  %v6225_v50 = vld [vmem:[%s8133_s1 + $0x2e8] sm:$0xff] }
 0x5cb   :  { %2218 = vmatpush.bf16.msra.mxu1 %v6200_v46  ;;  %2180 = vmatpush.bf16.msra.mxu3 %v6184_v32  ;;  %v6219_v46 = vld [vmem:[%s8133_s1 + $0x2b8] sm:$0xff] }
 0x5cc   :  { %2201 = vmatpush.bf16.msra.mxu0 %v6190_v62  ;;  %2163 = vmatpush.bf16.msrb.mxu2 %v6174_v22  ;;  %v6224_v62 = vld [vmem:[%s8133_s1 + $0x2e0] sm:$0xff] }
 0x5cd   :  { %v704_v44 = vpop.f32.mrf.mxu0  ;;  %v723_v45 = vpop.f32.mrf.mxu1 }
 0x5ce   :  { %v705_v55 = vadd.f32 %v704_v44, %v6935_v48  ;;  %v724_v56 = vadd.f32 %v723_v45, %v6938_v49  ;;  %v6226_v44 = vld [vmem:[%s8133_s1 + $0x2f0] sm:$0xff] }
 0x5cf   :  { %2219 = vmatpush.bf16.msra.mxu1 %v6199_v51  ;;  %2181 = vmatpush.bf16.msra.mxu3 %v6183_v58  ;;  %v6234_v45 = vld [vmem:[%s8133_s1 + $0x330] sm:$0xff]  ;;  %v6233_v51 = vld [vmem:[%s8133_s1 + $0x328] sm:$0xff] }
 0x5d0   :  { %v963_v7 = vmax.f32 %v705_v55, 0.0  ;;  %v964_v8 = vmax.f32 %v724_v56, 0.0  ;;  %2202 = vmatpush.bf16.msra.mxu0 %v6189_v14  ;;  %2164 = vmatpush.bf16.msrb.mxu2 %v6173_v36  ;;  %v6210_v55 = vld [vmem:[%s8133_s1 + $0x270] sm:$0xff] }
 0x5d1   :  { %v6218_v56 = vld [vmem:[%s8133_s1 + $0x2b0] sm:$0xff] }
 0x5d2   :  { %v666_v31 = vpop.f32.mrf.mxu2  ;;  %v685_v53 = vpop.f32.mrf.mxu3 }
 0x5d3   :  { %2220 = vmatpush.bf16.msra.mxu1 %v6198_v0  ;;  %v667_v12 = vadd.f32 %v666_v31, %v6955_v57  ;;  %v686_v13 = vadd.f32 %v685_v53, %v6958_v59  ;;  %2182 = vmatpush.bf16.msra.mxu3 %v6182_v23  ;;  %v6232_v0 = vld [vmem:[%s8133_s1 + $0x320] sm:$0xff] }
 0x5d4   :  { %2203 = vmatpush.bf16.msra.mxu0 %v6188_v63  ;;  %2165 = vmatpush.bf16.msrb.mxu2 %v6172_v41  ;;  %v6216_v23 = vld [vmem:[%s8133_s1 + $0x2a0] sm:$0xff]  ;;  %v7077_v63 = vperm.slane %v6920_v43, 6  ;;  %v7097_v41 = vperm.slane %v6920_v43, 4 }
 0x5d5   :  { %v706_v60 = vpop.f32.mrf.mxu0  ;;  %v725_v61 = vpop.f32.mrf.mxu1  ;;  %v961_v24 = vmax.f32 %v667_v12, 0.0  ;;  %v962_v25 = vmax.f32 %v686_v13, 0.0 }
 0x5d6   :  { %v707_v1 = vadd.f32 %v706_v60, %v6935_v48  ;;  %v726_v2 = vadd.f32 %v725_v61, %v6938_v49 }
 0x5d7   :  { %2221 = vmatpush.bf16.msra.mxu1 %v6197_v15  ;;  %2183 = vmatpush.bf16.msra.mxu3 %v6181_v37 }
 0x5d8   :  { %v979_v9 = vmax.f32 %v707_v1, 0.0  ;;  %v980_v10 = vmax.f32 %v726_v2, 0.0 }
 0x5da   :  { %v1027_v16 = vpack.c.bf16 %v979_v9, %v963_v7  ;;  %v1028_v17 = vpack.c.bf16 %v980_v10, %v964_v8  ;;  %v668_v18 = vpop.f32.mrf.mxu2  ;;  %v687_v19 = vpop.f32.mrf.mxu3  ;;  %v6217_v8 = vld [vmem:[%s8133_s1 + $0x2a8] sm:$0xff] }
 0x5db   :  { %v669_v20 = vadd.f32 %v668_v18, %v6955_v57  ;;  %v688_v21 = vadd.f32 %v687_v19, %v6958_v59  ;;  %2222 = vmatpush.bf16.msra.mxu1 %v6196_v4  ;;  %2184 = vmatpush.bf16.msra.mxu3 %v6180_v42  ;;  %v7080_v4 = vperm.slane %v6920_v43, 7  ;;  %v7100_v42 = vperm.slane %v6920_v43, 5  ;;  %v6220_v43 = vld [vmem:[%s8133_s1 + $0x2c0] sm:$0xff] }
 0x5dc   :  { %2128 = vmatmul.bf16.vlgmr.msrb.gmra.mxu0 %v1027_v16  ;;  %2147 = vmatmul.bf16.vlgmr.msrb.gmra.mxu1 %v1028_v17  ;;  %v6223_v16 = vld [vmem:[%s8133_s1 + $0x2d8] sm:$0xff] }
 0x5dd   :  { %v977_v26 = vmax.f32 %v669_v20, 0.0  ;;  %v978_v11 = vmax.f32 %v688_v21, 0.0  ;;  %2272 = vmatpush.bf16.msrb.mxu0 %v6227_v38  ;;  %v6231_v17 = vld [vmem:[%s8133_s1 + $0x318] sm:$0xff]  ;;  %v6221_v38 = vld [vmem:[%s8133_s1 + $0x2c8] sm:$0xff] }
 0x5df   :  { %v1025_v34 = vpack.c.bf16 %v977_v26, %v961_v24  ;;  %v1026_v35 = vpack.c.bf16 %v978_v11, %v962_v25  ;;  %2291 = vmatpush.bf16.msrb.mxu1 %v6235_v39  ;;  %v6222_v26 = vld [vmem:[%s8133_s1 + $0x2d0] sm:$0xff]  ;;  %v6229_v39 = vld [vmem:[%s8133_s1 + $0x308] sm:$0xff] }
 0x5e0   :  { %v6230_v11 = vld [vmem:[%s8133_s1 + $0x310] sm:$0xff] }
 0x5e1   :  { %2090 = vmatmul.bf16.vlgmr.msra.gmra.mxu2 %v1025_v34  ;;  %2109 = vmatmul.bf16.vlgmr.msrb.gmra.mxu3 %v1026_v35  ;;  %v6207_v34 = vld [vmem:[%s8133_s1 + $0x258] sm:$0xff] }
 0x5e2   :  { %2273 = vmatpush.bf16.msrb.mxu0 %v6226_v44  ;;  %2234 = vmatpush.bf16.msra.mxu2 %v6211_v28  ;;  %v6215_v35 = vld [vmem:[%s8133_s1 + $0x298] sm:$0xff]  ;;  %v6206_v28 = vld [vmem:[%s8133_s1 + $0x250] sm:$0xff] }
 0x5e3   :  { %v709_v40 = vpop.f32.mrf.mxu0  ;;  %v728_v33 = vpop.f32.mrf.mxu1  ;;  %2292 = vmatpush.bf16.msrb.mxu1 %v6234_v45  ;;  %2253 = vmatpush.bf16.msrb.mxu3 %v6219_v46  ;;  %v6214_v46 = vld [vmem:[%s8133_s1 + $0x290] sm:$0xff] }
 0x5e4   :  { %v710_v31 = vadd.f32 %v709_v40, %v6935_v48  ;;  %v729_v53 = vadd.f32 %v728_v33, %v6938_v49 }
 0x5e6   :  { %2274 = vmatpush.bf16.msrb.mxu0 %v6225_v50  ;;  %2235 = vmatpush.bf16.msra.mxu2 %v6210_v55  ;;  %v995_v1 = vmax.f32 %v710_v31, 0.0  ;;  %v996_v2 = vmax.f32 %v729_v53, 0.0  ;;  %v6228_v50 = vld [vmem:[%s8133_s1 + $0x300] sm:$0xff] }
 0x5e7   :  { %2293 = vmatpush.bf16.msrb.mxu1 %v6233_v51  ;;  %2254 = vmatpush.bf16.msrb.mxu3 %v6218_v56  ;;  %v6205_v56 = vld [vmem:[%s8133_s1 + $0x248] sm:$0xff] }
 0x5e8   :  { %v671_v47 = vpop.f32.mrf.mxu2  ;;  %v690_v29 = vpop.f32.mrf.mxu3 }
 0x5e9   :  { %v672_v7 = vadd.f32 %v671_v47, %v6955_v57 }
 0x5ea   :  { %2275 = vmatpush.bf16.msrb.mxu0 %v6224_v62 }
 0x5eb   :  { %v711_v54 = vpop.f32.mrf.mxu0  ;;  %v730_v32 = vpop.f32.mrf.mxu1  ;;  %2294 = vmatpush.bf16.msrb.mxu1 %v6232_v0  ;;  %2255 = vmatpush.bf16.msrb.mxu3 %v6217_v8  ;;  %v993_v18 = vmax.f32 %v672_v7, 0.0  ;;  %v6267_v7 = vld [vmem:[%s8133_s1 + $0x438] sm:$0xff] }
 0x5ec   :  { %v712_v60 = vadd.f32 %v711_v54, %v6935_v48  ;;  %v731_v61 = vadd.f32 %v730_v32, %v6938_v49  ;;  %v691_v48 = vadd.f32 %v690_v29, %v6958_v59  ;;  %v6209_v49 = vld [vmem:[%s8133_s1 + $0x268] sm:$0xff] }
 0x5ed   :  { %2236 = vmatpush.bf16.msra.mxu2 %v6209_v49 }
 0x5ee   :  { %v1011_v3 = vmax.f32 %v712_v60, 0.0  ;;  %v1012_v58 = vmax.f32 %v731_v61, 0.0  ;;  %v994_v19 = vmax.f32 %v691_v48, 0.0  ;;  %2276 = vmatpush.bf16.msrb.mxu0 %v6223_v16  ;;  %v6213_v60 = vld [vmem:[%s8133_s1 + $0x288] sm:$0xff] }
 0x5ef   :  { %2295 = vmatpush.bf16.msrb.mxu1 %v6231_v17  ;;  %2256 = vmatpush.bf16.msrb.mxu3 %v6216_v23  ;;  %v6258_v17 = vld [vmem:[%s8133_s1 + $0x3f0] sm:$0xff] }
 0x5f0   :  { %v673_v9 = vpop.f32.mrf.mxu2  ;;  %v692_v10 = vpop.f32.mrf.mxu3  ;;  %v1043_v12 = vpack.c.bf16 %v1011_v3, %v995_v1  ;;  %v1044_v13 = vpack.c.bf16 %v1012_v58, %v996_v2  ;;  %v6259_v58 = vld [vmem:[%s8133_s1 + $0x3f8] sm:$0xff] }
 0x5f1   :  { %v674_v14 = vadd.f32 %v673_v9, %v6955_v57  ;;  %v693_v15 = vadd.f32 %v692_v10, %v6958_v59  ;;  %v6208_v59 = vld [vmem:[%s8133_s1 + $0x260] sm:$0xff] }
 0x5f2   :  { %2133 = vmatmul.bf16.gmra.mxu0 %v1043_v12  ;;  %2152 = vmatmul.bf16.gmra.mxu1 %v1044_v13  ;;  %v6204_v13 = vld [vmem:[%s8133_s1 + $0x240] sm:$0xff] }
 0x5f3   :  { %v1009_v20 = vmax.f32 %v674_v14, 0.0  ;;  %v1010_v21 = vmax.f32 %v693_v15, 0.0  ;;  %v780_v22 = vpop.f32.mrf.mxu0  ;;  %v799_v57 = vpop.f32.mrf.mxu1  ;;  %2237 = vmatpush.bf16.msra.mxu2 %v6208_v59  ;;  %2277 = vmatpush.bf16.msrb.mxu0 %v6222_v26  ;;  %v6212_v14 = vld [vmem:[%s8133_s1 + $0x280] sm:$0xff]  ;;  %v6265_v59 = vld [vmem:[%s8133_s1 + $0x428] sm:$0xff] }
 0x5f4   :  { %2296 = vmatpush.bf16.msrb.mxu1 %v6230_v11  ;;  %2257 = vmatpush.bf16.msrb.mxu3 %v6215_v35  ;;  %v781_v40 = vadd.f32 %v780_v22, %v7077_v63  ;;  %v800_v33 = vadd.f32 %v799_v57, %v7080_v4  ;;  %v6257_v57 = vld [vmem:[%s8133_s1 + $0x3e8] sm:$0xff]  ;;  %v6242_v11 = vld [vmem:[%s8133_s1 + $0x370] sm:$0xff] }
 0x5f5   :  { %v1041_v24 = vpack.c.bf16 %v1009_v20, %v993_v18  ;;  %v1042_v25 = vpack.c.bf16 %v1010_v21, %v994_v19  ;;  %v6266_v18 = vld [vmem:[%s8133_s1 + $0x430] sm:$0xff]  ;;  %v6243_v19 = vld [vmem:[%s8133_s1 + $0x378] sm:$0xff] }
 0x5f6   :  { %v967_v51 = vmax.f32 %v781_v40, 0.0  ;;  %v968_v31 = vmax.f32 %v800_v33, 0.0  ;;  %v6251_v20 = vld [vmem:[%s8133_s1 + $0x3b8] sm:$0xff] }
 0x5f7   :  { %2095 = vmatmul.bf16.gmra.mxu2 %v1041_v24  ;;  %2114 = vmatmul.bf16.gmra.mxu3 %v1042_v25 }
 0x5f8   :  { %v742_v36 = vpop.f32.mrf.mxu2  ;;  %v761_v37 = vpop.f32.mrf.mxu3  ;;  %2238 = vmatpush.bf16.msra.mxu2 %v6207_v34  ;;  %2278 = vmatpush.bf16.msrb.mxu0 %v6221_v38  ;;  %v6250_v34 = vld [vmem:[%s8133_s1 + $0x3b0] sm:$0xff]  ;;  %v6264_v38 = vld [vmem:[%s8133_s1 + $0x420] sm:$0xff] }
 0x5f9   :  { %2297 = vmatpush.bf16.msrb.mxu1 %v6229_v39  ;;  %2258 = vmatpush.bf16.msrb.mxu3 %v6214_v46  ;;  %v743_v32 = vadd.f32 %v742_v36, %v7097_v41  ;;  %v762_v55 = vadd.f32 %v761_v37, %v7100_v42  ;;  %v6256_v37 = vld [vmem:[%s8133_s1 + $0x3e0] sm:$0xff] }
 0x5fb   :  { %v782_v44 = vpop.f32.mrf.mxu0  ;;  %v801_v45 = vpop.f32.mrf.mxu1  ;;  %v965_v48 = vmax.f32 %v743_v32, 0.0  ;;  %v966_v49 = vmax.f32 %v762_v55, 0.0 }
 0x5fc   :  { %v783_v47 = vadd.f32 %v782_v44, %v7077_v63  ;;  %v802_v29 = vadd.f32 %v801_v45, %v7080_v4  ;;  %2239 = vmatpush.bf16.msra.mxu2 %v6206_v28  ;;  %2279 = vmatpush.bf16.msrb.mxu0 %v6220_v43  ;;  %v6241_v45 = vld [vmem:[%s8133_s1 + $0x368] sm:$0xff] }
 0x5fd   :  { %2298 = vmatpush.bf16.msrb.mxu1 %v6228_v50  ;;  %2259 = vmatpush.bf16.msrb.mxu3 %v6213_v60  ;;  %v6249_v28 = vld [vmem:[%s8133_s1 + $0x3a8] sm:$0xff] }
 0x5fe   :  { %v983_v53 = vmax.f32 %v783_v47, 0.0  ;;  %v984_v54 = vmax.f32 %v802_v29, 0.0 }
 0x600   :  { %v1031_v61 = vpack.c.bf16 %v983_v53, %v967_v51  ;;  %v1032_v62 = vpack.c.bf16 %v984_v54, %v968_v31  ;;  %v744_v0 = vpop.f32.mrf.mxu2  ;;  %v763_v1 = vpop.f32.mrf.mxu3  ;;  %2240 = vmatpush.bf16.msra.mxu2 %v6205_v56  ;;  %v6255_v31 = vld [vmem:[%s8133_s1 + $0x3d8] sm:$0xff] }
 0x601   :  { %v745_v2 = vadd.f32 %v744_v0, %v7097_v41  ;;  %v764_v3 = vadd.f32 %v763_v1, %v7100_v42  ;;  %2260 = vmatpush.bf16.msrb.mxu3 %v6212_v14  ;;  %v6263_v53 = vld [vmem:[%s8133_s1 + $0x418] sm:$0xff] }
 0x602   :  { %2204 = vmatmul.bf16.vlgmr.msra.gmra.mxu0 %v1031_v61  ;;  %2223 = vmatmul.bf16.vlgmr.msra.gmra.mxu1 %v1032_v62  ;;  %v7191_v54 = vld [vmem:[%s8136_s4 + $0x20] ss:$4 sm:$0xff] }
 0x603   :  { %v981_v8 = vmax.f32 %v745_v2, 0.0  ;;  %v982_v9 = vmax.f32 %v764_v3, 0.0  ;;  %v785_v10 = vpop.f32.mrf.mxu0  ;;  %v804_v12 = vpop.f32.mrf.mxu1  ;;  %2348 = vmatpush.bf16.msra.mxu0 %v6259_v58  ;;  %2367 = vmatpush.bf16.msra.mxu1 %v6267_v7  ;;  %v6240_v61 = vld [vmem:[%s8133_s1 + $0x360] sm:$0xff]  ;;  %v6254_v2 = vld [vmem:[%s8133_s1 + $0x3d0] sm:$0xff]  ;;  %v7206_v58 = vperm.slane %v7191_v54, 2  ;;  %v7209_v7 = vperm.slane %v7191_v54, 3 }
 0x604   :  { %2241 = vmatpush.bf16.msra.mxu2 %v6204_v13  ;;  %v786_v23 = vadd.f32 %v785_v10, %v7077_v63  ;;  %v805_v24 = vadd.f32 %v804_v12, %v7080_v4  ;;  %v6248_v62 = vld [vmem:[%s8133_s1 + $0x3a0] sm:$0xff]  ;;  %v6262_v3 = vld [vmem:[%s8133_s1 + $0x410] sm:$0xff]  ;;  %v6253_v10 = vld [vmem:[%s8133_s1 + $0x3c8] sm:$0xff] }
 0x605   :  { %v1029_v15 = vpack.c.bf16 %v981_v8, %v965_v48  ;;  %v1030_v16 = vpack.c.bf16 %v982_v9, %v966_v49  ;;  %v6239_v48 = vld [vmem:[%s8133_s1 + $0x358] sm:$0xff]  ;;  %v6261_v12 = vld [vmem:[%s8133_s1 + $0x408] sm:$0xff] }
 0x606   :  { %v999_v39 = vmax.f32 %v786_v23, 0.0  ;;  %v1000_v40 = vmax.f32 %v805_v24, 0.0  ;;  %v6247_v49 = vld [vmem:[%s8133_s1 + $0x398] sm:$0xff] }
 0x607   :  { %2166 = vmatmul.bf16.vlgmr.msrb.gmra.mxu2 %v1029_v15  ;;  %2185 = vmatmul.bf16.vlgmr.msra.gmra.mxu3 %v1030_v16  ;;  %v7226_v15 = vperm.slane %v7191_v54, 0  ;;  %v7229_v16 = vperm.slane %v7191_v54, 1 }
 0x608   :  { %v747_v21 = vpop.f32.mrf.mxu2  ;;  %v766_v22 = vpop.f32.mrf.mxu3  ;;  %2349 = vmatpush.bf16.msra.mxu0 %v6258_v17  ;;  %2368 = vmatpush.bf16.msra.mxu1 %v6266_v18 }
 0x609   :  { %2310 = vmatpush.bf16.msrb.mxu2 %v6243_v19  ;;  %2329 = vmatpush.bf16.msra.mxu3 %v6251_v20  ;;  %v6238_v19 = vld [vmem:[%s8133_s1 + $0x350] sm:$0xff] }
 0x60a   :  { %v6246_v20 = vld [vmem:[%s8133_s1 + $0x390] sm:$0xff] }
 0x60b   :  { %v787_v25 = vpop.f32.mrf.mxu0  ;;  %v806_v26 = vpop.f32.mrf.mxu1 }
 0x60c   :  { %v788_v35 = vadd.f32 %v787_v25, %v7077_v63  ;;  %v807_v36 = vadd.f32 %v806_v26, %v7080_v4  ;;  %2350 = vmatpush.bf16.msra.mxu0 %v6257_v57  ;;  %2369 = vmatpush.bf16.msra.mxu1 %v6265_v59  ;;  %v748_v63 = vadd.f32 %v747_v21, %v7097_v41  ;;  %v6252_v57 = vld [vmem:[%s8133_s1 + $0x3c0] sm:$0xff] }
 0x60d   :  { %2311 = vmatpush.bf16.msrb.mxu2 %v6242_v11  ;;  %2330 = vmatpush.bf16.msra.mxu3 %v6250_v34  ;;  %v767_v4 = vadd.f32 %v766_v22, %v7100_v42  ;;  %v6260_v59 = vld [vmem:[%s8133_s1 + $0x400] sm:$0xff] }
 0x60e   :  { %v1015_v33 = vmax.f32 %v788_v35, 0.0  ;;  %v1016_v44 = vmax.f32 %v807_v36, 0.0  ;;  %v6237_v35 = vld [vmem:[%s8133_s1 + $0x348] sm:$0xff] }
 0x60f   :  { %v998_v32 = vmax.f32 %v767_v4, 0.0  ;;  %v6245_v36 = vld [vmem:[%s8133_s1 + $0x388] sm:$0xff] }
 0x610   :  { %v749_v46 = vpop.f32.mrf.mxu2  ;;  %v768_v47 = vpop.f32.mrf.mxu3  ;;  %v1047_v29 = vpack.c.bf16 %v1015_v33, %v999_v39  ;;  %v1048_v43 = vpack.c.bf16 %v1016_v44, %v1000_v40  ;;  %2351 = vmatpush.bf16.msra.mxu0 %v6256_v37  ;;  %2370 = vmatpush.bf16.msra.mxu1 %v6264_v38 }
 0x611   :  { %v750_v50 = vadd.f32 %v749_v46, %v7097_v41  ;;  %v769_v51 = vadd.f32 %v768_v47, %v7100_v42  ;;  %2312 = vmatpush.bf16.msrb.mxu2 %v6241_v45  ;;  %2331 = vmatpush.bf16.msra.mxu3 %v6249_v28  ;;  %v997_v41 = vmax.f32 %v748_v63, 0.0 }
 0x612   :  { %2209 = vmatmul.bf16.gmra.mxu0 %v1047_v29  ;;  %2228 = vmatmul.bf16.gmra.mxu1 %v1048_v43  ;;  %v6236_v29 = vld [vmem:[%s8133_s1 + $0x340] sm:$0xff] }
 0x613   :  { %v1013_v42 = vmax.f32 %v750_v50, 0.0  ;;  %v1014_v55 = vmax.f32 %v769_v51, 0.0  ;;  %v856_v56 = vpop.f32.mrf.mxu0  ;;  %v875_v60 = vpop.f32.mrf.mxu1  ;;  %v6244_v43 = vld [vmem:[%s8133_s1 + $0x380] sm:$0xff] }
 0x614   :  { %2352 = vmatpush.bf16.msra.mxu0 %v6255_v31  ;;  %2371 = vmatpush.bf16.msra.mxu1 %v6263_v53  ;;  %v857_v13 = vadd.f32 %v856_v56, %v7206_v58  ;;  %v876_v14 = vadd.f32 %v875_v60, %v7209_v7 }
 0x615   :  { %v1045_v0 = vpack.c.bf16 %v1013_v42, %v997_v41  ;;  %v1046_v1 = vpack.c.bf16 %v1014_v55, %v998_v32  ;;  %2313 = vmatpush.bf16.msrb.mxu2 %v6240_v61  ;;  %2332 = vmatpush.bf16.msra.mxu3 %v6248_v62 }
 0x616   :  { %v971_v23 = vmax.f32 %v857_v13, 0.0  ;;  %v972_v24 = vmax.f32 %v876_v14, 0.0 }
 0x617   :  { %2171 = vmatmul.bf16.gmra.mxu2 %v1045_v0  ;;  %2190 = vmatmul.bf16.gmra.mxu3 %v1046_v1 }
 0x618   :  { %v818_v8 = vpop.f32.mrf.mxu2  ;;  %v837_v9 = vpop.f32.mrf.mxu3  ;;  %2353 = vmatpush.bf16.msra.mxu0 %v6254_v2  ;;  %2372 = vmatpush.bf16.msra.mxu1 %v6262_v3 }
 0x619   :  { %2314 = vmatpush.bf16.msrb.mxu2 %v6239_v48  ;;  %2333 = vmatpush.bf16.msra.mxu3 %v6247_v49  ;;  %v819_v11 = vadd.f32 %v818_v8, %v7226_v15  ;;  %v838_v34 = vadd.f32 %v837_v9, %v7229_v16 }
 0x61b   :  { %v858_v17 = vpop.f32.mrf.mxu0  ;;  %v877_v18 = vpop.f32.mrf.mxu1  ;;  %v969_v63 = vmax.f32 %v819_v11, 0.0  ;;  %v970_v4 = vmax.f32 %v838_v34, 0.0 }
 0x61c   :  { %v859_v21 = vadd.f32 %v858_v17, %v7206_v58  ;;  %v878_v22 = vadd.f32 %v877_v18, %v7209_v7  ;;  %2354 = vmatpush.bf16.msra.mxu0 %v6253_v10  ;;  %2373 = vmatpush.bf16.msra.mxu1 %v6261_v12 }
 0x61d   :  { %2315 = vmatpush.bf16.msrb.mxu2 %v6238_v19  ;;  %2334 = vmatpush.bf16.msra.mxu3 %v6246_v20 }
 0x61e   :  { %v987_v25 = vmax.f32 %v859_v21, 0.0  ;;  %v988_v26 = vmax.f32 %v878_v22, 0.0  ;;  %v545_v21 = vperm.slane %v7191_v54, 6  ;;  %v546_v22 = vperm.slane %v7191_v54, 7 }
 0x620   :  { %v1035_v37 = vpack.c.bf16 %v987_v25, %v971_v23  ;;  %v1036_v38 = vpack.c.bf16 %v988_v26, %v972_v24  ;;  %v820_v39 = vpop.f32.mrf.mxu2  ;;  %v839_v40 = vpop.f32.mrf.mxu3  ;;  %2355 = vmatpush.bf16.msra.mxu0 %v6252_v57  ;;  %2374 = vmatpush.bf16.msra.mxu1 %v6260_v59  ;;  %v543_v23 = vperm.slane %v7191_v54, 4  ;;  %v544_v24 = vperm.slane %v7191_v54, 5 }
 0x621   :  { %v821_v33 = vadd.f32 %v820_v39, %v7226_v15  ;;  %v840_v44 = vadd.f32 %v839_v40, %v7229_v16  ;;  %2316 = vmatpush.bf16.msrb.mxu2 %v6237_v35  ;;  %2335 = vmatpush.bf16.msra.mxu3 %v6245_v36 }
 0x622   :  { %2280 = vmatmul.bf16.vlgmr.msrb.gmra.mxu0 %v1035_v37  ;;  %2299 = vmatmul.bf16.vlgmr.msrb.gmra.mxu1 %v1036_v38 }
 0x623   :  { %v985_v45 = vmax.f32 %v821_v33, 0.0  ;;  %v986_v28 = vmax.f32 %v840_v44, 0.0  ;;  %v861_v46 = vpop.f32.mrf.mxu0  ;;  %v880_v47 = vpop.f32.mrf.mxu1 }
 0x624   :  { %v862_v41 = vadd.f32 %v861_v46, %v7206_v58  ;;  %v881_v32 = vadd.f32 %v880_v47, %v7209_v7 }
 0x625   :  { %v1033_v50 = vpack.c.bf16 %v985_v45, %v969_v63  ;;  %v1034_v51 = vpack.c.bf16 %v986_v28, %v970_v4  ;;  %2317 = vmatpush.bf16.msrb.mxu2 %v6236_v29  ;;  %2336 = vmatpush.bf16.msra.mxu3 %v6244_v43 }
 0x626   :  { %v1003_v61 = vmax.f32 %v862_v41, 0.0  ;;  %v1004_v62 = vmax.f32 %v881_v32, 0.0 }
 0x627   :  { %2242 = vmatmul.bf16.vlgmr.msra.gmra.mxu2 %v1033_v50  ;;  %2261 = vmatmul.bf16.vlgmr.msrb.gmra.mxu3 %v1034_v51 }
 0x628   :  { %v823_v31 = vpop.f32.mrf.mxu2  ;;  %v842_v53 = vpop.f32.mrf.mxu3 }
 0x629   :  { %v824_v2 = vadd.f32 %v823_v31, %v7226_v15  ;;  %v843_v3 = vadd.f32 %v842_v53, %v7229_v16 }
 0x62b   :  { %v863_v42 = vpop.f32.mrf.mxu0  ;;  %v882_v55 = vpop.f32.mrf.mxu1 }
 0x62c   :  { %v864_v56 = vadd.f32 %v863_v42, %v7206_v58  ;;  %v883_v60 = vadd.f32 %v882_v55, %v7209_v7  ;;  %v1001_v58 = vmax.f32 %v824_v2, 0.0  ;;  %v1002_v7 = vmax.f32 %v843_v3, 0.0 }
 0x62e   :  { %v1019_v0 = vmax.f32 %v864_v56, 0.0  ;;  %v1020_v1 = vmax.f32 %v883_v60, 0.0 }
 0x630   :  { %v825_v48 = vpop.f32.mrf.mxu2  ;;  %v844_v49 = vpop.f32.mrf.mxu3  ;;  %v1051_v8 = vpack.c.bf16 %v1019_v0, %v1003_v61  ;;  %v1052_v9 = vpack.c.bf16 %v1020_v1, %v1004_v62 }
 0x631   :  { %v826_v10 = vadd.f32 %v825_v48, %v7226_v15  ;;  %v845_v12 = vadd.f32 %v844_v49, %v7229_v16 }
 0x632   :  { %2285 = vmatmul.bf16.gmra.mxu0 %v1051_v8  ;;  %2304 = vmatmul.bf16.gmra.mxu1 %v1052_v9 }
 0x633   :  { %v1017_v13 = vmax.f32 %v826_v10, 0.0  ;;  %v1018_v14 = vmax.f32 %v845_v12, 0.0  ;;  %v932_v17 = vpop.f32.mrf.mxu0  ;;  %v951_v18 = vpop.f32.mrf.mxu1 }
 0x634   :  { %v933_v59 = vadd.f32 %v932_v17, %v545_v21  ;;  %v952_v16 = vadd.f32 %v951_v18, %v546_v22 }
 0x635   :  { %v1049_v19 = vpack.c.bf16 %v1017_v13, %v1001_v58  ;;  %v1050_v20 = vpack.c.bf16 %v1018_v14, %v1002_v7 }
 0x636   :  { %v975_v35 = vmax.f32 %v933_v59, 0.0  ;;  %v976_v36 = vmax.f32 %v952_v16, 0.0 }
 0x637   :  { %2247 = vmatmul.bf16.gmra.mxu2 %v1049_v19  ;;  %2266 = vmatmul.bf16.gmra.mxu3 %v1050_v20 }
 0x638   :  { %v894_v57 = vpop.f32.mrf.mxu2  ;;  %v913_v15 = vpop.f32.mrf.mxu3 }
 0x639   :  { %v895_v39 = vadd.f32 %v894_v57, %v543_v23  ;;  %v914_v40 = vadd.f32 %v913_v15, %v544_v24 }
 0x63b   :  { %v934_v25 = vpop.f32.mrf.mxu0  ;;  %v953_v26 = vpop.f32.mrf.mxu1  ;;  %v973_v46 = vmax.f32 %v895_v39, 0.0  ;;  %v974_v54 = vmax.f32 %v914_v40, 0.0 }
 0x63c   :  { %v935_v11 = vadd.f32 %v934_v25, %v545_v21  ;;  %v954_v34 = vadd.f32 %v953_v26, %v546_v22 }
 0x63e   :  { %v991_v37 = vmax.f32 %v935_v11, 0.0  ;;  %v992_v38 = vmax.f32 %v954_v34, 0.0 }
 0x640   :  { %v1039_v33 = vpack.c.bf16 %v991_v37, %v975_v35  ;;  %v1040_v44 = vpack.c.bf16 %v992_v38, %v976_v36  ;;  %v896_v63 = vpop.f32.mrf.mxu2  ;;  %v915_v4 = vpop.f32.mrf.mxu3 }
 0x641   :  { %v897_v45 = vadd.f32 %v896_v63, %v543_v23  ;;  %v916_v28 = vadd.f32 %v915_v4, %v544_v24 }
 0x642   :  { %2356 = vmatmul.bf16.vlgmr.msra.gmra.mxu0 %v1039_v33  ;;  %2375 = vmatmul.bf16.vlgmr.msra.gmra.mxu1 %v1040_v44 }
 0x643   :  { %v989_v47 = vmax.f32 %v897_v45, 0.0  ;;  %v990_v29 = vmax.f32 %v916_v28, 0.0  ;;  %v937_v43 = vpop.f32.mrf.mxu0  ;;  %v956_v50 = vpop.f32.mrf.mxu1 }
 0x644   :  { %v938_v32 = vadd.f32 %v937_v43, %v545_v21  ;;  %v957_v42 = vadd.f32 %v956_v50, %v546_v22 }
 0x645   :  { %v1037_v51 = vpack.c.bf16 %v989_v47, %v973_v46  ;;  %v1038_v31 = vpack.c.bf16 %v990_v29, %v974_v54 }
 0x646   :  { %v1007_v62 = vmax.f32 %v938_v32, 0.0  ;;  %v1008_v0 = vmax.f32 %v957_v42, 0.0 }
 0x647   :  { %2318 = vmatmul.bf16.vlgmr.msrb.gmra.mxu2 %v1037_v51  ;;  %2337 = vmatmul.bf16.vlgmr.msra.gmra.mxu3 %v1038_v31 }
 0x648   :  { %v899_v53 = vpop.f32.mrf.mxu2  ;;  %v918_v41 = vpop.f32.mrf.mxu3 }
 0x649   :  { %v900_v3 = vadd.f32 %v899_v53, %v543_v23  ;;  %v919_v48 = vadd.f32 %v918_v41, %v544_v24 }
 0x64b   :  { %v939_v55 = vpop.f32.mrf.mxu0  ;;  %v958_v56 = vpop.f32.mrf.mxu1  ;;  %v1005_v7 = vmax.f32 %v900_v3, 0.0  ;;  %v1006_v13 = vmax.f32 %v919_v48, 0.0 }
 0x64c   :  { %v940_v60 = vadd.f32 %v939_v55, %v545_v21  ;;  %v959_v61 = vadd.f32 %v958_v56, %v546_v22  ;;  %v6409_v22 = vld [vmem:[%s8134_s3 + $0x6] ss:$0 sm:$0xff] }
 0x64e   :  { %v1023_v1 = vmax.f32 %v940_v60, 0.0  ;;  %v1024_v2 = vmax.f32 %v959_v61, 0.0 }
 0x650   :  { %v901_v49 = vpop.f32.mrf.mxu2  ;;  %v920_v8 = vpop.f32.mrf.mxu3  ;;  %v1055_v9 = vpack.c.bf16 %v1023_v1, %v1007_v62  ;;  %v1056_v10 = vpack.c.bf16 %v1024_v2, %v1008_v0 }
 0x651   :  { %v902_v12 = vadd.f32 %v901_v49, %v543_v23  ;;  %v921_v58 = vadd.f32 %v920_v8, %v544_v24 }
 0x652   :  { %2361 = vmatmul.bf16.gmra.mxu0 %v1055_v9  ;;  %2380 = vmatmul.bf16.gmra.mxu1 %v1056_v10 }
 0x653   :  { %v1021_v14 = vmax.f32 %v902_v12, 0.0  ;;  %v1022_v17 = vmax.f32 %v921_v58, 0.0 }
 0x655   :  { %v1053_v18 = vpack.c.bf16 %v1021_v14, %v1005_v7  ;;  %v1054_v19 = vpack.c.bf16 %v1022_v17, %v1006_v13 }
 0x657   :  { %2323 = vmatmul.bf16.gmra.mxu2 %v1053_v18  ;;  %2342 = vmatmul.bf16.gmra.mxu3 %v1054_v19 }
 0x659   :  { %v2129_v20 = vpop.f32.mrf.mxu0  ;;  %v2148_v21 = vpop.f32.mrf.mxu1 }
 0x661   :  { %v2131_v16 = vpop.f32.mrf.mxu0  ;;  %v2150_v23 = vpop.f32.mrf.mxu1 }
 0x664   :  { %v2091_v57 = vpop.f32.mrf.mxu2  ;;  %v2110_v59 = vpop.f32.mrf.mxu3 }
 0x665   :  { %v2092_v15 = vadd.f32 %v6409_v22, %v2091_v57 }
 0x667   :  { %v2111_v24 = vadd.f32 %v2110_v59, %v2092_v15 }
 0x669   :  { %v2130_v25 = vadd.f32 %v2129_v20, %v2111_v24 }
 0x66b   :  { %v2149_v26 = vadd.f32 %v2148_v21, %v2130_v25 }
 0x66c   :  { %v2093_v35 = vpop.f32.mrf.mxu2  ;;  %v2112_v36 = vpop.f32.mrf.mxu3 }
 0x66d   :  { %v2094_v1 = vadd.f32 %v6409_v22, %v2093_v35 }
 0x66f   :  { %v2134_v11 = vpop.f32.mrf.mxu0  ;;  %v2153_v34 = vpop.f32.mrf.mxu1  ;;  %v2113_v8 = vadd.f32 %v2112_v36, %v2094_v1 }
 0x671   :  { %v2132_v10 = vadd.f32 %v2131_v16, %v2113_v8 }
 0x673   :  { %v2151_v14 = vadd.f32 %v2150_v23, %v2132_v10 }
 0x677   :  { %v2136_v37 = vpop.f32.mrf.mxu0  ;;  %v2155_v38 = vpop.f32.mrf.mxu1 }
 0x67a   :  { %v2096_v39 = vpop.f32.mrf.mxu2  ;;  %v2115_v40 = vpop.f32.mrf.mxu3 }
 0x67b   :  { %v2097_v33 = vadd.f32 %v6409_v22, %v2096_v39 }
 0x67d   :  { %v2116_v44 = vadd.f32 %v2115_v40, %v2097_v33 }
 0x67f   :  { %v2135_v63 = vadd.f32 %v2134_v11, %v2116_v44  ;;  %v2205_v4 = vpop.f32.mrf.mxu0  ;;  %v2224_v45 = vpop.f32.mrf.mxu1 }
 0x681   :  { %v2154_v28 = vadd.f32 %v2153_v34, %v2135_v63 }
 0x682   :  { %v2098_v46 = vpop.f32.mrf.mxu2  ;;  %v2117_v54 = vpop.f32.mrf.mxu3 }
 0x683   :  { %v2099_v20 = vadd.f32 %v6409_v22, %v2098_v46 }
 0x685   :  { %v2118_v24 = vadd.f32 %v2117_v54, %v2099_v20 }
 0x687   :  { %v2207_v47 = vpop.f32.mrf.mxu0  ;;  %v2226_v29 = vpop.f32.mrf.mxu1  ;;  %v2137_v16 = vadd.f32 %v2136_v37, %v2118_v24 }
 0x689   :  { %v2156_v44 = vadd.f32 %v2155_v38, %v2137_v16 }
 0x68a   :  { %v2167_v43 = vpop.f32.mrf.mxu2  ;;  %v2186_v50 = vpop.f32.mrf.mxu3 }
 0x68b   :  { %v2168_v9 = vadd.f32 %v2167_v43, %v2149_v26 }
 0x68d   :  { %v2187_v7 = vadd.f32 %v2186_v50, %v2168_v9 }
 0x68f   :  { %v2210_v51 = vpop.f32.mrf.mxu0  ;;  %v2229_v31 = vpop.f32.mrf.mxu1  ;;  %v2206_v18 = vadd.f32 %v2205_v4, %v2187_v7 }
 0x691   :  { %v2225_v59 = vadd.f32 %v2224_v45, %v2206_v18 }
 0x692   :  { %v2169_v53 = vpop.f32.mrf.mxu2  ;;  %v2188_v41 = vpop.f32.mrf.mxu3 }
 0x693   :  { %v2170_v19 = vadd.f32 %v2169_v53, %v2151_v14 }
 0x695   :  { %v2189_v15 = vadd.f32 %v2188_v41, %v2170_v19 }
 0x697   :  { %v2212_v32 = vpop.f32.mrf.mxu0  ;;  %v7276_v42 = vpop.f32.mrf.mxu1  ;;  %v2208_v34 = vadd.f32 %v2207_v47, %v2189_v15 }
 0x699   :  { %v2227_v23 = vadd.f32 %v2226_v29, %v2208_v34 }
 0x69a   :  { %v2172_v55 = vpop.f32.mrf.mxu2  ;;  %v2191_v56 = vpop.f32.mrf.mxu3 }
 0x69b   :  { %v2173_v35 = vadd.f32 %v2172_v55, %v2154_v28 }
 0x69d   :  { %v2192_v33 = vadd.f32 %v2191_v56, %v2173_v35 }
 0x69f   :  { %v2281_v60 = vpop.f32.mrf.mxu0  ;;  %v2300_v61 = vpop.f32.mrf.mxu1  ;;  %v2211_v22 = vadd.f32 %v2210_v51, %v2192_v33 }
 0x6a1   :  { %v2230_v28 = vadd.f32 %v2229_v31, %v2211_v22 }
 0x6a2   :  { %v2174_v62 = vpop.f32.mrf.mxu2  ;;  %v2193_v0 = vpop.f32.mrf.mxu3 }
 0x6a3   :  { %v2175_v46 = vadd.f32 %v2174_v62, %v2156_v44 }
 0x6a5   :  { %v2194_v47 = vadd.f32 %v2193_v0, %v2175_v46 }
 0x6a7   :  { %v2283_v2 = vpop.f32.mrf.mxu0  ;;  %v2302_v49 = vpop.f32.mrf.mxu1 }
 0x6aa   :  { %v2243_v3 = vpop.f32.mrf.mxu2  ;;  %v2262_v48 = vpop.f32.mrf.mxu3 }
 0x6ab   :  { %v2244_v25 = vadd.f32 %v2243_v3, %v2225_v59 }
 0x6ad   :  { %v2263_v36 = vadd.f32 %v2262_v48, %v2244_v25  ;;  %v2213_v48 = vadd.f32 %v2212_v32, %v2194_v47 }
 0x6af   :  { %v2286_v13 = vpop.f32.mrf.mxu0  ;;  %v2305_v17 = vpop.f32.mrf.mxu1  ;;  %v2282_v63 = vadd.f32 %v2281_v60, %v2263_v36  ;;  %v2232_v9 = vadd.f32 %v7276_v42, %v2213_v48 }
 0x6b1   :  { %v2301_v54 = vadd.f32 %v2300_v61, %v2282_v63 }
 0x6b2   :  { %v2245_v12 = vpop.f32.mrf.mxu2  ;;  %v2264_v58 = vpop.f32.mrf.mxu3 }
 0x6b3   :  { %v2246_v4 = vadd.f32 %v2245_v12, %v2227_v23 }
 0x6b5   :  { %v2265_v50 = vadd.f32 %v2264_v58, %v2246_v4 }
 0x6b7   :  { %v2288_v11 = vpop.f32.mrf.mxu0  ;;  %v2307_v26 = vpop.f32.mrf.mxu1  ;;  %v2284_v37 = vadd.f32 %v2283_v2, %v2265_v50 }
 0x6b9   :  { %v2303_v60 = vadd.f32 %v2302_v49, %v2284_v37 }
 0x6ba   :  { %v2248_v21 = vpop.f32.mrf.mxu2  ;;  %v2267_v57 = vpop.f32.mrf.mxu3 }
 0x6bb   :  { %v2249_v1 = vadd.f32 %v2248_v21, %v2230_v28 }
 0x6bd   :  { %v2268_v29 = vadd.f32 %v2267_v57, %v2249_v1 }
 0x6bf   :  { %v2357_v43 = vpop.f32.mrf.mxu0  ;;  %v2376_v45 = vpop.f32.mrf.mxu1  ;;  %v2287_v0 = vadd.f32 %v2286_v13, %v2268_v29 }
 0x6c1   :  { %v2306_v14 = vadd.f32 %v2305_v17, %v2287_v0 }
 0x6c2   :  { %v2250_v39 = vpop.f32.mrf.mxu2  ;;  %v2269_v40 = vpop.f32.mrf.mxu3 }
 0x6c3   :  { %v2251_v31 = vadd.f32 %v2250_v39, %v2232_v9  ;;  %v2553_v9 = vld [vmem:[%s8133_s1 + $0x38] sm:$0xf] }
 0x6c5   :  { %v2270_v7 = vadd.f32 %v2269_v40, %v2251_v31 }
 0x6c7   :  { %v2359_v38 = vpop.f32.mrf.mxu0  ;;  %v2378_v12 = vpop.f32.mrf.mxu1  ;;  %v2289_v57 = vadd.f32 %v2288_v11, %v2270_v7 }
 0x6c9   :  { %v2308_v24 = vadd.f32 %v2307_v26, %v2289_v57 }
 0x6ca   :  { %v2319_v53 = vpop.f32.mrf.mxu2  ;;  %v2338_v41 = vpop.f32.mrf.mxu3 }
 0x6cb   :  { %v2320_v55 = vadd.f32 %v2319_v53, %v2301_v54 }
 0x6cd   :  { %v2339_v3 = vadd.f32 %v2338_v41, %v2320_v55 }
 0x6cf   :  { %v2358_v56 = vadd.f32 %v2357_v43, %v2339_v3  ;;  %v2362_v42 = vpop.f32.mrf.mxu0  ;;  %v2381_v13 = vpop.f32.mrf.mxu1 }
 0x6d1   :  { %v2377_v8 = vadd.f32 %v2376_v45, %v2358_v56 }
 0x6d2   :  { %v2321_v51 = vpop.f32.mrf.mxu2  ;;  %v2340_v62 = vpop.f32.mrf.mxu3 }
 0x6d3   :  { %v2322_v10 = vadd.f32 %v2321_v51, %v2303_v60  ;;  %v2386_v61 = vadd.f32 %v2377_v8, %v6683_v5  ;;  %v2529_v60 = vld [vmem:[%s8133_s1 + $0x34] sm:$0xf]  ;;  %v2499_v8 = vld [vmem:[%s8133_s1 + $0x30] sm:$0xf] }
 0x6d4   :  { %v2532_v51 = vsel %vm127_vm5, %v2529_v60, 0 }
 0x6d5   :  { %v2341_v58 = vadd.f32 %v2340_v62, %v2322_v10  ;;  %v2390_v2 = vsel %vm120_vm6, %v2386_v61, 0.0  ;;  %v2508_v62 = vsel %vm127_vm5, %v2499_v8, 0  ;;  %2541 = vmatpush.bf16.msrb.mxu3 %v2532_v51  ;;  %v2556_v10 = vsel %vm127_vm5, %v2553_v9, 0  ;;  %v6414_v8 = vld [vmem:[%s8134_s3 + $0xa] ss:$0 sm:$0xff] }
 0x6d6   :  { %2391 = vadd.xlane.f32.xlu0 %v2390_v2  ;;  %2517 = vmatpush.bf16.msra.mxu2 %v2508_v62 }
 0x6d7   :  { %v2360_v32 = vadd.f32 %v2359_v38, %v2341_v58  ;;  %v2364_v40 = vpop.f32.mrf.mxu0  ;;  %v2383_v11 = vpop.f32.mrf.mxu1  ;;  %2565 = vmatpush.bf16.msrb.mxu0 %v2556_v10 }
 0x6d9   :  { %v2379_v18 = vadd.f32 %v2378_v12, %v2360_v32 }
 0x6da   :  { %v2324_v49 = vpop.f32.mrf.mxu2  ;;  %v2343_v19 = vpop.f32.mrf.mxu3 }
 0x6db   :  { %v2325_v20 = vadd.f32 %v2324_v49, %v2306_v14  ;;  %v2387_v21 = vadd.f32 %v2379_v18, %v6685_v6 }
 0x6dd   :  { %v2344_v15 = vadd.f32 %v2343_v19, %v2325_v20  ;;  %v2393_v5 = vsel %vm120_vm6, %v2387_v21, 0.0 }
 0x6de   :  { %2394 = vadd.xlane.f32.xlu1 %v2393_v5 }
 0x6df   :  { %v2363_v59 = vadd.f32 %v2362_v42, %v2344_v15 }
 0x6e1   :  { %v2382_v25 = vadd.f32 %v2381_v13, %v2363_v59 }
 0x6e2   :  { %v2326_v34 = vpop.f32.mrf.mxu2  ;;  %v2345_v16 = vpop.f32.mrf.mxu3 }
 0x6e3   :  { %v2327_v35 = vadd.f32 %v2326_v34, %v2308_v24  ;;  %v2388_v17 = vadd.f32 %v2382_v25, %v6707_v27  ;;  %v6410_v25 = vld [vmem:[%s8134_s3 + $0x7] ss:$0 sm:$0xff] }
 0x6e5   :  { %v2346_v36 = vadd.f32 %v2345_v16, %v2327_v35  ;;  %v2396_v39 = vsel %vm120_vm6, %v2388_v17, 0.0 }
 0x6e6   :  { %2397 = vadd.xlane.f32.xlu2 %v2396_v39 }
 0x6e7   :  { %v2365_v6 = vadd.f32 %v2364_v40, %v2346_v36  ;;  %v6411_v40 = vld [vmem:[%s8134_s3 + $0x8] ss:$0 sm:$0xff] }
 0x6e9   :  { %v2384_v33 = vadd.f32 %v2383_v11, %v2365_v6 }
 0x6eb   :  { %v2389_v23 = vadd.f32 %v2384_v33, %v6709_v30 }
 0x6ed   :  { %v2399_v44 = vsel %vm120_vm6, %v2389_v23, 0.0 }
 0x6ee   :  { %2400 = vadd.xlane.f32.xlu0 %v2399_v44 }
 0x749   :  { %v2392_v26 = vpop.xlane.xlu0 %2391 }
 0x74a   :  { %v2402_v63 = vmul.f32 %v2392_v26, %v6625_v52 }
 0x74c   :  { %v7288_v4 = vsub.f32 %v2386_v61, %v2402_v63 }
 0x74e   :  { %v2410_v27 = vmul.f32 %v7288_v4, %v7288_v4 }
 0x750   :  { %v2414_v22 = vsel %vm120_vm6, %v2410_v27, 0.0 }
 0x751   :  { %v2395_v46 = vpop.xlane.xlu1 %2394  ;;  %2415 = vadd.xlane.f32.xlu1 %v2414_v22 }
 0x752   :  { %v2403_v43 = vmul.f32 %v2395_v46, %v6625_v52 }
 0x754   :  { %v7294_v50 = vsub.f32 %v2387_v21, %v2403_v43 }
 0x756   :  { %v2411_v30 = vmul.f32 %v7294_v50, %v7294_v50 }
 0x758   :  { %v2417_v45 = vsel %vm120_vm6, %v2411_v30, 0.0 }
 0x759   :  { %2418 = vadd.xlane.f32.xlu2 %v2417_v45  ;;  %v2398_v54 = vpop.xlane.xlu2 %2397 }
 0x75a   :  { %v2404_v53 = vmul.f32 %v2398_v54, %v6625_v52 }
 0x75c   :  { %v7300_v41 = vsub.f32 %v2388_v17, %v2404_v53 }
 0x75e   :  { %v2412_v47 = vmul.f32 %v7300_v41, %v7300_v41 }
 0x760   :  { %v2420_v28 = vsel %vm120_vm6, %v2412_v47, 0.0 }
 0x761   :  { %v2401_v55 = vpop.xlane.xlu0 %2400  ;;  %2421 = vadd.xlane.f32.xlu0 %v2420_v28 }
 0x762   :  { %v2405_v37 = vmul.f32 %v2401_v55, %v6625_v52 }
 0x764   :  { %v7306_v1 = vsub.f32 %v2389_v23, %v2405_v37 }
 0x766   :  { %v2413_v3 = vmul.f32 %v7306_v1, %v7306_v1 }
 0x768   :  { %v2423_v48 = vsel %vm120_vm6, %v2413_v3, 0.0 }
 0x769   :  { %2424 = vadd.xlane.f32.xlu1 %v2423_v48 }
 0x7c4   :  { %v2416_v56 = vpop.xlane.xlu1 %2415 }
 0x7c5   :  { %v2426_v29 = vmul.f32 %v2416_v56, %v6625_v52 }
 0x7c7   :  { %v2430_v38 = vadd.f32 1e-05, %v2426_v29 }
 0x7c9   :  { %6450 = vrsqrt.f32 %v2430_v38  ;;  %vm2440_vm9 = vweird.f32 %v2430_v38 }
 0x7cc   :  { %v2419_v61 = vpop.xlane.xlu2 %2418 }
 0x7cd   :  { %v2427_v12 = vmul.f32 %v2419_v61, %v6625_v52 }
 0x7cf   :  { %v6451_v0 = vpop.eup %6450  ;;  %v2431_v31 = vadd.f32 1e-05, %v2427_v12 }
 0x7d0   :  { %v2435_v58 = vmul.f32 %v6451_v0, %v2430_v38  ;;  %vm2441_vm8 = vweird.f32 %v6451_v0 }
 0x7d1   :  { %6452 = vrsqrt.f32 %v2431_v31  ;;  %vm2442_vm10 = vmor %vm2440_vm9, %vm2441_vm8  ;;  %vm2450_vm12 = vweird.f32 %v2431_v31 }
 0x7d2   :  { %v2436_v2 = vmul.f32 %v6451_v0, %v2435_v58 }
 0x7d4   :  { %v2437_v32 = vmul.f32 0.5, %v2436_v2  ;;  %v2422_v7 = vpop.xlane.xlu0 %2421  ;;  %v6413_v2 = vld [vmem:[%s8134_s3 + $0x9] ss:$0 sm:$0xff] }
 0x7d5   :  { %v2428_v14 = vmul.f32 %v2422_v7, %v6625_v52 }
 0x7d6   :  { %v2438_v18 = vsub.f32 1.5, %v2437_v32 }
 0x7d7   :  { %v6453_v49 = vpop.eup %6452  ;;  %v2432_v19 = vadd.f32 1e-05, %v2428_v14 }
 0x7d8   :  { %v2439_v20 = vmul.f32 %v6451_v0, %v2438_v18  ;;  %v2445_v21 = vmul.f32 %v6453_v49, %v2431_v31  ;;  %vm2451_vm11 = vweird.f32 %v6453_v49 }
 0x7d9   :  { %6454 = vrsqrt.f32 %v2432_v19  ;;  %vm2452_vm13 = vmor %vm2450_vm12, %vm2451_vm11  ;;  %vm2460_vm15 = vweird.f32 %v2432_v19 }
 0x7da   :  { %v2446_v42 = vmul.f32 %v6453_v49, %v2445_v21  ;;  %v2443_v57 = vsel %vm2442_vm10, %v6451_v0, %v2439_v20 }
 0x7db   :  { %v2474_v34 = vmul.f32 %v2443_v57, %v7288_v4 }
 0x7dc   :  { %v2447_v15 = vmul.f32 0.5, %v2446_v42  ;;  %v2425_v5 = vpop.xlane.xlu1 %2424 }
 0x7dd   :  { %v2429_v13 = vmul.f32 %v2425_v5, %v6625_v52  ;;  %v2479_v6 = vmul.f32 %v6410_v25, %v2474_v34 }
 0x7de   :  { %v2448_v59 = vsub.f32 1.5, %v2447_v15 }
 0x7df   :  { %v6455_v24 = vpop.eup %6454  ;;  %v2433_v35 = vadd.f32 1e-05, %v2429_v13  ;;  %v7335_v63 = vadd.f32 %v6411_v40, %v2479_v6 }
 0x7e0   :  { %v2449_v17 = vmul.f32 %v6453_v49, %v2448_v59  ;;  %v2455_v16 = vmul.f32 %v6455_v24, %v2432_v19  ;;  %vm2461_vm14 = vweird.f32 %v6455_v24 }
 0x7e1   :  { %6456 = vrsqrt.f32 %v2433_v35  ;;  %vm2462_vm0 = vmor %vm2460_vm15, %vm2461_vm14  ;;  %vm2470_vm2 = vweird.f32 %v2433_v35 }
 0x7e2   :  { %v2453_v36 = vsel %vm2452_vm13, %v6453_v49, %v2449_v17  ;;  %v2456_v39 = vmul.f32 %v6455_v24, %v2455_v16 }
 0x7e3   :  { %v2475_v11 = vmul.f32 %v2453_v36, %v7294_v50 }
 0x7e4   :  { %v2457_v33 = vmul.f32 0.5, %v2456_v39 }
 0x7e5   :  { %v2480_v23 = vmul.f32 %v6410_v25, %v2475_v11 }
 0x7e6   :  { %v2458_v44 = vsub.f32 1.5, %v2457_v33 }
 0x7e7   :  { %v6457_v26 = vpop.eup %6456  ;;  %v7337_v4 = vadd.f32 %v6411_v40, %v2480_v23 }
 0x7e8   :  { %v2459_v27 = vmul.f32 %v6455_v24, %v2458_v44  ;;  %v2465_v22 = vmul.f32 %v6457_v26, %v2433_v35  ;;  %vm2471_vm1 = vweird.f32 %v6457_v26 }
 0x7e9   :  { %v2497_v46 = vpack.c.bf16 %v7337_v4, %v7335_v63  ;;  %vm2472_vm3 = vmor %vm2470_vm2, %vm2471_vm1 }
 0x7ea   :  { %v2466_v43 = vmul.f32 %v6457_v26, %v2465_v22  ;;  %v2463_v50 = vsel %vm2462_vm0, %v6455_v24, %v2459_v27 }
 0x7eb   :  { %5576 = vmatmul.msk.bf16.vlgmr.msra.gmra.mxu2 %vm120_vm6, %v2497_v46  ;;  %5578 = vmatmul.msk.bf16.vlgmr.msrb.gmra.mxu3 %vm120_vm6, %v2497_v46  ;;  %v2476_v54 = vmul.f32 %v2463_v50, %v7300_v41 }
 0x7ec   :  { %v2467_v30 = vmul.f32 0.5, %v2466_v43  ;;  %5580 = vmatmul.msk.bf16.vlgmr.msrb.gmra.mxu0 %vm120_vm6, %v2497_v46 }
 0x7ed   :  { %v2481_v55 = vmul.f32 %v6410_v25, %v2476_v54 }
 0x7ee   :  { %v2468_v45 = vsub.f32 1.5, %v2467_v30 }
 0x7ef   :  { %v7346_v3 = vadd.f32 %v6411_v40, %v2481_v55 }
 0x7f0   :  { %v2469_v53 = vmul.f32 %v6457_v26, %v2468_v45 }
 0x7f2   :  { %v2473_v47 = vsel %vm2472_vm3, %v6457_v26, %v2469_v53 }
 0x7f3   :  { %v2477_v28 = vmul.f32 %v2473_v47, %v7306_v1  ;;  %v6412_v1 = vld [vmem:[%s8134_s3 + $0xb] ss:$0 sm:$0xff] }
 0x7f5   :  { %v2482_v37 = vmul.f32 %v6410_v25, %v2477_v28 }
 0x7f7   :  { %v7348_v48 = vadd.f32 %v6411_v40, %v2482_v37 }
 0x7f9   :  { %v2498_v56 = vpack.c.bf16 %v7348_v48, %v7346_v3 }
 0x7fb   :  { %5577 = vmatmul.msk.bf16.gmra.mxu2 %vm120_vm6, %v2498_v56  ;;  %5579 = vmatmul.msk.bf16.gmra.mxu3 %vm120_vm6, %v2498_v56 }
 0x7fc   :  { %5581 = vmatmul.msk.bf16.gmra.mxu0 %vm120_vm6, %v2498_v56 }
 0x869   :  { %v2567_v41 = vpop.f32.mrf.mxu0 }
 0x86a   :  { %v2568_v29 = vadd.f32 %v6412_v1, %v2567_v41 }
 0x86c   :  { %v2585_v62 = vpack.c.bf16 %v2568_v29, %v2568_v29 }
 0x86e   :  { %v2519_v38 = vpop.f32.mrf.mxu2  ;;  %v2543_v60 = vpop.f32.mrf.mxu3  ;;  %v2704_v12 = vunpack.c.l.b16 %v2585_v62 }
 0x86f   :  { %v2544_v10 = vadd.f32 %v6414_v8, %v2543_v60  ;;  %v2520_v20 = vadd.f32 %v6413_v2, %v2519_v38 }
 0x871   :  { %v2569_v51 = vpop.f32.mrf.mxu0  ;;  %v2581_v32 = vpack.c.bf16 %v2544_v10, %v2544_v10  ;;  %v2577_v24 = vpack.c.bf16 %v2520_v20, %v2520_v20 }
 0x872   :  { %v2570_v9 = vadd.f32 %v6412_v1, %v2569_v51 }
 0x873   :  { %v2596_v21 = vunpack.c.l.b16 %v2581_v32  ;;  %v2591_v36 = vunpack.c.l.b16 %v2577_v24 }
 0x874   :  { %v2586_v61 = vpack.c.bf16 %v2570_v9, %v2570_v9 }
 0x876   :  { %v2705_v0 = vunpack.c.l.b16 %v2586_v61  ;;  %v2521_v31 = vpop.f32.mrf.mxu2  ;;  %v2545_v58 = vpop.f32.mrf.mxu3 }
 0x877   :  { %v2546_v7 = vadd.f32 %v6414_v8, %v2545_v58  ;;  %v2522_v18 = vadd.f32 %v6413_v2, %v2521_v31 }
 0x878   :  { %v2706_v14 = vpack.c.b16 %v2705_v0, %v2704_v12 }
 0x879   :  { %v2582_v49 = vpack.c.bf16 %v2546_v7, %v2546_v7  ;;  %v2572_v19 = vpop.f32.mrf.mxu0  ;;  %v2578_v57 = vpack.c.bf16 %v2522_v18, %v2522_v18 }
 0x87a   :  { %2718 = vmatpush.bf16.msra.mxu3 %v2706_v14  ;;  %v2573_v5 = vadd.f32 %v6412_v1, %v2572_v19 }
 0x87b   :  { %v2597_v42 = vunpack.c.l.b16 %v2582_v49  ;;  %v2592_v34 = vunpack.c.l.b16 %v2578_v57 }
 0x87c   :  { %v2587_v17 = vpack.c.bf16 %v2573_v5, %v2573_v5 }
 0x87d   :  { %v2598_v15 = vpack.c.b16 %v2597_v42, %v2596_v21  ;;  %v2593_v6 = vpack.c.b16 %v2592_v34, %v2591_v36 }
 0x87e   :  { %v2524_v13 = vpop.f32.mrf.mxu2  ;;  %v2548_v59 = vpop.f32.mrf.mxu3  ;;  %v2732_v11 = vunpack.c.l.b16 %v2587_v17 }
 0x87f   :  { %v2603_v25 = vsel %vm120_vm6, %v2598_v15, 0  ;;  %v2549_v39 = vadd.f32 %v6414_v8, %v2548_v59  ;;  %v2525_v50 = vadd.f32 %v6413_v2, %v2524_v13 }
 0x880   :  { %2612 = vmatpush.bf16.xpose.msrb.mxu1 %v2603_v25 }
 0x881   :  { %v2574_v35 = vpop.f32.mrf.mxu0  ;;  %v2583_v26 = vpack.c.bf16 %v2549_v39, %v2549_v39  ;;  %v2579_v47 = vpack.c.bf16 %v2525_v50, %v2525_v50 }
 0x882   :  { %v2575_v16 = vadd.f32 %v6412_v1, %v2574_v35 }
 0x883   :  { %v2626_v30 = vunpack.c.l.b16 %v2583_v26  ;;  %v2621_v37 = vunpack.c.l.b16 %v2579_v47 }
 0x884   :  { %v2588_v40 = vpack.c.bf16 %v2575_v16, %v2575_v16 }
 0x886   :  { %v2733_v33 = vunpack.c.l.b16 %v2588_v40  ;;  %v2526_v23 = vpop.f32.mrf.mxu2  ;;  %v2550_v44 = vpop.f32.mrf.mxu3 }
 0x887   :  { %v2551_v27 = vadd.f32 %v6414_v8, %v2550_v44  ;;  %5582 = vmatmul.msk.bf16.vlgmr.msrb.gmra.mxu1 %vm120_vm6, %v2593_v6  ;;  %v2527_v46 = vadd.f32 %v6413_v2, %v2526_v23 }
 0x888   :  { %v2734_v22 = vpack.c.b16 %v2733_v33, %v2732_v11 }
 0x889   :  { %v2584_v43 = vpack.c.bf16 %v2551_v27, %v2551_v27  ;;  %v2580_v54 = vpack.c.bf16 %v2527_v46, %v2527_v46 }
 0x88a   :  { %2746 = vmatpush.bf16.msra.mxu0 %v2734_v22 }
 0x88b   :  { %v2627_v45 = vunpack.c.l.b16 %v2584_v43  ;;  %v2622_v55 = vunpack.c.l.b16 %v2580_v54 }
 0x88d   :  { %v2628_v53 = vpack.c.b16 %v2627_v45, %v2626_v30  ;;  %v2623_v56 = vpack.c.b16 %v2622_v55, %v2621_v37  ;;  %v2755_v30 = vld [vmem:[%s8133_s1 + $0x3c] sm:$0xf] }
 0x88e   :  { %v2764_v45 = vsel %vm127_vm5, %v2755_v30, 0 }
 0x88f   :  { %v2633_v28 = vsel %vm120_vm6, %v2628_v53, 0  ;;  %2773 = vmatpush.bf16.msra.mxu1 %v2764_v45 }
 0x890   :  { %2642 = vmatpush.bf16.xpose.msrb.mxu2 %v2633_v28 }
 0x897   :  { %5583 = vmatmul.msk.bf16.vlgmr.msrb.gmra.mxu2 %vm120_vm6, %v2623_v56  ;;  %v6415_v56 = vld [vmem:[%s8134_s3 + $0xc] ss:$0 sm:$0xff] }
 0x904   :  { %v2614_v41 = vpop.f32.mrf.mxu1 }
 0x905   :  { %v2649_v1 = vsel %vm270_vm7, %v2614_v41, -inf }
 0x906   :  { %2650 = vmax.xlane.f32.xlu2 %v2649_v1 }
 0x90c   :  { %v2616_v29 = vpop.f32.mrf.mxu1 }
 0x90d   :  { %v2652_v38 = vsel %vm270_vm7, %v2616_v29, -inf }
 0x90e   :  { %2653 = vmax.xlane.f32.xlu0 %v2652_v38 }
 0x91a   :  { %v2644_v60 = vpop.f32.mrf.mxu2 }
 0x91b   :  { %v2655_v8 = vsel %vm270_vm7, %v2644_v60, -inf }
 0x91c   :  { %2656 = vmax.xlane.f32.xlu1 %v2655_v8 }
 0x922   :  { %v2646_v51 = vpop.f32.mrf.mxu2 }
 0x923   :  { %v2658_v62 = vsel %vm270_vm7, %v2646_v51, -inf }
 0x924   :  { %2659 = vmax.xlane.f32.xlu2 %v2658_v62 }
 0x979   :  { %v2651_v9 = vpop.xlane.xlu2 %2650 }
 0x97a   :  { %v2661_v10 = vsub.f32 %v2614_v41, %v2651_v9 }
 0x97c   :  { %v2665_v61 = vmul.f32 1.442695, %v2661_v10 }
 0x97e   :  { %6458 = vpow2.f32 %v2665_v61 }
 0x981   :  { %v2654_v12 = vpop.xlane.xlu0 %2653 }
 0x982   :  { %v2662_v0 = vsub.f32 %v2616_v29, %v2654_v12 }
 0x984   :  { %v6459_v31 = vpop.eup %6458  ;;  %v2667_v58 = vmul.f32 1.442695, %v2662_v0 }
 0x985   :  { %v2673_v2 = vsel %vm270_vm7, %v6459_v31, 0.0 }
 0x986   :  { %6460 = vpow2.f32 %v2667_v58  ;;  %2674 = vadd.xlane.f32.xlu0 %v2673_v2 }
 0x98c   :  { %v6461_v32 = vpop.eup %6460 }
 0x98d   :  { %v2676_v7 = vsel %vm270_vm7, %v6461_v32, 0.0 }
 0x98e   :  { %2677 = vadd.xlane.f32.xlu1 %v2676_v7 }
 0x98f   :  { %v2657_v14 = vpop.xlane.xlu1 %2656 }
 0x990   :  { %v2663_v18 = vsub.f32 %v2644_v60, %v2657_v14 }
 0x992   :  { %v2669_v49 = vmul.f32 1.442695, %v2663_v18 }
 0x994   :  { %6462 = vpow2.f32 %v2669_v49 }
 0x997   :  { %v2660_v19 = vpop.xlane.xlu2 %2659 }
 0x998   :  { %v2664_v20 = vsub.f32 %v2646_v51, %v2660_v19 }
 0x99a   :  { %v6463_v21 = vpop.eup %6462  ;;  %v2671_v42 = vmul.f32 1.442695, %v2664_v20 }
 0x99b   :  { %v2679_v57 = vsel %vm270_vm7, %v6463_v21, 0.0 }
 0x99c   :  { %6464 = vpow2.f32 %v2671_v42  ;;  %2680 = vadd.xlane.f32.xlu2 %v2679_v57 }
 0x9a2   :  { %v6465_v15 = vpop.eup %6464 }
 0x9a3   :  { %v2682_v5 = vsel %vm270_vm7, %v6465_v15, 0.0 }
 0x9a4   :  { %2683 = vadd.xlane.f32.xlu0 %v2682_v5 }
 0x9f9   :  { %v2675_v13 = vpop.xlane.xlu0 %2674 }
 0x9fa   :  { %6466 = vrcp.f32 %v2675_v13 }
 0xa00   :  { %v6467_v24 = vpop.eup %6466 }
 0xa01   :  { %v2678_v59 = vpop.xlane.xlu1 %2677  ;;  %v2689_v25 = vmul.f32 %v6467_v24, %v6459_v31 }
 0xa02   :  { %6468 = vrcp.f32 %v2678_v59 }
 0xa03   :  { %v2693_v35 = vpack.c.bf16 %v2689_v25, %v2689_v25 }
 0xa05   :  { %v2699_v36 = vunpack.c.l.b16 %v2693_v35  ;;  %v2890_v35 = vld [vmem:[%s8135_s2 + $0x48] sm:$0xff] }
 0xa08   :  { %v6469_v34 = vpop.eup %6468 }
 0xa09   :  { %v2690_v17 = vmul.f32 %v6469_v34, %v6461_v32  ;;  %v2889_v34 = vld [vmem:[%s8135_s2 + $0x40] sm:$0xff] }
 0xa0b   :  { %v2694_v16 = vpack.c.bf16 %v2690_v17, %v2690_v17 }
 0xa0d   :  { %v2700_v39 = vunpack.c.l.b16 %v2694_v16  ;;  %v2943_v16 = vunpack.c.l.b16 %v2889_v34 }
 0xa0f   :  { %v2701_v40 = vpack.c.b16 %v2700_v39, %v2699_v36  ;;  %v2681_v6 = vpop.xlane.xlu2 %2680  ;;  %v2944_v36 = vunpack.c.h.b16 %v2889_v34  ;;  %v2945_v39 = vunpack.c.l.b16 %v2890_v35 }
 0xa10   :  { %6470 = vrcp.f32 %v2681_v6 }
 0xa11   :  { %5584 = vmatmul.msk.bf16.vlgmr.msra.gmra.mxu3 %vm270_vm7, %v2701_v40  ;;  %v2946_v40 = vunpack.c.h.b16 %v2890_v35 }
 0xa16   :  { %v6471_v33 = vpop.eup %6470 }
 0xa17   :  { %v2684_v11 = vpop.xlane.xlu0 %2683  ;;  %v2691_v23 = vmul.f32 %v6471_v33, %v6463_v21  ;;  %v2960_v33 = vpack.c.b16 %v2944_v36, %v2944_v36 }
 0xa18   :  { %6472 = vrcp.f32 %v2684_v11  ;;  %v2959_v11 = vpack.c.b16 %v2943_v16, %v2943_v16 }
 0xa19   :  { %v2695_v26 = vpack.c.bf16 %v2691_v23, %v2691_v23  ;;  %v2961_v23 = vpack.c.b16 %v2945_v39, %v2945_v39 }
 0xa1b   :  { %v2727_v46 = vunpack.c.l.b16 %v2695_v26 }
 0xa1e   :  { %v6473_v44 = vpop.eup %6472 }
 0xa1f   :  { %v2692_v27 = vmul.f32 %v6473_v44, %v6465_v15  ;;  %v2962_v44 = vpack.c.b16 %v2946_v40, %v2946_v40 }
 0xa21   :  { %v2696_v22 = vpack.c.bf16 %v2692_v27, %v2692_v27  ;;  %v2982_v27 = vsel %vm127_vm5, %v2959_v11, 0 }
 0xa22   :  { %3036 = vmatpush.bf16.msra.mxu2 %v2982_v27 }
 0xa23   :  { %v2728_v43 = vunpack.c.l.b16 %v2696_v22  ;;  %v2985_v22 = vsel %vm127_vm5, %v2960_v33, 0 }
 0xa24   :  { %3055 = vmatpush.bf16.msrb.mxu3 %v2985_v22 }
 0xa25   :  { %v2729_v50 = vpack.c.b16 %v2728_v43, %v2727_v46  ;;  %v2988_v46 = vsel %vm127_vm5, %v2961_v23, 0  ;;  %v2991_v43 = vsel %vm127_vm5, %v2962_v44, 0 }
 0xa26   :  { %3074 = vmatpush.bf16.msrb.mxu0 %v2988_v46  ;;  %3093 = vmatpush.bf16.msrb.mxu1 %v2991_v43 }
 0xa27   :  { %5585 = vmatmul.msk.bf16.vlgmr.msra.gmra.mxu0 %vm270_vm7, %v2729_v50 }
 0xa94   :  { %v2720_v54 = vpop.f32.mrf.mxu3 }
 0xa9c   :  { %v2722_v53 = vpop.f32.mrf.mxu3 }
 0xa9d   :  { %v2753_v47 = vpack.c.bf16 %v2722_v53, %v2720_v54 }
 0xa9f   :  { %5586 = vmatmul.msk.bf16.vlgmr.msra.gmra.mxu1 %vm120_vm6, %v2753_v47 }
 0xaa4   :  { %v2748_v28 = vpop.f32.mrf.mxu0 }
 0xaac   :  { %v2750_v55 = vpop.f32.mrf.mxu0 }
 0xaad   :  { %v2754_v37 = vpack.c.bf16 %v2750_v55, %v2748_v28 }
 0xaaf   :  { %5587 = vmatmul.msk.bf16.gmra.mxu1 %vm120_vm6, %v2754_v37 }
 0xb1c   :  { %v2775_v41 = vpop.f32.mrf.mxu1 }
 0xb1d   :  { %v2776_v1 = vadd.f32 %v6415_v56, %v2775_v41 }
 0xb1f   :  { %v2785_v29 = vadd.f32 %v2776_v1, %v7335_v63 }
 0xb21   :  { %v2789_v38 = vsel %vm120_vm6, %v2785_v29, 0.0 }
 0xb22   :  { %2790 = vadd.xlane.f32.xlu1 %v2789_v38 }
 0xb24   :  { %v2777_v60 = vpop.f32.mrf.mxu1 }
 0xb25   :  { %v2778_v8 = vadd.f32 %v6415_v56, %v2777_v60 }
 0xb27   :  { %v2786_v51 = vadd.f32 %v2778_v8, %v7337_v4 }
 0xb29   :  { %v2792_v62 = vsel %vm120_vm6, %v2786_v51, 0.0 }
 0xb2a   :  { %2793 = vadd.xlane.f32.xlu2 %v2792_v62 }
 0xb2c   :  { %v2780_v9 = vpop.f32.mrf.mxu1 }
 0xb2d   :  { %v2781_v10 = vadd.f32 %v6415_v56, %v2780_v9  ;;  %v2891_v9 = vld [vmem:[%s8135_s2 + $0x50] sm:$0xff] }
 0xb2f   :  { %v2787_v61 = vadd.f32 %v2781_v10, %v7346_v3  ;;  %v2892_v10 = vld [vmem:[%s8135_s2 + $0x58] sm:$0xff] }
 0xb31   :  { %v2795_v12 = vsel %vm120_vm6, %v2787_v61, 0.0 }
 0xb32   :  { %2796 = vadd.xlane.f32.xlu0 %v2795_v12  ;;  %v2947_v12 = vunpack.c.l.b16 %v2891_v9 }
 0xb34   :  { %v2782_v0 = vpop.f32.mrf.mxu1 }
 0xb35   :  { %v2783_v31 = vadd.f32 %v6415_v56, %v2782_v0  ;;  %v2948_v0 = vunpack.c.h.b16 %v2891_v9  ;;  %v2895_v9 = vld [vmem:[%s8135_s2 + $0x70] sm:$0xff] }
 0xb37   :  { %v2788_v63 = vadd.f32 %v2783_v31, %v7348_v48 }
 0xb39   :  { %v2798_v58 = vsel %vm120_vm6, %v2788_v63, 0.0 }
 0xb3a   :  { %2799 = vadd.xlane.f32.xlu1 %v2798_v58  ;;  %v2950_v58 = vunpack.c.h.b16 %v2892_v10 }
 0xb95   :  { %v2791_v2 = vpop.xlane.xlu1 %2790 }
 0xb96   :  { %v2801_v4 = vmul.f32 %v2791_v2, %v6625_v52 }
 0xb98   :  { %v7396_v32 = vsub.f32 %v2785_v29, %v2801_v4  ;;  %v6416_v4 = vld [vmem:[%s8134_s3 + $0xd] ss:$0 sm:$0xff] }
 0xb9a   :  { %v2809_v7 = vmul.f32 %v7396_v32, %v7396_v32 }
 0xb9c   :  { %v2813_v3 = vsel %vm120_vm6, %v2809_v7, 0.0 }
 0xb9d   :  { %v2794_v14 = vpop.xlane.xlu2 %2793  ;;  %2814 = vadd.xlane.f32.xlu2 %v2813_v3 }
 0xb9e   :  { %v2802_v18 = vmul.f32 %v2794_v14, %v6625_v52  ;;  %v2963_v14 = vpack.c.b16 %v2947_v12, %v2947_v12  ;;  %v2956_v12 = vunpack.c.h.b16 %v2895_v9 }
 0xba0   :  { %v7402_v49 = vsub.f32 %v2786_v51, %v2802_v18  ;;  %v2964_v18 = vpack.c.b16 %v2948_v0, %v2948_v0 }
 0xba2   :  { %v2810_v48 = vmul.f32 %v7402_v49, %v7402_v49 }
 0xba4   :  { %v2816_v19 = vsel %vm120_vm6, %v2810_v48, 0.0 }
 0xba5   :  { %2817 = vadd.xlane.f32.xlu0 %v2816_v19  ;;  %v2797_v20 = vpop.xlane.xlu0 %2796 }
 0xba6   :  { %v2803_v21 = vmul.f32 %v2797_v20, %v6625_v52 }
 0xba8   :  { %v7408_v42 = vsub.f32 %v2787_v61, %v2803_v21  ;;  %v2994_v21 = vsel %vm127_vm5, %v2963_v14, 0 }
 0xba9   :  { %3112 = vmatpush.bf16.msrb.mxu2 %v2994_v21  ;;  %v6298_v21 = vld [vmem:[%s8133_s1 + $0x530] sm:$0xff] }
 0xbaa   :  { %v2811_v57 = vmul.f32 %v7408_v42, %v7408_v42 }
 0xbac   :  { %v2819_v15 = vsel %vm120_vm6, %v2811_v57, 0.0  ;;  %v2997_v57 = vsel %vm127_vm5, %v2964_v18, 0 }
 0xbad   :  { %v2800_v5 = vpop.xlane.xlu1 %2799  ;;  %2820 = vadd.xlane.f32.xlu1 %v2819_v15  ;;  %3131 = vmatpush.bf16.msra.mxu3 %v2997_v57  ;;  %v6275_v57 = vld [vmem:[%s8133_s1 + $0x478] sm:$0xff] }
 0xbae   :  { %v2804_v13 = vmul.f32 %v2800_v5, %v6625_v52 }
 0xbb0   :  { %v7414_v59 = vsub.f32 %v2788_v63, %v2804_v13  ;;  %v2949_v63 = vunpack.c.l.b16 %v2892_v10  ;;  %v2896_v10 = vld [vmem:[%s8135_s2 + $0x78] sm:$0xff] }
 0xbb1   :  { %v2957_v0 = vunpack.c.l.b16 %v2896_v10 }
 0xbb2   :  { %v2812_v24 = vmul.f32 %v7414_v59, %v7414_v59  ;;  %v2965_v20 = vpack.c.b16 %v2949_v63, %v2949_v63 }
 0xbb4   :  { %v2822_v25 = vsel %vm120_vm6, %v2812_v24, 0.0  ;;  %v3000_v13 = vsel %vm127_vm5, %v2965_v20, 0  ;;  %v6417_v24 = vld [vmem:[%s8134_s3 + $0xe] ss:$0 sm:$0xff]  ;;  %v6290_v20 = vld [vmem:[%s8133_s1 + $0x4f0] sm:$0xff] }
 0xbb5   :  { %2823 = vadd.xlane.f32.xlu2 %v2822_v25  ;;  %3150 = vmatpush.bf16.msra.mxu0 %v3000_v13  ;;  %v6297_v13 = vld [vmem:[%s8133_s1 + $0x528] sm:$0xff] }
 0xc10   :  { %v2815_v17 = vpop.xlane.xlu2 %2814 }
 0xc11   :  { %v2825_v6 = vmul.f32 %v2815_v17, %v6625_v52 }
 0xc13   :  { %v2829_v26 = vadd.f32 1e-05, %v2825_v6 }
 0xc15   :  { %6474 = vrsqrt.f32 %v2829_v26  ;;  %vm2839_vm4 = vweird.f32 %v2829_v26 }
 0xc18   :  { %v2818_v50 = vpop.xlane.xlu0 %2817 }
 0xc19   :  { %v2826_v30 = vmul.f32 %v2818_v50, %v6625_v52 }
 0xc1b   :  { %v6475_v45 = vpop.eup %6474  ;;  %v2830_v54 = vadd.f32 1e-05, %v2826_v30 }
 0xc1c   :  { %v2834_v53 = vmul.f32 %v6475_v45, %v2829_v26  ;;  %vm2840_vm7 = vweird.f32 %v6475_v45 }
 0xc1d   :  { %6476 = vrsqrt.f32 %v2830_v54  ;;  %vm2841_vm8 = vmor %vm2839_vm4, %vm2840_vm7  ;;  %vm2849_vm10 = vweird.f32 %v2830_v54 }
 0xc1e   :  { %v2835_v47 = vmul.f32 %v6475_v45, %v2834_v53 }
 0xc20   :  { %v2836_v28 = vmul.f32 0.5, %v2835_v47  ;;  %v2821_v55 = vpop.xlane.xlu1 %2820 }
 0xc21   :  { %v2827_v37 = vmul.f32 %v2821_v55, %v6625_v52 }
 0xc22   :  { %v2837_v56 = vsub.f32 1.5, %v2836_v28 }
 0xc23   :  { %v6477_v41 = vpop.eup %6476  ;;  %v2831_v1 = vadd.f32 1e-05, %v2827_v37 }
 0xc24   :  { %v2838_v29 = vmul.f32 %v6475_v45, %v2837_v56  ;;  %v2844_v38 = vmul.f32 %v6477_v41, %v2830_v54  ;;  %vm2850_vm9 = vweird.f32 %v6477_v41 }
 0xc25   :  { %6478 = vrsqrt.f32 %v2831_v1  ;;  %vm2851_vm11 = vmor %vm2849_vm10, %vm2850_vm9  ;;  %vm2859_vm13 = vweird.f32 %v2831_v1 }
 0xc26   :  { %v2845_v60 = vmul.f32 %v6477_v41, %v2844_v38  ;;  %v2842_v8 = vsel %vm2841_vm8, %v6475_v45, %v2838_v29 }
 0xc27   :  { %v2873_v7 = vmul.f32 %v2842_v8, %v7396_v32  ;;  %v2966_v32 = vpack.c.b16 %v2950_v58, %v2950_v58  ;;  %v2972_v58 = vpack.c.b16 %v2956_v12, %v2956_v12  ;;  %v7700_v12 = vld [vmem:[%s8136_s4 + $0x1] ss:$4 sm:$0xff] }
 0xc28   :  { %v2846_v51 = vmul.f32 0.5, %v2845_v60  ;;  %v2824_v62 = vpop.xlane.xlu2 %2823 }
 0xc29   :  { %v2828_v61 = vmul.f32 %v2824_v62, %v6625_v52  ;;  %v2878_v25 = vmul.f32 %v6416_v4, %v2873_v7  ;;  %v3003_v17 = vsel %vm127_vm5, %v2966_v32, 0  ;;  %v6274_v32 = vld [vmem:[%s8133_s1 + $0x470] sm:$0xff] }
 0xc2a   :  { %v2847_v31 = vsub.f32 1.5, %v2846_v51  ;;  %3169 = vmatpush.bf16.msra.mxu1 %v3003_v17  ;;  %v6281_v17 = vld [vmem:[%s8133_s1 + $0x4a8] sm:$0xff] }
 0xc2b   :  { %v6479_v2 = vpop.eup %6478  ;;  %v2832_v3 = vadd.f32 1e-05, %v2828_v61  ;;  %v7451_v40 = vadd.f32 %v6417_v24, %v2878_v25  ;;  %v2955_v61 = vunpack.c.l.b16 %v2895_v9  ;;  %v6288_v25 = vld [vmem:[%s8133_s1 + $0x4e0] sm:$0xff]  ;;  %v6313_v9 = vld [vmem:[%s8133_s1 + $0x5a8] sm:$0xff] }
 0xc2c   :  { %v2848_v48 = vmul.f32 %v6477_v41, %v2847_v31  ;;  %v2854_v19 = vmul.f32 %v6479_v2, %v2831_v1  ;;  %vm2860_vm12 = vweird.f32 %v6479_v2  ;;  %v2958_v31 = vunpack.c.h.b16 %v2896_v10  ;;  %v6319_v10 = vld [vmem:[%s8133_s1 + $0x5d8] sm:$0xff] }
 0xc2d   :  { %6480 = vrsqrt.f32 %v2832_v3  ;;  %vm2861_vm14 = vmor %vm2859_vm13, %vm2860_vm12  ;;  %vm2869_vm0 = vweird.f32 %v2832_v3  ;;  %v2971_v63 = vpack.c.b16 %v2955_v61, %v2955_v61  ;;  %v6327_v61 = vld [vmem:[%s8133_s1 + $0x618] sm:$0xff] }
 0xc2e   :  { %v2852_v15 = vsel %vm2851_vm11, %v6477_v41, %v2848_v48  ;;  %v2855_v5 = vmul.f32 %v6479_v2, %v2854_v19  ;;  %v6291_v48 = vld [vmem:[%s8133_s1 + $0x4f8] sm:$0xff] }
 0xc2f   :  { %v2874_v34 = vmul.f32 %v2852_v15, %v7402_v49  ;;  %v3018_v7 = vsel %vm127_vm5, %v2971_v63, 0  ;;  %v6299_v19 = vld [vmem:[%s8133_s1 + $0x538] sm:$0xff]  ;;  %v6304_v63 = vld [vmem:[%s8133_s1 + $0x560] sm:$0xff] }
 0xc30   :  { %v2856_v35 = vmul.f32 0.5, %v2855_v5  ;;  %v6283_v15 = vld [vmem:[%s8133_s1 + $0x4b8] sm:$0xff]  ;;  %v6289_v5 = vld [vmem:[%s8133_s1 + $0x4e8] sm:$0xff] }
 0xc31   :  { %v2879_v16 = vmul.f32 %v6416_v4, %v2874_v34  ;;  %v6296_v34 = vld [vmem:[%s8133_s1 + $0x520] sm:$0xff] }
 0xc32   :  { %v2857_v36 = vsub.f32 1.5, %v2856_v35  ;;  %v6273_v35 = vld [vmem:[%s8133_s1 + $0x468] sm:$0xff] }
 0xc33   :  { %v6481_v39 = vpop.eup %6480  ;;  %v7453_v6 = vadd.f32 %v6417_v24, %v2879_v16  ;;  %v6287_v16 = vld [vmem:[%s8133_s1 + $0x4d8] sm:$0xff] }
 0xc34   :  { %v2858_v11 = vmul.f32 %v6479_v2, %v2857_v36  ;;  %v2864_v33 = vmul.f32 %v6481_v39, %v2832_v3  ;;  %vm2870_vm15 = vweird.f32 %v6481_v39  ;;  %v3021_v3 = vsel %vm127_vm5, %v2972_v58, 0  ;;  %v6295_v36 = vld [vmem:[%s8133_s1 + $0x518] sm:$0xff]  ;;  %v6312_v58 = vld [vmem:[%s8133_s1 + $0x5a0] sm:$0xff] }
 0xc35   :  { %v7457_v23 = vpack.c.bf16 %v7453_v6, %v7451_v40  ;;  %vm2871_vm1 = vmor %vm2869_vm0, %vm2870_vm15 }
 0xc36   :  { %v2865_v49 = vmul.f32 %v6481_v39, %v2864_v33  ;;  %v2862_v44 = vsel %vm2861_vm14, %v6479_v2, %v2858_v11  ;;  %v2973_v2 = vpack.c.b16 %v2957_v0, %v2957_v0  ;;  %v6280_v11 = vld [vmem:[%s8133_s1 + $0x4a0] sm:$0xff]  ;;  %v6286_v33 = vld [vmem:[%s8133_s1 + $0x4d0] sm:$0xff] }
 0xc37   :  { %5590 = vmatmul.msk.bf16.vlgmr.msra.gmra.mxu2 %vm120_vm6, %v7457_v23  ;;  %5592 = vmatmul.msk.bf16.vlgmr.msrb.gmra.mxu3 %vm120_vm6, %v7457_v23  ;;  %v2875_v22 = vmul.f32 %v2862_v44, %v7408_v42  ;;  %v2893_v42 = vld [vmem:[%s8135_s2 + $0x60] sm:$0xff]  ;;  %v6271_v44 = vld [vmem:[%s8133_s1 + $0x458] sm:$0xff] }
 0xc38   :  { %v2866_v26 = vmul.f32 0.5, %v2865_v49  ;;  %5594 = vmatmul.msk.bf16.vlgmr.msrb.gmra.mxu0 %vm120_vm6, %v7457_v23  ;;  %5596 = vmatmul.msk.bf16.vlgmr.msrb.gmra.mxu1 %vm120_vm6, %v7457_v23  ;;  %v2951_v28 = vunpack.c.l.b16 %v2893_v42  ;;  %v2952_v55 = vunpack.c.h.b16 %v2893_v42  ;;  %v3024_v14 = vsel %vm127_vm5, %v2973_v2, 0  ;;  %v6294_v49 = vld [vmem:[%s8133_s1 + $0x510] sm:$0xff]  ;;  %v6323_v42 = vld [vmem:[%s8133_s1 + $0x5f8] sm:$0xff] }
 0xc39   :  { %v2880_v50 = vmul.f32 %v6416_v4, %v2875_v22  ;;  %v6270_v22 = vld [vmem:[%s8133_s1 + $0x450] sm:$0xff] }
 0xc3a   :  { %v2867_v27 = vsub.f32 1.5, %v2866_v26  ;;  %v2967_v41 = vpack.c.b16 %v2951_v28, %v2951_v28  ;;  %v2968_v1 = vpack.c.b16 %v2952_v55, %v2952_v55  ;;  %v6279_v26 = vld [vmem:[%s8133_s1 + $0x498] sm:$0xff]  ;;  %v6268_v28 = vld [vmem:[%s8133_s1 + $0x440] sm:$0xff]  ;;  %v6318_v2 = vld [vmem:[%s8133_s1 + $0x5d0] sm:$0xff] }
 0xc3b   :  { %v7469_v54 = vadd.f32 %v6417_v24, %v2880_v50  ;;  %v6292_v50 = vld [vmem:[%s8133_s1 + $0x500] sm:$0xff] }
 0xc3c   :  { %v2868_v46 = vmul.f32 %v6481_v39, %v2867_v27  ;;  %v3006_v60 = vsel %vm127_vm5, %v2967_v41, 0  ;;  %v3009_v8 = vsel %vm127_vm5, %v2968_v1, 0  ;;  %v6285_v27 = vld [vmem:[%s8133_s1 + $0x4c8] sm:$0xff]  ;;  %v6276_v55 = vld [vmem:[%s8133_s1 + $0x480] sm:$0xff]  ;;  %v6307_v41 = vld [vmem:[%s8133_s1 + $0x578] sm:$0xff] }
 0xc3d   :  { %3188 = vmatpush.bf16.msra.mxu2 %v3006_v60  ;;  %3207 = vmatpush.bf16.msrb.mxu3 %v3009_v8  ;;  %v6315_v1 = vld [vmem:[%s8133_s1 + $0x5b8] sm:$0xff]  ;;  %v6314_v60 = vld [vmem:[%s8133_s1 + $0x5b0] sm:$0xff]  ;;  %v6320_v8 = vld [vmem:[%s8133_s1 + $0x5e0] sm:$0xff] }
 0xc3e   :  { %v2872_v43 = vsel %vm2871_vm1, %v6481_v39, %v2868_v46  ;;  %v6272_v39 = vld [vmem:[%s8133_s1 + $0x460] sm:$0xff]  ;;  %v6278_v46 = vld [vmem:[%s8133_s1 + $0x490] sm:$0xff] }
 0xc3f   :  { %v2876_v30 = vmul.f32 %v2872_v43, %v7414_v59  ;;  %v2894_v59 = vld [vmem:[%s8135_s2 + $0x68] sm:$0xff]  ;;  %v6284_v43 = vld [vmem:[%s8133_s1 + $0x4c0] sm:$0xff] }
 0xc40   :  { %v2953_v37 = vunpack.c.l.b16 %v2894_v59  ;;  %v2954_v56 = vunpack.c.h.b16 %v2894_v59  ;;  %v6331_v59 = vld [vmem:[%s8133_s1 + $0x638] sm:$0xff] }
 0xc41   :  { %v2881_v45 = vmul.f32 %v6416_v4, %v2876_v30  ;;  %v2974_v4 = vpack.c.b16 %v2958_v31, %v2958_v31  ;;  %v6269_v30 = vld [vmem:[%s8133_s1 + $0x448] sm:$0xff] }
 0xc42   :  { %v2969_v29 = vpack.c.b16 %v2953_v37, %v2953_v37  ;;  %v2970_v38 = vpack.c.b16 %v2954_v56, %v2954_v56  ;;  %v6322_v37 = vld [vmem:[%s8133_s1 + $0x5f0] sm:$0xff] }
 0xc43   :  { %v7471_v53 = vadd.f32 %v6417_v24, %v2881_v45  ;;  %v3027_v18 = vsel %vm127_vm5, %v2974_v4, 0  ;;  %v6282_v24 = vld [vmem:[%s8133_s1 + $0x4b0] sm:$0xff]  ;;  %v6277_v45 = vld [vmem:[%s8133_s1 + $0x488] sm:$0xff] }
 0xc44   :  { %v3012_v51 = vsel %vm127_vm5, %v2969_v29, 0  ;;  %v3015_v62 = vsel %vm127_vm5, %v2970_v38, 0  ;;  %v6330_v56 = vld [vmem:[%s8133_s1 + $0x630] sm:$0xff]  ;;  %v6321_v29 = vld [vmem:[%s8133_s1 + $0x5e8] sm:$0xff] }
 0xc45   :  { %v7475_v47 = vpack.c.bf16 %v7471_v53, %v7469_v54  ;;  %3226 = vmatpush.bf16.msrb.mxu0 %v3012_v51  ;;  %3245 = vmatpush.bf16.msrb.mxu1 %v3015_v62  ;;  %v6306_v38 = vld [vmem:[%s8133_s1 + $0x570] sm:$0xff]  ;;  %v6328_v51 = vld [vmem:[%s8133_s1 + $0x620] sm:$0xff]  ;;  %v6305_v62 = vld [vmem:[%s8133_s1 + $0x568] sm:$0xff] }
 0xc46   :  { %v6326_v4 = vld [vmem:[%s8133_s1 + $0x610] sm:$0xff] }
 0xc47   :  { %5591 = vmatmul.msk.bf16.gmra.mxu2 %vm120_vm6, %v7475_v47  ;;  %5593 = vmatmul.msk.bf16.gmra.mxu3 %vm120_vm6, %v7475_v47 }
 0xc48   :  { %5595 = vmatmul.msk.bf16.gmra.mxu0 %vm120_vm6, %v7475_v47  ;;  %5597 = vmatmul.msk.bf16.gmra.mxu1 %vm120_vm6, %v7475_v47 }
 0xc57   :  { %5598 = vmatmul.msk.bf16.vlgmr.msrb.gmra.mxu2 %vm120_vm6, %v7457_v23  ;;  %5600 = vmatmul.msk.bf16.vlgmr.msra.gmra.mxu3 %vm120_vm6, %v7457_v23 }
 0xc58   :  { %5602 = vmatmul.msk.bf16.vlgmr.msra.gmra.mxu0 %vm120_vm6, %v7457_v23  ;;  %5604 = vmatmul.msk.bf16.vlgmr.msra.gmra.mxu1 %vm120_vm6, %v7457_v23 }
 0xc59   :  { %3264 = vmatpush.bf16.msrb.mxu2 %v3018_v7  ;;  %3283 = vmatpush.bf16.msra.mxu3 %v3021_v3  ;;  %v7715_v7 = vperm.slane %v7700_v12, 2  ;;  %v7718_v3 = vperm.slane %v7700_v12, 3 }
 0xc5a   :  { %3302 = vmatpush.bf16.msra.mxu0 %v3024_v14  ;;  %3321 = vmatpush.bf16.msra.mxu1 %v3027_v18  ;;  %v6303_v14 = vld [vmem:[%s8133_s1 + $0x558] sm:$0xff] }
 0xc5b   :  { %v6311_v18 = vld [vmem:[%s8133_s1 + $0x598] sm:$0xff] }
 0xc67   :  { %5599 = vmatmul.msk.bf16.gmra.mxu2 %vm120_vm6, %v7475_v47  ;;  %5601 = vmatmul.msk.bf16.gmra.mxu3 %vm120_vm6, %v7475_v47 }
 0xc68   :  { %5603 = vmatmul.msk.bf16.gmra.mxu0 %vm120_vm6, %v7475_v47  ;;  %5605 = vmatmul.msk.bf16.gmra.mxu1 %vm120_vm6, %v7475_v47 }
 0xc77   :  { %5606 = vmatmul.msk.bf16.vlgmr.msra.gmra.mxu2 %vm120_vm6, %v7457_v23  ;;  %5608 = vmatmul.msk.bf16.vlgmr.msrb.gmra.mxu3 %vm120_vm6, %v7457_v23 }
 0xc78   :  { %5610 = vmatmul.msk.bf16.vlgmr.msrb.gmra.mxu0 %vm120_vm6, %v7457_v23  ;;  %5612 = vmatmul.msk.bf16.vlgmr.msrb.gmra.mxu1 %vm120_vm6, %v7457_v23 }
 0xc79   :  { %4492 = vmatpush.bf16.msrb.mxu0 %v6291_v48  ;;  %4511 = vmatpush.bf16.msrb.mxu1 %v6299_v19 }
 0xc7a   :  { %4454 = vmatpush.bf16.msra.mxu2 %v6275_v57  ;;  %4473 = vmatpush.bf16.msrb.mxu3 %v6283_v15 }
 0xc7d   :  { %4493 = vmatpush.bf16.msrb.mxu0 %v6290_v20  ;;  %4512 = vmatpush.bf16.msrb.mxu1 %v6298_v21  ;;  %v6317_v20 = vld [vmem:[%s8133_s1 + $0x5c8] sm:$0xff] }
 0xc7e   :  { %4455 = vmatpush.bf16.msra.mxu2 %v6274_v32  ;;  %4474 = vmatpush.bf16.msrb.mxu3 %v6282_v24  ;;  %v6325_v21 = vld [vmem:[%s8133_s1 + $0x608] sm:$0xff] }
 0xc81   :  { %4494 = vmatpush.bf16.msrb.mxu0 %v6289_v5  ;;  %4513 = vmatpush.bf16.msrb.mxu1 %v6297_v13  ;;  %v7735_v5 = vperm.slane %v7700_v12, 0  ;;  %v7738_v13 = vperm.slane %v7700_v12, 1 }
 0xc82   :  { %4456 = vmatpush.bf16.msra.mxu2 %v6273_v35  ;;  %4475 = vmatpush.bf16.msrb.mxu3 %v6281_v17 }
 0xc85   :  { %4495 = vmatpush.bf16.msrb.mxu0 %v6288_v25  ;;  %4514 = vmatpush.bf16.msrb.mxu1 %v6296_v34  ;;  %v6302_v25 = vld [vmem:[%s8133_s1 + $0x550] sm:$0xff] }
 0xc86   :  { %4457 = vmatpush.bf16.msra.mxu2 %v6272_v39  ;;  %4476 = vmatpush.bf16.msrb.mxu3 %v6280_v11  ;;  %v6310_v34 = vld [vmem:[%s8133_s1 + $0x590] sm:$0xff] }
 0xc87   :  { %5607 = vmatmul.msk.bf16.gmra.mxu2 %vm120_vm6, %v7475_v47  ;;  %5609 = vmatmul.msk.bf16.gmra.mxu3 %vm120_vm6, %v7475_v47 }
 0xc88   :  { %5611 = vmatmul.msk.bf16.gmra.mxu0 %vm120_vm6, %v7475_v47  ;;  %5613 = vmatmul.msk.bf16.gmra.mxu1 %vm120_vm6, %v7475_v47 }
 0xc89   :  { %4496 = vmatpush.bf16.msrb.mxu0 %v6287_v16  ;;  %4515 = vmatpush.bf16.msrb.mxu1 %v6295_v36  ;;  %v6316_v16 = vld [vmem:[%s8133_s1 + $0x5c0] sm:$0xff] }
 0xc8a   :  { %4458 = vmatpush.bf16.msra.mxu2 %v6271_v44  ;;  %4477 = vmatpush.bf16.msrb.mxu3 %v6279_v26  ;;  %v6324_v36 = vld [vmem:[%s8133_s1 + $0x600] sm:$0xff] }
 0xc8d   :  { %4497 = vmatpush.bf16.msrb.mxu0 %v6286_v33  ;;  %4516 = vmatpush.bf16.msrb.mxu1 %v6294_v49 }
 0xc8e   :  { %4459 = vmatpush.bf16.msra.mxu2 %v6270_v22  ;;  %4478 = vmatpush.bf16.msrb.mxu3 %v6278_v46 }
 0xc91   :  { %4498 = vmatpush.bf16.msrb.mxu0 %v6285_v27  ;;  %v6301_v27 = vld [vmem:[%s8133_s1 + $0x548] sm:$0xff] }
 0xc92   :  { %4460 = vmatpush.bf16.msra.mxu2 %v6269_v30  ;;  %4479 = vmatpush.bf16.msrb.mxu3 %v6277_v45 }
 0xc95   :  { %4499 = vmatpush.bf16.msrb.mxu0 %v6284_v43 }
 0xc96   :  { %4461 = vmatpush.bf16.msra.mxu2 %v6268_v28  ;;  %4480 = vmatpush.bf16.msrb.mxu3 %v6276_v55 }
 0xc97   :  { %5614 = vmatmul.msk.bf16.vlgmr.msrb.gmra.mxu2 %vm120_vm6, %v7457_v23  ;;  %5616 = vmatmul.msk.bf16.vlgmr.msra.gmra.mxu3 %vm120_vm6, %v7457_v23 }
 0xc98   :  { %5618 = vmatmul.msk.bf16.vlgmr.msra.gmra.mxu0 %vm120_vm6, %v7457_v23  ;;  %5620 = vmatmul.msk.bf16.vlgmr.msra.gmra.mxu1 %vm120_vm6, %v7457_v23  ;;  %v6293_v23 = vld [vmem:[%s8133_s1 + $0x508] sm:$0xff] }
 0xc99   :  { %4517 = vmatpush.bf16.msrb.mxu1 %v6293_v23  ;;  %4568 = vmatpush.bf16.msra.mxu0 %v6323_v42  ;;  %v6309_v23 = vld [vmem:[%s8133_s1 + $0x588] sm:$0xff]  ;;  %v6355_v42 = vld [vmem:[%s8133_s1 + $0x6f8] sm:$0xff] }
 0xc9a   :  { %4530 = vmatpush.bf16.msrb.mxu2 %v6307_v41  ;;  %4549 = vmatpush.bf16.msra.mxu3 %v6315_v1 }
 0xc9d   :  { %4518 = vmatpush.bf16.msrb.mxu1 %v6292_v50  ;;  %4569 = vmatpush.bf16.msra.mxu0 %v6322_v37 }
 0xc9e   :  { %4531 = vmatpush.bf16.msrb.mxu2 %v6306_v38  ;;  %4550 = vmatpush.bf16.msra.mxu3 %v6314_v60 }
 0xca1   :  { %4587 = vmatpush.bf16.msra.mxu1 %v6331_v59  ;;  %4570 = vmatpush.bf16.msra.mxu0 %v6321_v29  ;;  %v6363_v59 = vld [vmem:[%s8133_s1 + $0x738] sm:$0xff]  ;;  %v6300_v29 = vld [vmem:[%s8133_s1 + $0x540] sm:$0xff] }
 0xca2   :  { %4532 = vmatpush.bf16.msrb.mxu2 %v6305_v62  ;;  %4551 = vmatpush.bf16.msra.mxu3 %v6313_v9  ;;  %v6339_v62 = vld [vmem:[%s8133_s1 + $0x678] sm:$0xff] }
 0xca3   :  { %v6347_v9 = vld [vmem:[%s8133_s1 + $0x6b8] sm:$0xff] }
 0xca5   :  { %4588 = vmatpush.bf16.msra.mxu1 %v6330_v56  ;;  %4571 = vmatpush.bf16.msra.mxu0 %v6320_v8  ;;  %v6354_v8 = vld [vmem:[%s8133_s1 + $0x6f0] sm:$0xff] }
 0xca6   :  { %4533 = vmatpush.bf16.msrb.mxu2 %v6304_v63  ;;  %4552 = vmatpush.bf16.msra.mxu3 %v6312_v58 }
 0xca7   :  { %5615 = vmatmul.msk.bf16.gmra.mxu2 %vm120_vm6, %v7475_v47  ;;  %5617 = vmatmul.msk.bf16.gmra.mxu3 %vm120_vm6, %v7475_v47 }
 0xca8   :  { %5619 = vmatmul.msk.bf16.gmra.mxu0 %vm120_vm6, %v7475_v47  ;;  %5621 = vmatmul.msk.bf16.gmra.mxu1 %vm120_vm6, %v7475_v47  ;;  %v6329_v47 = vld [vmem:[%s8133_s1 + $0x628] sm:$0xff] }
 0xca9   :  { %4589 = vmatpush.bf16.msra.mxu1 %v6329_v47  ;;  %4572 = vmatpush.bf16.msra.mxu0 %v6319_v10  ;;  %v6308_v47 = vld [vmem:[%s8133_s1 + $0x580] sm:$0xff] }
 0xcaa   :  { %4534 = vmatpush.bf16.msrb.mxu2 %v6303_v14  ;;  %4553 = vmatpush.bf16.msra.mxu3 %v6311_v18  ;;  %v6338_v14 = vld [vmem:[%s8133_s1 + $0x670] sm:$0xff] }
 0xcab   :  { %v6346_v18 = vld [vmem:[%s8133_s1 + $0x6b0] sm:$0xff] }
 0xcad   :  { %4590 = vmatpush.bf16.msra.mxu1 %v6328_v51  ;;  %4573 = vmatpush.bf16.msra.mxu0 %v6318_v2  ;;  %v6362_v51 = vld [vmem:[%s8133_s1 + $0x730] sm:$0xff] }
 0xcae   :  { %4535 = vmatpush.bf16.msrb.mxu2 %v6302_v25  ;;  %4554 = vmatpush.bf16.msra.mxu3 %v6310_v34  ;;  %v6337_v25 = vld [vmem:[%s8133_s1 + $0x668] sm:$0xff] }
 0xcaf   :  { %v6345_v34 = vld [vmem:[%s8133_s1 + $0x6a8] sm:$0xff] }
 0xcb1   :  { %4591 = vmatpush.bf16.msra.mxu1 %v6327_v61  ;;  %4574 = vmatpush.bf16.msra.mxu0 %v6317_v20  ;;  %v6352_v20 = vld [vmem:[%s8133_s1 + $0x6e0] sm:$0xff] }
 0xcb2   :  { %4536 = vmatpush.bf16.msrb.mxu2 %v6301_v27  ;;  %4555 = vmatpush.bf16.msra.mxu3 %v6309_v23 }
 0xcb5   :  { %v3076_v0 = vpop.f32.mrf.mxu0  ;;  %v3095_v31 = vpop.f32.mrf.mxu1  ;;  %4592 = vmatpush.bf16.msra.mxu1 %v6326_v4  ;;  %4575 = vmatpush.bf16.msra.mxu0 %v6316_v16 }
 0xcb6   :  { %v3077_v57 = vadd.f32 %v3076_v0, %v7715_v7  ;;  %v3096_v15 = vadd.f32 %v3095_v31, %v7718_v3  ;;  %4537 = vmatpush.bf16.msrb.mxu2 %v6300_v29  ;;  %4556 = vmatpush.bf16.msra.mxu3 %v6308_v47  ;;  %v6353_v0 = vld [vmem:[%s8133_s1 + $0x6e8] sm:$0xff] }
 0xcb7   :  { %v6361_v31 = vld [vmem:[%s8133_s1 + $0x728] sm:$0xff] }
 0xcb8   :  { %v3335_v39 = vmax.f32 %v3077_v57, 0.0  ;;  %v3336_v11 = vmax.f32 %v3096_v15, 0.0 }
 0xcb9   :  { %4593 = vmatpush.bf16.msra.mxu1 %v6325_v21  ;;  %v6360_v21 = vld [vmem:[%s8133_s1 + $0x720] sm:$0xff] }
 0xcba   :  { %v3038_v48 = vpop.f32.mrf.mxu2  ;;  %v3057_v19 = vpop.f32.mrf.mxu3 }
 0xcbb   :  { %v3039_v44 = vadd.f32 %v3038_v48, %v7735_v5  ;;  %v3058_v26 = vadd.f32 %v3057_v19, %v7738_v13 }
 0xcbd   :  { %v3078_v32 = vpop.f32.mrf.mxu0  ;;  %v3097_v24 = vpop.f32.mrf.mxu1  ;;  %4594 = vmatpush.bf16.msra.mxu1 %v6324_v36  ;;  %v3333_v28 = vmax.f32 %v3039_v44, 0.0  ;;  %v3334_v55 = vmax.f32 %v3058_v26, 0.0 }
 0xcbe   :  { %v3079_v35 = vadd.f32 %v3078_v32, %v7715_v7  ;;  %v3098_v17 = vadd.f32 %v3097_v24, %v7718_v3 }
 0xcc0   :  { %v3351_v33 = vmax.f32 %v3079_v35, 0.0  ;;  %v3352_v49 = vmax.f32 %v3098_v17, 0.0 }
 0xcc2   :  { %v3399_v22 = vpack.c.bf16 %v3351_v33, %v3335_v39  ;;  %v3400_v46 = vpack.c.bf16 %v3352_v49, %v3336_v11  ;;  %v3040_v43 = vpop.f32.mrf.mxu2  ;;  %v3059_v50 = vpop.f32.mrf.mxu3  ;;  %v6351_v33 = vld [vmem:[%s8133_s1 + $0x6d8] sm:$0xff] }
 0xcc3   :  { %v3041_v30 = vadd.f32 %v3040_v43, %v7735_v5  ;;  %v3060_v45 = vadd.f32 %v3059_v50, %v7738_v13  ;;  %v6359_v49 = vld [vmem:[%s8133_s1 + $0x718] sm:$0xff] }
 0xcc4   :  { %4500 = vmatmul.bf16.vlgmr.msrb.gmra.mxu0 %v3399_v22  ;;  %4519 = vmatmul.bf16.vlgmr.msrb.gmra.mxu1 %v3400_v46  ;;  %v6344_v46 = vld [vmem:[%s8133_s1 + $0x6a0] sm:$0xff] }
 0xcc5   :  { %v3349_v37 = vmax.f32 %v3041_v30, 0.0  ;;  %v3350_v56 = vmax.f32 %v3060_v45, 0.0  ;;  %v3081_v41 = vpop.f32.mrf.mxu0  ;;  %v3100_v1 = vpop.f32.mrf.mxu1  ;;  %4644 = vmatpush.bf16.msrb.mxu0 %v6355_v42  ;;  %4663 = vmatpush.bf16.msrb.mxu1 %v6363_v59  ;;  %v6350_v30 = vld [vmem:[%s8133_s1 + $0x6d0] sm:$0xff]  ;;  %v7839_v42 = vperm.slane %v7700_v12, 6  ;;  %v7842_v59 = vperm.slane %v7700_v12, 7 }
 0xcc6   :  { %v3082_v63 = vadd.f32 %v3081_v41, %v7715_v7  ;;  %v3101_v58 = vadd.f32 %v3100_v1, %v7718_v3  ;;  %v6358_v45 = vld [vmem:[%s8133_s1 + $0x710] sm:$0xff]  ;;  %v6349_v41 = vld [vmem:[%s8133_s1 + $0x6c8] sm:$0xff] }
 0xcc7   :  { %v3397_v38 = vpack.c.bf16 %v3349_v37, %v3333_v28  ;;  %v3398_v60 = vpack.c.bf16 %v3350_v56, %v3334_v55  ;;  %v6335_v28 = vld [vmem:[%s8133_s1 + $0x658] sm:$0xff]  ;;  %v6357_v1 = vld [vmem:[%s8133_s1 + $0x708] sm:$0xff] }
 0xcc8   :  { %v3367_v57 = vmax.f32 %v3082_v63, 0.0  ;;  %v3368_v15 = vmax.f32 %v3101_v58, 0.0  ;;  %v6343_v55 = vld [vmem:[%s8133_s1 + $0x698] sm:$0xff] }
 0xcc9   :  { %4462 = vmatmul.bf16.vlgmr.msra.gmra.mxu2 %v3397_v38  ;;  %4481 = vmatmul.bf16.vlgmr.msrb.gmra.mxu3 %v3398_v60  ;;  %v7859_v38 = vperm.slane %v7700_v12, 4  ;;  %v7862_v60 = vperm.slane %v7700_v12, 5  ;;  %v6348_v12 = vld [vmem:[%s8133_s1 + $0x6c0] sm:$0xff] }
 0xcca   :  { %v3043_v10 = vpop.f32.mrf.mxu2  ;;  %v3062_v61 = vpop.f32.mrf.mxu3  ;;  %4645 = vmatpush.bf16.msrb.mxu0 %v6354_v8  ;;  %4664 = vmatpush.bf16.msrb.mxu1 %v6362_v51 }
 0xccb   :  { %4606 = vmatpush.bf16.msra.mxu2 %v6339_v62  ;;  %4625 = vmatpush.bf16.msrb.mxu3 %v6347_v9  ;;  %v6334_v62 = vld [vmem:[%s8133_s1 + $0x650] sm:$0xff] }
 0xccc   :  { %v6342_v9 = vld [vmem:[%s8133_s1 + $0x690] sm:$0xff] }
 0xccd   :  { %v3083_v2 = vpop.f32.mrf.mxu0  ;;  %v3102_v4 = vpop.f32.mrf.mxu1 }
 0xcce   :  { %v3084_v48 = vadd.f32 %v3083_v2, %v7715_v7  ;;  %v3103_v19 = vadd.f32 %v3102_v4, %v7718_v3  ;;  %4646 = vmatpush.bf16.msrb.mxu0 %v6353_v0  ;;  %4665 = vmatpush.bf16.msrb.mxu1 %v6361_v31  ;;  %v3044_v7 = vadd.f32 %v3043_v10, %v7735_v5  ;;  %v6356_v0 = vld [vmem:[%s8133_s1 + $0x700] sm:$0xff] }
 0xccf   :  { %4607 = vmatpush.bf16.msra.mxu2 %v6338_v14  ;;  %4626 = vmatpush.bf16.msrb.mxu3 %v6346_v18  ;;  %v3063_v3 = vadd.f32 %v3062_v61, %v7738_v13  ;;  %v6333_v18 = vld [vmem:[%s8133_s1 + $0x648] sm:$0xff] }
 0xcd0   :  { %v3383_v32 = vmax.f32 %v3084_v48, 0.0  ;;  %v3384_v24 = vmax.f32 %v3103_v19, 0.0  ;;  %v3365_v44 = vmax.f32 %v3044_v7, 0.0  ;;  %v6341_v48 = vld [vmem:[%s8133_s1 + $0x688] sm:$0xff]  ;;  %v6395_v7 = vld [vmem:[%s8133_s1 + $0x838] sm:$0xff] }
 0xcd1   :  { %v3366_v26 = vmax.f32 %v3063_v3, 0.0 }
 0xcd2   :  { %v3045_v35 = vpop.f32.mrf.mxu2  ;;  %v3064_v17 = vpop.f32.mrf.mxu3  ;;  %v3415_v16 = vpack.c.bf16 %v3383_v32, %v3367_v57  ;;  %v3416_v36 = vpack.c.bf16 %v3384_v24, %v3368_v15  ;;  %4647 = vmatpush.bf16.msrb.mxu0 %v6352_v20  ;;  %4666 = vmatpush.bf16.msrb.mxu1 %v6360_v21  ;;  %v6387_v24 = vld [vmem:[%s8133_s1 + $0x7f8] sm:$0xff] }
 0xcd3   :  { %v3046_v39 = vadd.f32 %v3045_v35, %v7735_v5  ;;  %v3065_v11 = vadd.f32 %v3064_v17, %v7738_v13  ;;  %4608 = vmatpush.bf16.msra.mxu2 %v6337_v25  ;;  %4627 = vmatpush.bf16.msrb.mxu3 %v6345_v34  ;;  %v6336_v13 = vld [vmem:[%s8133_s1 + $0x660] sm:$0xff] }
 0xcd4   :  { %4505 = vmatmul.bf16.gmra.mxu0 %v3415_v16  ;;  %4524 = vmatmul.bf16.gmra.mxu1 %v3416_v36  ;;  %v6332_v36 = vld [vmem:[%s8133_s1 + $0x640] sm:$0xff] }
 0xcd5   :  { %v3381_v27 = vmax.f32 %v3046_v39, 0.0  ;;  %v3382_v23 = vmax.f32 %v3065_v11, 0.0  ;;  %v3152_v22 = vpop.f32.mrf.mxu0  ;;  %v3171_v5 = vpop.f32.mrf.mxu1  ;;  %v6340_v39 = vld [vmem:[%s8133_s1 + $0x680] sm:$0xff] }
 0xcd6   :  { %4648 = vmatpush.bf16.msrb.mxu0 %v6351_v33  ;;  %4667 = vmatpush.bf16.msrb.mxu1 %v6359_v49  ;;  %v3153_v29 = vadd.f32 %v3152_v22, %v7839_v42  ;;  %v3172_v47 = vadd.f32 %v3171_v5, %v7842_v59  ;;  %v6386_v49 = vld [vmem:[%s8133_s1 + $0x7f0] sm:$0xff]  ;;  %v6385_v5 = vld [vmem:[%s8133_s1 + $0x7e8] sm:$0xff] }
 0xcd7   :  { %v3413_v43 = vpack.c.bf16 %v3381_v27, %v3365_v44  ;;  %v3414_v50 = vpack.c.bf16 %v3382_v23, %v3366_v26  ;;  %4609 = vmatpush.bf16.msra.mxu2 %v6336_v13  ;;  %4628 = vmatpush.bf16.msrb.mxu3 %v6344_v46  ;;  %v6394_v44 = vld [vmem:[%s8133_s1 + $0x830] sm:$0xff]  ;;  %v6371_v26 = vld [vmem:[%s8133_s1 + $0x778] sm:$0xff]  ;;  %v6393_v13 = vld [vmem:[%s8133_s1 + $0x828] sm:$0xff] }
 0xcd8   :  { %v3339_v31 = vmax.f32 %v3153_v29, 0.0  ;;  %v3340_v63 = vmax.f32 %v3172_v47, 0.0  ;;  %v6379_v27 = vld [vmem:[%s8133_s1 + $0x7b8] sm:$0xff] }
 0xcd9   :  { %4467 = vmatmul.bf16.gmra.mxu2 %v3413_v43  ;;  %4486 = vmatmul.bf16.gmra.mxu3 %v3414_v50 }
 0xcda   :  { %v3114_v37 = vpop.f32.mrf.mxu2  ;;  %v3133_v56 = vpop.f32.mrf.mxu3  ;;  %4649 = vmatpush.bf16.msrb.mxu0 %v6350_v30  ;;  %4668 = vmatpush.bf16.msrb.mxu1 %v6358_v45  ;;  %v6370_v45 = vld [vmem:[%s8133_s1 + $0x770] sm:$0xff] }
 0xcdb   :  { %4610 = vmatpush.bf16.msra.mxu2 %v6335_v28  ;;  %4629 = vmatpush.bf16.msrb.mxu3 %v6343_v55  ;;  %v3115_v4 = vadd.f32 %v3114_v37, %v7859_v38  ;;  %v3134_v14 = vadd.f32 %v3133_v56, %v7862_v60  ;;  %v6378_v28 = vld [vmem:[%s8133_s1 + $0x7b0] sm:$0xff]  ;;  %v6384_v56 = vld [vmem:[%s8133_s1 + $0x7e0] sm:$0xff] }
 0xcdd   :  { %v3154_v8 = vpop.f32.mrf.mxu0  ;;  %v3173_v51 = vpop.f32.mrf.mxu1  ;;  %v3337_v3 = vmax.f32 %v3115_v4, 0.0  ;;  %v3338_v25 = vmax.f32 %v3134_v14, 0.0 }
 0xcde   :  { %v3155_v10 = vadd.f32 %v3154_v8, %v7839_v42  ;;  %v3174_v61 = vadd.f32 %v3173_v51, %v7842_v59  ;;  %4650 = vmatpush.bf16.msrb.mxu0 %v6349_v41  ;;  %4669 = vmatpush.bf16.msrb.mxu1 %v6357_v1  ;;  %v6392_v41 = vld [vmem:[%s8133_s1 + $0x820] sm:$0xff]  ;;  %v6369_v51 = vld [vmem:[%s8133_s1 + $0x768] sm:$0xff] }
 0xcdf   :  { %4611 = vmatpush.bf16.msra.mxu2 %v6334_v62  ;;  %4630 = vmatpush.bf16.msrb.mxu3 %v6342_v9  ;;  %v6377_v62 = vld [vmem:[%s8133_s1 + $0x7a8] sm:$0xff] }
 0xce0   :  { %v3355_v58 = vmax.f32 %v3155_v10, 0.0  ;;  %v3356_v2 = vmax.f32 %v3174_v61, 0.0 }
 0xce2   :  { %v3403_v19 = vpack.c.bf16 %v3355_v58, %v3339_v31  ;;  %v3404_v20 = vpack.c.bf16 %v3356_v2, %v3340_v63  ;;  %v3116_v21 = vpop.f32.mrf.mxu2  ;;  %v3135_v57 = vpop.f32.mrf.mxu3  ;;  %4651 = vmatpush.bf16.msrb.mxu0 %v6348_v12  ;;  %4670 = vmatpush.bf16.msrb.mxu1 %v6356_v0  ;;  %v6383_v63 = vld [vmem:[%s8133_s1 + $0x7d8] sm:$0xff] }
 0xce3   :  { %v3117_v15 = vadd.f32 %v3116_v21, %v7859_v38  ;;  %v3136_v32 = vadd.f32 %v3135_v57, %v7862_v60  ;;  %4612 = vmatpush.bf16.msra.mxu2 %v6333_v18  ;;  %4631 = vmatpush.bf16.msrb.mxu3 %v6341_v48  ;;  %v6391_v58 = vld [vmem:[%s8133_s1 + $0x818] sm:$0xff] }
 0xce4   :  { %4576 = vmatmul.bf16.vlgmr.msra.gmra.mxu0 %v3403_v19  ;;  %4595 = vmatmul.bf16.vlgmr.msra.gmra.mxu1 %v3404_v20  ;;  %v7953_v2 = vld [vmem:[%s8136_s4 + $0x21] ss:$4 sm:$0xff] }
 0xce5   :  { %v3353_v34 = vmax.f32 %v3117_v15, 0.0  ;;  %v3354_v35 = vmax.f32 %v3136_v32, 0.0  ;;  %v3157_v17 = vpop.f32.mrf.mxu0  ;;  %v3176_v16 = vpop.f32.mrf.mxu1  ;;  %v6368_v19 = vld [vmem:[%s8133_s1 + $0x760] sm:$0xff]  ;;  %v6382_v15 = vld [vmem:[%s8133_s1 + $0x7d0] sm:$0xff] }
 0xce6   :  { %4720 = vmatpush.bf16.msra.mxu0 %v6387_v24  ;;  %4739 = vmatpush.bf16.msra.mxu1 %v6395_v7  ;;  %v3158_v46 = vadd.f32 %v3157_v17, %v7839_v42  ;;  %v3177_v43 = vadd.f32 %v3176_v16, %v7842_v59  ;;  %v6376_v20 = vld [vmem:[%s8133_s1 + $0x7a0] sm:$0xff]  ;;  %v6390_v32 = vld [vmem:[%s8133_s1 + $0x810] sm:$0xff]  ;;  %v7968_v24 = vperm.slane %v7953_v2, 2  ;;  %v7971_v7 = vperm.slane %v7953_v2, 3  ;;  %v6381_v17 = vld [vmem:[%s8133_s1 + $0x7c8] sm:$0xff] }
 0xce7   :  { %v3401_v11 = vpack.c.bf16 %v3353_v34, %v3337_v3  ;;  %v3402_v33 = vpack.c.bf16 %v3354_v35, %v3338_v25  ;;  %4613 = vmatpush.bf16.msra.mxu2 %v6332_v36  ;;  %4632 = vmatpush.bf16.msrb.mxu3 %v6340_v39  ;;  %v6367_v3 = vld [vmem:[%s8133_s1 + $0x758] sm:$0xff]  ;;  %v6389_v16 = vld [vmem:[%s8133_s1 + $0x808] sm:$0xff] }
 0xce8   :  { %v3371_v1 = vmax.f32 %v3158_v46, 0.0  ;;  %v3372_v29 = vmax.f32 %v3177_v43, 0.0  ;;  %v6375_v25 = vld [vmem:[%s8133_s1 + $0x798] sm:$0xff] }
 0xce9   :  { %4538 = vmatmul.bf16.vlgmr.msrb.gmra.mxu2 %v3401_v11  ;;  %4557 = vmatmul.bf16.vlgmr.msra.gmra.mxu3 %v3402_v33  ;;  %v7988_v11 = vperm.slane %v7953_v2, 0  ;;  %v7991_v33 = vperm.slane %v7953_v2, 1 }
 0xcea   :  { %v3119_v23 = vpop.f32.mrf.mxu2  ;;  %v3138_v22 = vpop.f32.mrf.mxu3  ;;  %4721 = vmatpush.bf16.msra.mxu0 %v6386_v49  ;;  %4740 = vmatpush.bf16.msra.mxu1 %v6394_v44 }
 0xceb   :  { %4682 = vmatpush.bf16.msrb.mxu2 %v6371_v26  ;;  %4701 = vmatpush.bf16.msra.mxu3 %v6379_v27  ;;  %v6366_v26 = vld [vmem:[%s8133_s1 + $0x750] sm:$0xff] }
 0xcec   :  { %v6374_v27 = vld [vmem:[%s8133_s1 + $0x790] sm:$0xff] }
 0xced   :  { %v3159_v50 = vpop.f32.mrf.mxu0  ;;  %v3178_v30 = vpop.f32.mrf.mxu1 }
 0xcee   :  { %v3160_v55 = vadd.f32 %v3159_v50, %v7839_v42  ;;  %v3179_v37 = vadd.f32 %v3178_v30, %v7842_v59  ;;  %4722 = vmatpush.bf16.msra.mxu0 %v6385_v5  ;;  %4741 = vmatpush.bf16.msra.mxu1 %v6393_v13  ;;  %v3120_v42 = vadd.f32 %v3119_v23, %v7859_v38  ;;  %v6380_v5 = vld [vmem:[%s8133_s1 + $0x7c0] sm:$0xff] }
 0xcef   :  { %4683 = vmatpush.bf16.msrb.mxu2 %v6370_v45  ;;  %4702 = vmatpush.bf16.msra.mxu3 %v6378_v28  ;;  %v3139_v59 = vadd.f32 %v3138_v22, %v7862_v60  ;;  %v6388_v13 = vld [vmem:[%s8133_s1 + $0x800] sm:$0xff] }
 0xcf0   :  { %v3387_v47 = vmax.f32 %v3160_v55, 0.0  ;;  %v3388_v8 = vmax.f32 %v3179_v37, 0.0  ;;  %v6365_v55 = vld [vmem:[%s8133_s1 + $0x748] sm:$0xff] }
 0xcf1   :  { %v3370_v4 = vmax.f32 %v3139_v59, 0.0  ;;  %v6373_v37 = vld [vmem:[%s8133_s1 + $0x788] sm:$0xff] }
 0xcf2   :  { %v3121_v9 = vpop.f32.mrf.mxu2  ;;  %v3140_v10 = vpop.f32.mrf.mxu3  ;;  %v3419_v61 = vpack.c.bf16 %v3387_v47, %v3371_v1  ;;  %v3420_v12 = vpack.c.bf16 %v3388_v8, %v3372_v29  ;;  %4723 = vmatpush.bf16.msra.mxu0 %v6384_v56  ;;  %4742 = vmatpush.bf16.msra.mxu1 %v6392_v41 }
 0xcf3   :  { %v3122_v0 = vadd.f32 %v3121_v9, %v7859_v38  ;;  %v3141_v31 = vadd.f32 %v3140_v10, %v7862_v60  ;;  %4684 = vmatpush.bf16.msrb.mxu2 %v6369_v51  ;;  %4703 = vmatpush.bf16.msra.mxu3 %v6377_v62  ;;  %v3369_v38 = vmax.f32 %v3120_v42, 0.0 }
 0xcf4   :  { %4581 = vmatmul.bf16.gmra.mxu0 %v3419_v61  ;;  %4600 = vmatmul.bf16.gmra.mxu1 %v3420_v12  ;;  %v6364_v61 = vld [vmem:[%s8133_s1 + $0x740] sm:$0xff] }
 0xcf5   :  { %v3385_v60 = vmax.f32 %v3122_v0, 0.0  ;;  %v3386_v14 = vmax.f32 %v3141_v31, 0.0  ;;  %v3228_v18 = vpop.f32.mrf.mxu0  ;;  %v3247_v48 = vpop.f32.mrf.mxu1  ;;  %v6372_v12 = vld [vmem:[%s8133_s1 + $0x780] sm:$0xff] }
 0xcf6   :  { %4724 = vmatpush.bf16.msra.mxu0 %v6383_v63  ;;  %4743 = vmatpush.bf16.msra.mxu1 %v6391_v58  ;;  %v3229_v36 = vadd.f32 %v3228_v18, %v7968_v24  ;;  %v3248_v39 = vadd.f32 %v3247_v48, %v7971_v7 }
 0xcf7   :  { %v3417_v21 = vpack.c.bf16 %v3385_v60, %v3369_v38  ;;  %v3418_v57 = vpack.c.bf16 %v3386_v14, %v3370_v4  ;;  %4685 = vmatpush.bf16.msrb.mxu2 %v6368_v19  ;;  %4704 = vmatpush.bf16.msra.mxu3 %v6376_v20 }
 0xcf8   :  { %v3343_v46 = vmax.f32 %v3229_v36, 0.0  ;;  %v3344_v43 = vmax.f32 %v3248_v39, 0.0 }
 0xcf9   :  { %4543 = vmatmul.bf16.gmra.mxu2 %v3417_v21  ;;  %4562 = vmatmul.bf16.gmra.mxu3 %v3418_v57 }
 0xcfa   :  { %v3190_v34 = vpop.f32.mrf.mxu2  ;;  %v3209_v35 = vpop.f32.mrf.mxu3  ;;  %4725 = vmatpush.bf16.msra.mxu0 %v6382_v15  ;;  %4744 = vmatpush.bf16.msra.mxu1 %v6390_v32 }
 0xcfb   :  { %4686 = vmatpush.bf16.msrb.mxu2 %v6367_v3  ;;  %4705 = vmatpush.bf16.msra.mxu3 %v6375_v25  ;;  %v3191_v45 = vadd.f32 %v3190_v34, %v7988_v11  ;;  %v3210_v28 = vadd.f32 %v3209_v35, %v7991_v33 }
 0xcfd   :  { %v3230_v49 = vpop.f32.mrf.mxu0  ;;  %v3249_v44 = vpop.f32.mrf.mxu1  ;;  %v3341_v42 = vmax.f32 %v3191_v45, 0.0  ;;  %v3342_v59 = vmax.f32 %v3210_v28, 0.0 }
 0xcfe   :  { %v3231_v23 = vadd.f32 %v3230_v49, %v7968_v24  ;;  %v3250_v22 = vadd.f32 %v3249_v44, %v7971_v7  ;;  %4726 = vmatpush.bf16.msra.mxu0 %v6381_v17  ;;  %4745 = vmatpush.bf16.msra.mxu1 %v6389_v16 }
 0xcff   :  { %4687 = vmatpush.bf16.msrb.mxu2 %v6366_v26  ;;  %4706 = vmatpush.bf16.msra.mxu3 %v6374_v27 }
 0xd00   :  { %v3359_v50 = vmax.f32 %v3231_v23, 0.0  ;;  %v3360_v30 = vmax.f32 %v3250_v22, 0.0  ;;  %v2917_v23 = vperm.slane %v7953_v2, 6  ;;  %v2918_v22 = vperm.slane %v7953_v2, 7 }
 0xd02   :  { %v3407_v56 = vpack.c.bf16 %v3359_v50, %v3343_v46  ;;  %v3408_v41 = vpack.c.bf16 %v3360_v30, %v3344_v43  ;;  %v3192_v1 = vpop.f32.mrf.mxu2  ;;  %v3211_v29 = vpop.f32.mrf.mxu3  ;;  %4727 = vmatpush.bf16.msra.mxu0 %v6380_v5  ;;  %4746 = vmatpush.bf16.msra.mxu1 %v6388_v13  ;;  %v2915_v46 = vperm.slane %v7953_v2, 4  ;;  %v2916_v43 = vperm.slane %v7953_v2, 5 }
 0xd03   :  { %v3193_v47 = vadd.f32 %v3192_v1, %v7988_v11  ;;  %v3212_v8 = vadd.f32 %v3211_v29, %v7991_v33  ;;  %4688 = vmatpush.bf16.msrb.mxu2 %v6365_v55  ;;  %4707 = vmatpush.bf16.msra.mxu3 %v6373_v37 }
 0xd04   :  { %4652 = vmatmul.bf16.vlgmr.msrb.gmra.mxu0 %v3407_v56  ;;  %4671 = vmatmul.bf16.vlgmr.msrb.gmra.mxu1 %v3408_v41 }
 0xd05   :  { %v3357_v51 = vmax.f32 %v3193_v47, 0.0  ;;  %v3358_v62 = vmax.f32 %v3212_v8, 0.0  ;;  %v3233_v9 = vpop.f32.mrf.mxu0  ;;  %v3252_v10 = vpop.f32.mrf.mxu1 }
 0xd06   :  { %v3234_v38 = vadd.f32 %v3233_v9, %v7968_v24  ;;  %v3253_v4 = vadd.f32 %v3252_v10, %v7971_v7 }
 0xd07   :  { %v3405_v0 = vpack.c.bf16 %v3357_v51, %v3341_v42  ;;  %v3406_v31 = vpack.c.bf16 %v3358_v62, %v3342_v59  ;;  %4689 = vmatpush.bf16.msrb.mxu2 %v6364_v61  ;;  %4708 = vmatpush.bf16.msra.mxu3 %v6372_v12 }
 0xd08   :  { %v3375_v19 = vmax.f32 %v3234_v38, 0.0  ;;  %v3376_v20 = vmax.f32 %v3253_v4, 0.0 }
 0xd09   :  { %4614 = vmatmul.bf16.vlgmr.msra.gmra.mxu2 %v3405_v0  ;;  %4633 = vmatmul.bf16.vlgmr.msrb.gmra.mxu3 %v3406_v31 }
 0xd0a   :  { %v3195_v63 = vpop.f32.mrf.mxu2  ;;  %v3214_v58 = vpop.f32.mrf.mxu3 }
 0xd0b   :  { %v3196_v15 = vadd.f32 %v3195_v63, %v7988_v11  ;;  %v3215_v32 = vadd.f32 %v3214_v58, %v7991_v33 }
 0xd0d   :  { %v3235_v60 = vpop.f32.mrf.mxu0  ;;  %v3254_v14 = vpop.f32.mrf.mxu1 }
 0xd0e   :  { %v3236_v18 = vadd.f32 %v3235_v60, %v7968_v24  ;;  %v3255_v48 = vadd.f32 %v3254_v14, %v7971_v7  ;;  %v3373_v24 = vmax.f32 %v3196_v15, 0.0  ;;  %v3374_v7 = vmax.f32 %v3215_v32, 0.0 }
 0xd10   :  { %v3391_v21 = vmax.f32 %v3236_v18, 0.0  ;;  %v3392_v57 = vmax.f32 %v3255_v48, 0.0 }
 0xd12   :  { %v3423_v3 = vpack.c.bf16 %v3391_v21, %v3375_v19  ;;  %v3424_v25 = vpack.c.bf16 %v3392_v57, %v3376_v20  ;;  %v3197_v34 = vpop.f32.mrf.mxu2  ;;  %v3216_v35 = vpop.f32.mrf.mxu3 }
 0xd13   :  { %v3198_v17 = vadd.f32 %v3197_v34, %v7988_v11  ;;  %v3217_v16 = vadd.f32 %v3216_v35, %v7991_v33 }
 0xd14   :  { %4657 = vmatmul.bf16.gmra.mxu0 %v3423_v3  ;;  %4676 = vmatmul.bf16.gmra.mxu1 %v3424_v25 }
 0xd15   :  { %v3389_v36 = vmax.f32 %v3198_v17, 0.0  ;;  %v3390_v39 = vmax.f32 %v3217_v16, 0.0  ;;  %v3304_v49 = vpop.f32.mrf.mxu0  ;;  %v3323_v44 = vpop.f32.mrf.mxu1 }
 0xd16   :  { %v3305_v13 = vadd.f32 %v3304_v49, %v2917_v23  ;;  %v3324_v33 = vadd.f32 %v3323_v44, %v2918_v22 }
 0xd17   :  { %v3422_v26 = vpack.c.bf16 %v3390_v39, %v3374_v7  ;;  %v3421_v27 = vpack.c.bf16 %v3389_v36, %v3373_v24 }
 0xd18   :  { %v3347_v55 = vmax.f32 %v3305_v13, 0.0  ;;  %v3348_v37 = vmax.f32 %v3324_v33, 0.0 }
 0xd19   :  { %4619 = vmatmul.bf16.gmra.mxu2 %v3421_v27  ;;  %4638 = vmatmul.bf16.gmra.mxu3 %v3422_v26 }
 0xd1a   :  { %v3266_v5 = vpop.f32.mrf.mxu2  ;;  %v3285_v11 = vpop.f32.mrf.mxu3 }
 0xd1b   :  { %v3267_v1 = vadd.f32 %v3266_v5, %v2915_v46  ;;  %v3286_v29 = vadd.f32 %v3285_v11, %v2916_v43  ;;  %v6418_v11 = vld [vmem:[%s8134_s3 + $0xf] ss:$0 sm:$0xff] }
 0xd1d   :  { %v3306_v50 = vpop.f32.mrf.mxu0  ;;  %v3325_v30 = vpop.f32.mrf.mxu1  ;;  %v3345_v9 = vmax.f32 %v3267_v1, 0.0  ;;  %v3346_v2 = vmax.f32 %v3286_v29, 0.0 }
 0xd1e   :  { %v3307_v45 = vadd.f32 %v3306_v50, %v2917_v23  ;;  %v3326_v28 = vadd.f32 %v3325_v30, %v2918_v22 }
 0xd20   :  { %v3363_v56 = vmax.f32 %v3307_v45, 0.0  ;;  %v3364_v41 = vmax.f32 %v3326_v28, 0.0 }
 0xd22   :  { %v3411_v47 = vpack.c.bf16 %v3363_v56, %v3347_v55  ;;  %v3412_v8 = vpack.c.bf16 %v3364_v41, %v3348_v37  ;;  %v3268_v42 = vpop.f32.mrf.mxu2  ;;  %v3287_v59 = vpop.f32.mrf.mxu3 }
 0xd23   :  { %v3269_v51 = vadd.f32 %v3268_v42, %v2915_v46  ;;  %v3288_v62 = vadd.f32 %v3287_v59, %v2916_v43 }
 0xd24   :  { %4728 = vmatmul.bf16.vlgmr.msra.gmra.mxu0 %v3411_v47  ;;  %4747 = vmatmul.bf16.vlgmr.msra.gmra.mxu1 %v3412_v8 }
 0xd25   :  { %v3361_v10 = vmax.f32 %v3269_v51, 0.0  ;;  %v3362_v61 = vmax.f32 %v3288_v62, 0.0  ;;  %v3309_v12 = vpop.f32.mrf.mxu0  ;;  %v3328_v0 = vpop.f32.mrf.mxu1 }
 0xd26   :  { %v3310_v4 = vadd.f32 %v3309_v12, %v2917_v23  ;;  %v3329_v60 = vadd.f32 %v3328_v0, %v2918_v22 }
 0xd27   :  { %v3409_v31 = vpack.c.bf16 %v3361_v10, %v3345_v9  ;;  %v3410_v63 = vpack.c.bf16 %v3362_v61, %v3346_v2 }
 0xd28   :  { %v3379_v20 = vmax.f32 %v3310_v4, 0.0  ;;  %v3380_v21 = vmax.f32 %v3329_v60, 0.0 }
 0xd29   :  { %4690 = vmatmul.bf16.vlgmr.msrb.gmra.mxu2 %v3409_v31  ;;  %4709 = vmatmul.bf16.vlgmr.msra.gmra.mxu3 %v3410_v63 }
 0xd2a   :  { %v3271_v58 = vpop.f32.mrf.mxu2  ;;  %v3290_v38 = vpop.f32.mrf.mxu3 }
 0xd2b   :  { %v3272_v32 = vadd.f32 %v3271_v58, %v2915_v46  ;;  %v3291_v3 = vadd.f32 %v3290_v38, %v2916_v43 }
 0xd2d   :  { %v3311_v14 = vpop.f32.mrf.mxu0  ;;  %v3330_v18 = vpop.f32.mrf.mxu1  ;;  %v3377_v7 = vmax.f32 %v3272_v32, 0.0  ;;  %v3378_v36 = vmax.f32 %v3291_v3, 0.0 }
 0xd2e   :  { %v3312_v48 = vadd.f32 %v3311_v14, %v2917_v23  ;;  %v3331_v19 = vadd.f32 %v3330_v18, %v2918_v22 }
 0xd30   :  { %v3395_v57 = vmax.f32 %v3312_v48, 0.0  ;;  %v3396_v15 = vmax.f32 %v3331_v19, 0.0 }
 0xd32   :  { %v3427_v25 = vpack.c.bf16 %v3395_v57, %v3379_v20  ;;  %v3428_v34 = vpack.c.bf16 %v3396_v15, %v3380_v21  ;;  %v3273_v35 = vpop.f32.mrf.mxu2  ;;  %v3292_v17 = vpop.f32.mrf.mxu3 }
 0xd33   :  { %v3274_v16 = vadd.f32 %v3273_v35, %v2915_v46  ;;  %v3293_v24 = vadd.f32 %v3292_v17, %v2916_v43 }
 0xd34   :  { %4733 = vmatmul.bf16.gmra.mxu0 %v3427_v25  ;;  %4752 = vmatmul.bf16.gmra.mxu1 %v3428_v34 }
 0xd35   :  { %v3393_v39 = vmax.f32 %v3274_v16, 0.0  ;;  %v3394_v49 = vmax.f32 %v3293_v24, 0.0 }
 0xd37   :  { %v3425_v44 = vpack.c.bf16 %v3393_v39, %v3377_v7  ;;  %v3426_v26 = vpack.c.bf16 %v3394_v49, %v3378_v36 }
 0xd39   :  { %4695 = vmatmul.bf16.gmra.mxu2 %v3425_v44  ;;  %4714 = vmatmul.bf16.gmra.mxu3 %v3426_v26 }
 0xd41   :  { %v4501_v27 = vpop.f32.mrf.mxu0  ;;  %v4520_v23 = vpop.f32.mrf.mxu1 }
 0xd49   :  { %v4503_v22 = vpop.f32.mrf.mxu0  ;;  %v4522_v5 = vpop.f32.mrf.mxu1 }
 0xd4c   :  { %v4463_v13 = vpop.f32.mrf.mxu2  ;;  %v4482_v33 = vpop.f32.mrf.mxu3 }
 0xd4d   :  { %v4464_v46 = vadd.f32 %v6418_v11, %v4463_v13 }
 0xd4f   :  { %v4483_v43 = vadd.f32 %v4482_v33, %v4464_v46 }
 0xd51   :  { %v4502_v50 = vadd.f32 %v4501_v27, %v4483_v43  ;;  %v4506_v30 = vpop.f32.mrf.mxu0  ;;  %v4525_v45 = vpop.f32.mrf.mxu1 }
 0xd53   :  { %v4521_v28 = vadd.f32 %v4520_v23, %v4502_v50 }
 0xd54   :  { %v4465_v55 = vpop.f32.mrf.mxu2  ;;  %v4484_v37 = vpop.f32.mrf.mxu3 }
 0xd55   :  { %v4466_v56 = vadd.f32 %v6418_v11, %v4465_v55 }
 0xd57   :  { %v4485_v41 = vadd.f32 %v4484_v37, %v4466_v56 }
 0xd59   :  { %v4504_v1 = vadd.f32 %v4503_v22, %v4485_v41  ;;  %v4508_v29 = vpop.f32.mrf.mxu0  ;;  %v4527_v47 = vpop.f32.mrf.mxu1 }
 0xd5b   :  { %v4523_v8 = vadd.f32 %v4522_v5, %v4504_v1 }
 0xd5c   :  { %v4468_v42 = vpop.f32.mrf.mxu2  ;;  %v4487_v59 = vpop.f32.mrf.mxu3 }
 0xd5d   :  { %v4469_v51 = vadd.f32 %v6418_v11, %v4468_v42 }
 0xd5f   :  { %v4488_v62 = vadd.f32 %v4487_v59, %v4469_v51 }
 0xd61   :  { %v4507_v9 = vadd.f32 %v4506_v30, %v4488_v62  ;;  %v4577_v2 = vpop.f32.mrf.mxu0  ;;  %v4596_v10 = vpop.f32.mrf.mxu1 }
 0xd63   :  { %v4526_v61 = vadd.f32 %v4525_v45, %v4507_v9 }
 0xd64   :  { %v4470_v12 = vpop.f32.mrf.mxu2  ;;  %v4489_v0 = vpop.f32.mrf.mxu3 }
 0xd65   :  { %v4471_v31 = vadd.f32 %v6418_v11, %v4470_v12 }
 0xd67   :  { %v4490_v63 = vadd.f32 %v4489_v0, %v4471_v31 }
 0xd69   :  { %v4509_v58 = vadd.f32 %v4508_v29, %v4490_v63  ;;  %v4579_v38 = vpop.f32.mrf.mxu0  ;;  %v4598_v4 = vpop.f32.mrf.mxu1 }
 0xd6b   :  { %v4528_v60 = vadd.f32 %v4527_v47, %v4509_v58 }
 0xd6c   :  { %v4539_v14 = vpop.f32.mrf.mxu2  ;;  %v4558_v18 = vpop.f32.mrf.mxu3 }
 0xd6d   :  { %v4540_v39 = vadd.f32 %v4539_v14, %v4521_v28 }
 0xd6f   :  { %v4559_v26 = vadd.f32 %v4558_v18, %v4540_v39 }
 0xd71   :  { %v4582_v48 = vpop.f32.mrf.mxu0  ;;  %v4601_v19 = vpop.f32.mrf.mxu1  ;;  %v4578_v22 = vadd.f32 %v4577_v2, %v4559_v26 }
 0xd73   :  { %v4597_v46 = vadd.f32 %v4596_v10, %v4578_v22 }
 0xd74   :  { %v4541_v20 = vpop.f32.mrf.mxu2  ;;  %v4560_v21 = vpop.f32.mrf.mxu3 }
 0xd75   :  { %v4542_v5 = vadd.f32 %v4541_v20, %v4523_v8 }
 0xd77   :  { %v4561_v33 = vadd.f32 %v4560_v21, %v4542_v5 }
 0xd79   :  { %v4584_v57 = vpop.f32.mrf.mxu0  ;;  %v4603_v15 = vpop.f32.mrf.mxu1  ;;  %v4580_v30 = vadd.f32 %v4579_v38, %v4561_v33 }
 0xd7b   :  { %v4599_v1 = vadd.f32 %v4598_v4, %v4580_v30 }
 0xd7c   :  { %v4544_v32 = vpop.f32.mrf.mxu2  ;;  %v4563_v3 = vpop.f32.mrf.mxu3 }
 0xd7d   :  { %v4545_v45 = vadd.f32 %v4544_v32, %v4526_v61 }
 0xd7f   :  { %v4564_v28 = vadd.f32 %v4563_v3, %v4545_v45 }
 0xd81   :  { %v4653_v25 = vpop.f32.mrf.mxu0  ;;  %v4672_v34 = vpop.f32.mrf.mxu1  ;;  %v4583_v42 = vadd.f32 %v4582_v48, %v4564_v28 }
 0xd83   :  { %v4602_v0 = vadd.f32 %v4601_v19, %v4583_v42 }
 0xd84   :  { %v4546_v35 = vpop.f32.mrf.mxu2  ;;  %v4565_v17 = vpop.f32.mrf.mxu3 }
 0xd85   :  { %v4547_v59 = vadd.f32 %v4546_v35, %v4528_v60 }
 0xd87   :  { %v4566_v12 = vadd.f32 %v4565_v17, %v4547_v59 }
 0xd89   :  { %v4655_v16 = vpop.f32.mrf.mxu0  ;;  %v4674_v36 = vpop.f32.mrf.mxu1  ;;  %v4585_v38 = vadd.f32 %v4584_v57, %v4566_v12 }
 0xd8b   :  { %v4604_v32 = vadd.f32 %v4603_v15, %v4585_v38 }
 0xd8c   :  { %v4615_v24 = vpop.f32.mrf.mxu2  ;;  %v4634_v7 = vpop.f32.mrf.mxu3 }
 0xd8d   :  { %v4616_v43 = vadd.f32 %v4615_v24, %v4597_v46 }
 0xd8f   :  { %v4635_v37 = vadd.f32 %v4634_v7, %v4616_v43 }
 0xd91   :  { %v4658_v27 = vpop.f32.mrf.mxu0  ;;  %v4677_v23 = vpop.f32.mrf.mxu1  ;;  %v4654_v29 = vadd.f32 %v4653_v25, %v4635_v37 }
 0xd93   :  { %v4673_v9 = vadd.f32 %v4672_v34, %v4654_v29 }
 0xd94   :  { %v4617_v49 = vpop.f32.mrf.mxu2  ;;  %v4636_v44 = vpop.f32.mrf.mxu3 }
 0xd95   :  { %v4618_v47 = vadd.f32 %v4617_v49, %v4599_v1 }
 0xd97   :  { %v4637_v8 = vadd.f32 %v4636_v44, %v4618_v47 }
 0xd99   :  { %v4660_v50 = vpop.f32.mrf.mxu0  ;;  %v4679_v55 = vpop.f32.mrf.mxu1  ;;  %v4656_v61 = vadd.f32 %v4655_v16, %v4637_v8 }
 0xd9b   :  { %v4675_v20 = vadd.f32 %v4674_v36, %v4656_v61 }
 0xd9c   :  { %v4620_v11 = vpop.f32.mrf.mxu2  ;;  %v4639_v13 = vpop.f32.mrf.mxu3 }
 0xd9d   :  { %v4621_v63 = vadd.f32 %v4620_v11, %v4602_v0 }
 0xd9f   :  { %v4640_v18 = vadd.f32 %v4639_v13, %v4621_v63 }
 0xda1   :  { %v4729_v51 = vpop.f32.mrf.mxu0  ;;  %v4748_v62 = vpop.f32.mrf.mxu1  ;;  %v4659_v35 = vadd.f32 %v4658_v27, %v4640_v18 }
 0xda3   :  { %v4678_v7 = vadd.f32 %v4677_v23, %v4659_v35 }
 0xda4   :  { %v4622_v56 = vpop.f32.mrf.mxu2  ;;  %v4641_v41 = vpop.f32.mrf.mxu3 }
 0xda5   :  { %v4623_v17 = vadd.f32 %v4622_v56, %v4604_v32 }
 0xda7   :  { %v4642_v57 = vadd.f32 %v4641_v41, %v4623_v17 }
 0xda9   :  { %v4731_v4 = vpop.f32.mrf.mxu0  ;;  %v4750_v34 = vpop.f32.mrf.mxu1  ;;  %v4661_v22 = vadd.f32 %v4660_v50, %v4642_v57 }
 0xdab   :  { %v4680_v13 = vadd.f32 %v4679_v55, %v4661_v22 }
 0xdac   :  { %v4691_v2 = vpop.f32.mrf.mxu2  ;;  %v4710_v10 = vpop.f32.mrf.mxu3 }
 0xdad   :  { %v4692_v31 = vadd.f32 %v4691_v2, %v4673_v9 }
 0xdaf   :  { %v4711_v58 = vadd.f32 %v4710_v10, %v4692_v31 }
 0xdb1   :  { %v4730_v14 = vadd.f32 %v4729_v51, %v4711_v58  ;;  %v4734_v15 = vpop.f32.mrf.mxu0  ;;  %v4753_v27 = vpop.f32.mrf.mxu1 }
 0xdb3   :  { %v4749_v21 = vadd.f32 %v4748_v62, %v4730_v14 }
 0xdb4   :  { %v4693_v48 = vpop.f32.mrf.mxu2  ;;  %v4712_v60 = vpop.f32.mrf.mxu3 }
 0xdb5   :  { %v4694_v3 = vadd.f32 %v4693_v48, %v4675_v20  ;;  %v4758_v25 = vadd.f32 %v4749_v21, %v7451_v40 }
 0xdb7   :  { %v4713_v19 = vadd.f32 %v4712_v60, %v4694_v3  ;;  %v4762_v16 = vsel %vm120_vm6, %v4758_v25, 0.0 }
 0xdb8   :  { %4763 = vadd.xlane.f32.xlu0 %v4762_v16 }
 0xdb9   :  { %v4732_v24 = vadd.f32 %v4731_v4, %v4713_v19  ;;  %v4736_v56 = vpop.f32.mrf.mxu0  ;;  %v4755_v50 = vpop.f32.mrf.mxu1 }
 0xdbb   :  { %v4751_v39 = vadd.f32 %v4750_v34, %v4732_v24 }
 0xdbc   :  { %v4696_v49 = vpop.f32.mrf.mxu2  ;;  %v4715_v36 = vpop.f32.mrf.mxu3 }
 0xdbd   :  { %v4697_v44 = vadd.f32 %v4696_v49, %v4678_v7  ;;  %v4759_v26 = vadd.f32 %v4751_v39, %v7453_v6  ;;  %v6419_v7 = vld [vmem:[%s8134_s3 + $0x10] ss:$0 sm:$0xff] }
 0xdbf   :  { %v4716_v5 = vadd.f32 %v4715_v36, %v4697_v44  ;;  %v4765_v40 = vsel %vm120_vm6, %v4759_v26, 0.0  ;;  %v6420_v44 = vld [vmem:[%s8134_s3 + $0x11] ss:$0 sm:$0xff] }
 0xdc0   :  { %4766 = vadd.xlane.f32.xlu1 %v4765_v40 }
 0xdc1   :  { %v4735_v11 = vadd.f32 %v4734_v15, %v4716_v5 }
 0xdc3   :  { %v4754_v33 = vadd.f32 %v4753_v27, %v4735_v11 }
 0xdc4   :  { %v4698_v46 = vpop.f32.mrf.mxu2  ;;  %v4717_v30 = vpop.f32.mrf.mxu3 }
 0xdc5   :  { %v4699_v43 = vadd.f32 %v4698_v46, %v4680_v13  ;;  %v4760_v23 = vadd.f32 %v4754_v33, %v7469_v54 }
 0xdc7   :  { %v4718_v45 = vadd.f32 %v4717_v30, %v4699_v43  ;;  %v4768_v37 = vsel %vm120_vm6, %v4760_v23, 0.0 }
 0xdc8   :  { %4769 = vadd.xlane.f32.xlu2 %v4768_v37 }
 0xdc9   :  { %v4737_v6 = vadd.f32 %v4736_v56, %v4718_v45 }
 0xdcb   :  { %v4756_v41 = vadd.f32 %v4755_v50, %v4737_v6 }
 0xdcd   :  { %v4761_v28 = vadd.f32 %v4756_v41, %v7471_v53 }
 0xdcf   :  { %v4771_v1 = vsel %vm120_vm6, %v4761_v28, 0.0 }
 0xdd0   :  { %4772 = vadd.xlane.f32.xlu0 %v4771_v1 }
 0xe2b   :  { %v4764_v55 = vpop.xlane.xlu0 %4763 }
 0xe2c   :  { %v4774_v29 = vmul.f32 %v4764_v55, %v6625_v52 }
 0xe2e   :  { %v4778_v47 = vsub.f32 %v4758_v25, %v4774_v29 }
 0xe30   :  { %v4782_v42 = vmul.f32 %v4778_v47, %v4778_v47 }
 0xe32   :  { %v4786_v54 = vsel %vm120_vm6, %v4782_v42, 0.0 }
 0xe33   :  { %v4767_v59 = vpop.xlane.xlu1 %4766  ;;  %4787 = vadd.xlane.f32.xlu1 %v4786_v54 }
 0xe34   :  { %v4775_v51 = vmul.f32 %v4767_v59, %v6625_v52 }
 0xe36   :  { %v8049_v8 = vsub.f32 %v4759_v26, %v4775_v51 }
 0xe38   :  { %v4783_v62 = vmul.f32 %v8049_v8, %v8049_v8 }
 0xe3a   :  { %v4789_v53 = vsel %vm120_vm6, %v4783_v62, 0.0 }
 0xe3b   :  { %v4770_v9 = vpop.xlane.xlu2 %4769  ;;  %4790 = vadd.xlane.f32.xlu2 %v4789_v53 }
 0xe3c   :  { %v4776_v2 = vmul.f32 %v4770_v9, %v6625_v52 }
 0xe3e   :  { %v8055_v10 = vsub.f32 %v4760_v23, %v4776_v2 }
 0xe40   :  { %v4784_v12 = vmul.f32 %v8055_v10, %v8055_v10 }
 0xe42   :  { %v4792_v0 = vsel %vm120_vm6, %v4784_v12, 0.0 }
 0xe43   :  { %4793 = vadd.xlane.f32.xlu0 %v4792_v0  ;;  %v4773_v31 = vpop.xlane.xlu0 %4772 }
 0xe44   :  { %v4777_v61 = vmul.f32 %v4773_v31, %v6625_v52 }
 0xe46   :  { %v8061_v63 = vsub.f32 %v4761_v28, %v4777_v61 }
 0xe48   :  { %v4785_v58 = vmul.f32 %v8061_v63, %v8061_v63 }
 0xe4a   :  { %v4795_v38 = vsel %vm120_vm6, %v4785_v58, 0.0 }
 0xe4b   :  { %4796 = vadd.xlane.f32.xlu1 %v4795_v38 }
 0xea6   :  { %v4788_v14 = vpop.xlane.xlu1 %4787 }
 0xea7   :  { %v4798_v18 = vmul.f32 %v4788_v14, %v6625_v52 }
 0xea9   :  { %v4802_v4 = vadd.f32 1e-05, %v4798_v18 }
 0xeab   :  { %6482 = vrsqrt.f32 %v4802_v4  ;;  %vm4812_vm3 = vweird.f32 %v4802_v4 }
 0xeae   :  { %v4791_v20 = vpop.xlane.xlu2 %4790 }
 0xeaf   :  { %v4799_v21 = vmul.f32 %v4791_v20, %v6625_v52 }
 0xeb1   :  { %v6483_v48 = vpop.eup %6482  ;;  %v4803_v60 = vadd.f32 1e-05, %v4799_v21 }
 0xeb2   :  { %v4807_v32 = vmul.f32 %v6483_v48, %v4802_v4  ;;  %vm4813_vm2 = vweird.f32 %v6483_v48 }
 0xeb3   :  { %6484 = vrsqrt.f32 %v4803_v60  ;;  %vm4814_vm7 = vmor %vm4812_vm3, %vm4813_vm2  ;;  %vm4822_vm8 = vweird.f32 %v4803_v60 }
 0xeb4   :  { %v4808_v3 = vmul.f32 %v6483_v48, %v4807_v32 }
 0xeb6   :  { %v4809_v25 = vmul.f32 0.5, %v4808_v3  ;;  %v4794_v34 = vpop.xlane.xlu0 %4793 }
 0xeb7   :  { %v4800_v35 = vmul.f32 %v4794_v34, %v6625_v52 }
 0xeb8   :  { %v4810_v17 = vsub.f32 1.5, %v4809_v25 }
 0xeb9   :  { %v6485_v19 = vpop.eup %6484  ;;  %v4804_v16 = vadd.f32 1e-05, %v4800_v35 }
 0xeba   :  { %v4811_v24 = vmul.f32 %v6483_v48, %v4810_v17  ;;  %v4817_v57 = vmul.f32 %v6485_v19, %v4803_v60  ;;  %vm4823_vm4 = vweird.f32 %v6485_v19 }
 0xebb   :  { %6486 = vrsqrt.f32 %v4804_v16  ;;  %vm4824_vm9 = vmor %vm4822_vm8, %vm4823_vm4  ;;  %vm4832_vm11 = vweird.f32 %v4804_v16 }
 0xebc   :  { %v4818_v39 = vmul.f32 %v6485_v19, %v4817_v57  ;;  %v4815_v49 = vsel %vm4814_vm7, %v6483_v48, %v4811_v24 }
 0xebd   :  { %v4846_v36 = vmul.f32 %v4815_v49, %v4778_v47 }
 0xebe   :  { %v4819_v26 = vmul.f32 0.5, %v4818_v39  ;;  %v4797_v15 = vpop.xlane.xlu1 %4796  ;;  %v4960_v39 = vld [vmem:[%s8135_s2 + $0x80] sm:$0xf] }
 0xebf   :  { %v4801_v22 = vmul.f32 %v4797_v15, %v6625_v52  ;;  %v4851_v5 = vmul.f32 %v6419_v7, %v4846_v36  ;;  %v4972_v49 = vsel %vm127_vm5, %v4960_v39, 0 }
 0xec0   :  { %v4820_v40 = vsub.f32 1.5, %v4819_v26  ;;  %4981 = vmatpush.bf16.msra.mxu2 %v4972_v49 }
 0xec1   :  { %v6487_v27 = vpop.eup %6486  ;;  %v4805_v11 = vadd.f32 1e-05, %v4801_v22  ;;  %v4856_v13 = vadd.f32 %v6420_v44, %v4851_v5 }
 0xec2   :  { %v4821_v33 = vmul.f32 %v6485_v19, %v4820_v40  ;;  %v4827_v46 = vmul.f32 %v6487_v27, %v4804_v16  ;;  %vm4833_vm10 = vweird.f32 %v6487_v27 }
 0xec3   :  { %6488 = vrsqrt.f32 %v4805_v11  ;;  %v4862_v43 = vsel %vm120_vm6, %v4856_v13, 0.0  ;;  %vm4834_vm12 = vmor %vm4832_vm11, %vm4833_vm10  ;;  %vm4842_vm14 = vweird.f32 %v4805_v11 }
 0xec4   :  { %v4828_v23 = vmul.f32 %v6487_v27, %v4827_v46  ;;  %4863 = vadd.xlane.f32.xlu2 %v4862_v43  ;;  %v4825_v30 = vsel %vm4824_vm9, %v6485_v19, %v4821_v33 }
 0xec5   :  { %v4847_v45 = vmul.f32 %v4825_v30, %v8049_v8 }
 0xec6   :  { %v4829_v37 = vmul.f32 0.5, %v4828_v23 }
 0xec7   :  { %v4852_v56 = vmul.f32 %v6419_v7, %v4847_v45 }
 0xec8   :  { %v4830_v6 = vsub.f32 1.5, %v4829_v37 }
 0xec9   :  { %v6489_v50 = vpop.eup %6488  ;;  %v4857_v41 = vadd.f32 %v6420_v44, %v4852_v56 }
 0xeca   :  { %v4831_v28 = vmul.f32 %v6487_v27, %v4830_v6  ;;  %v4837_v1 = vmul.f32 %v6489_v50, %v4805_v11  ;;  %vm4843_vm13 = vweird.f32 %v6489_v50 }
 0xecb   :  { %v4865_v55 = vsel %vm120_vm6, %v4857_v41, 0.0  ;;  %vm4844_vm15 = vmor %vm4842_vm14, %vm4843_vm13 }
 0xecc   :  { %v4838_v29 = vmul.f32 %v6489_v50, %v4837_v1  ;;  %4866 = vadd.xlane.f32.xlu0 %v4865_v55  ;;  %v4835_v47 = vsel %vm4834_vm12, %v6487_v27, %v4831_v28  ;;  %v6421_v28 = vld [vmem:[%s8134_s3 + $0x12] ss:$0 sm:$0xff] }
 0xecd   :  { %v4848_v42 = vmul.f32 %v4835_v47, %v8055_v10 }
 0xece   :  { %v4839_v54 = vmul.f32 0.5, %v4838_v29 }
 0xecf   :  { %v4853_v59 = vmul.f32 %v6419_v7, %v4848_v42 }
 0xed0   :  { %v4840_v51 = vsub.f32 1.5, %v4839_v54 }
 0xed1   :  { %v4858_v8 = vadd.f32 %v6420_v44, %v4853_v59 }
 0xed2   :  { %v4841_v62 = vmul.f32 %v6489_v50, %v4840_v51 }
 0xed3   :  { %v4868_v53 = vsel %vm120_vm6, %v4858_v8, 0.0 }
 0xed4   :  { %4869 = vadd.xlane.f32.xlu1 %v4868_v53  ;;  %v4845_v9 = vsel %vm4844_vm15, %v6489_v50, %v4841_v62 }
 0xed5   :  { %v4849_v2 = vmul.f32 %v4845_v9, %v8061_v63 }
 0xed7   :  { %v4854_v12 = vmul.f32 %v6419_v7, %v4849_v2 }
 0xed9   :  { %v4859_v0 = vadd.f32 %v6420_v44, %v4854_v12 }
 0xedb   :  { %v4871_v31 = vsel %vm120_vm6, %v4859_v0, 0.0 }
 0xedc   :  { %4872 = vadd.xlane.f32.xlu2 %v4871_v31 }
 0xf37   :  { %v4864_v10 = vpop.xlane.xlu2 %4863 }
 0xf38   :  { %v4874_v61 = vmul.f32 %v4864_v10, %v6625_v52 }
 0xf3a   :  { %v4878_v58 = vsub.f32 %v4856_v13, %v4874_v61 }
 0xf3c   :  { %v4882_v38 = vmul.f32 %v4878_v58, %v4878_v58 }
 0xf3e   :  { %v4886_v14 = vsel %vm120_vm6, %v4882_v38, 0.0 }
 0xf3f   :  { %4887 = vadd.xlane.f32.xlu0 %v4886_v14  ;;  %v4867_v18 = vpop.xlane.xlu0 %4866 }
 0xf40   :  { %v4875_v4 = vmul.f32 %v4867_v18, %v6625_v52 }
 0xf42   :  { %v4879_v20 = vsub.f32 %v4857_v41, %v4875_v4 }
 0xf44   :  { %v4883_v21 = vmul.f32 %v4879_v20, %v4879_v20 }
 0xf46   :  { %v4889_v63 = vsel %vm120_vm6, %v4883_v21, 0.0 }
 0xf47   :  { %v4870_v48 = vpop.xlane.xlu1 %4869  ;;  %4890 = vadd.xlane.f32.xlu1 %v4889_v63 }
 0xf48   :  { %v4876_v60 = vmul.f32 %v4870_v48, %v6625_v52 }
 0xf4a   :  { %v8088_v32 = vsub.f32 %v4858_v8, %v4876_v60 }
 0xf4c   :  { %v4884_v3 = vmul.f32 %v8088_v32, %v8088_v32 }
 0xf4e   :  { %v4892_v25 = vsel %vm120_vm6, %v4884_v3, 0.0 }
 0xf4f   :  { %v4873_v34 = vpop.xlane.xlu2 %4872  ;;  %4893 = vadd.xlane.f32.xlu2 %v4892_v25 }
 0xf50   :  { %v4877_v35 = vmul.f32 %v4873_v34, %v6625_v52  ;;  %v6423_v34 = vld [vmem:[%s8136_s4 + $0x2] ss:$0 sm:$0xff] }
 0xf52   :  { %v8094_v17 = vsub.f32 %v4859_v0, %v4877_v35 }
 0xf54   :  { %v4885_v19 = vmul.f32 %v8094_v17, %v8094_v17 }
 0xf56   :  { %v4895_v16 = vsel %vm120_vm6, %v4885_v19, 0.0 }
 0xf57   :  { %4896 = vadd.xlane.f32.xlu0 %v4895_v16 }
 0xfb2   :  { %v4888_v24 = vpop.xlane.xlu0 %4887 }
 0xfb3   :  { %v4898_v57 = vmul.f32 %v4888_v24, %v6625_v52 }
 0xfb5   :  { %v4902_v7 = vadd.f32 1e-05, %v4898_v57 }
 0xfb7   :  { %6490 = vrsqrt.f32 %v4902_v7  ;;  %vm4912_vm5 = vweird.f32 %v4902_v7 }
 0xfba   :  { %v4891_v36 = vpop.xlane.xlu1 %4890 }
 0xfbb   :  { %v4899_v44 = vmul.f32 %v4891_v36, %v6625_v52 }
 0xfbd   :  { %v6491_v26 = vpop.eup %6490  ;;  %v4903_v15 = vadd.f32 1e-05, %v4899_v44 }
 0xfbe   :  { %v4907_v22 = vmul.f32 %v6491_v26, %v4902_v7  ;;  %vm4913_vm0 = vweird.f32 %v6491_v26 }
 0xfbf   :  { %6492 = vrsqrt.f32 %v4903_v15  ;;  %vm4914_vm1 = vmor %vm4912_vm5, %vm4913_vm0  ;;  %vm4922_vm3 = vweird.f32 %v4903_v15 }
 0xfc0   :  { %v4908_v5 = vmul.f32 %v6491_v26, %v4907_v22 }
 0xfc2   :  { %v4909_v40 = vmul.f32 0.5, %v4908_v5  ;;  %v4894_v27 = vpop.xlane.xlu2 %4893 }
 0xfc3   :  { %v4900_v11 = vmul.f32 %v4894_v27, %v6625_v52 }
 0xfc4   :  { %v4910_v13 = vsub.f32 1.5, %v4909_v40 }
 0xfc5   :  { %v6493_v33 = vpop.eup %6492  ;;  %v4904_v46 = vadd.f32 1e-05, %v4900_v11 }
 0xfc6   :  { %v4911_v43 = vmul.f32 %v6491_v26, %v4910_v13  ;;  %v4917_v23 = vmul.f32 %v6493_v33, %v4903_v15  ;;  %vm4923_vm2 = vweird.f32 %v6493_v33 }
 0xfc7   :  { %6494 = vrsqrt.f32 %v4904_v46  ;;  %vm4924_vm7 = vmor %vm4922_vm3, %vm4923_vm2  ;;  %vm4932_vm8 = vweird.f32 %v4904_v46 }
 0xfc8   :  { %v4918_v30 = vmul.f32 %v6493_v33, %v4917_v23  ;;  %v4915_v45 = vsel %vm4914_vm1, %v6491_v26, %v4911_v43 }
 0xfc9   :  { %v4946_v1 = vmul.f32 %v4915_v45, %v4878_v58 }
 0xfca   :  { %v4919_v37 = vmul.f32 0.5, %v4918_v30  ;;  %v4897_v56 = vpop.xlane.xlu0 %4896 }
 0xfcb   :  { %v4901_v6 = vmul.f32 %v4897_v56, %v6625_v52  ;;  %v6422_v52 = vld [vmem:[%s8134_s3 + $0x13] ss:$0 sm:$0xff]  ;;  %v4951_v59 = vmul.f32 %v6421_v28, %v4946_v1 }
 0xfcc   :  { %v4920_v50 = vsub.f32 1.5, %v4919_v37 }
 0xfcd   :  { %v6495_v41 = vpop.eup %6494  ;;  %v4905_v55 = vadd.f32 1e-05, %v4901_v6  ;;  %v4956_v2 = vadd.f32 %v6422_v52, %v4951_v59 }
 0xfce   :  { %v4921_v29 = vmul.f32 %v6493_v33, %v4920_v50  ;;  %v4927_v47 = vmul.f32 %v6495_v41, %v4904_v46  ;;  %vm4933_vm4 = vweird.f32 %v6495_v41 }
 0xfcf   :  { %6496 = vrsqrt.f32 %v4905_v55  ;;  %vm4934_vm9 = vmor %vm4932_vm8, %vm4933_vm4  ;;  %vm4942_vm11 = vweird.f32 %v4905_v55 }
 0xfd0   :  { %v4925_v42 = vsel %vm4924_vm7, %v6493_v33, %v4921_v29  ;;  %v4928_v54 = vmul.f32 %v6495_v41, %v4927_v47 }
 0xfd1   :  { %v4947_v51 = vmul.f32 %v4925_v42, %v4879_v20 }
 0xfd2   :  { %v4929_v8 = vmul.f32 0.5, %v4928_v54 }
 0xfd3   :  { %v4952_v62 = vmul.f32 %v6421_v28, %v4947_v51 }
 0xfd4   :  { %v4930_v53 = vsub.f32 1.5, %v4929_v8 }
 0xfd5   :  { %v6497_v9 = vpop.eup %6496  ;;  %v4957_v12 = vadd.f32 %v6422_v52, %v4952_v62 }
 0xfd6   :  { %v4931_v0 = vmul.f32 %v6495_v41, %v4930_v53  ;;  %v4937_v31 = vmul.f32 %v6497_v9, %v4905_v55  ;;  %vm4943_vm10 = vweird.f32 %v6497_v9 }
 0xfd7   :  { %v4962_v10 = vpack.c.bf16 %v4957_v12, %v4956_v2  ;;  %vm4944_vm12 = vmor %vm4942_vm11, %vm4943_vm10 }
 0xfd8   :  { %v4938_v61 = vmul.f32 %v6497_v9, %v4937_v31  ;;  %v4935_v58 = vsel %vm4934_vm9, %v6495_v41, %v4931_v0 }
 0xfd9   :  { %6134 = vmatmul.msk.bf16.vlgmr.msra.gmra.mxu2 %vm120_vm6, %v4962_v10  ;;  %v4948_v18 = vmul.f32 %v4935_v58, %v8088_v32 }
 0xfda   :  { %v4939_v38 = vmul.f32 0.5, %v4938_v61 }
 0xfdb   :  { %v4953_v63 = vmul.f32 %v6421_v28, %v4948_v18 }
 0xfdc   :  { %v4940_v14 = vsub.f32 1.5, %v4939_v38 }
 0xfdd   :  { %v4958_v60 = vadd.f32 %v6422_v52, %v4953_v63 }
 0xfde   :  { %v4941_v4 = vmul.f32 %v6497_v9, %v4940_v14 }
 0xfe0   :  { %v4945_v20 = vsel %vm4944_vm12, %v6497_v9, %v4941_v4 }
 0xfe1   :  { %v4949_v21 = vmul.f32 %v4945_v20, %v8094_v17 }
 0xfe3   :  { %v4954_v48 = vmul.f32 %v6421_v28, %v4949_v21 }
 0xfe5   :  { %v4959_v3 = vadd.f32 %v6422_v52, %v4954_v48 }
 0xfe7   :  { %v4963_v25 = vpack.c.bf16 %v4959_v3, %v4958_v60 }
 0xfe9   :  { %6135 = vmatmul.msk.bf16.gmra.mxu2 %vm120_vm6, %v4963_v25 }
0x105c   :  { %v4983_v35 = vpop.f32.mrf.mxu2 }
0x105d   :  { %v4984_v19 = vadd.f32 %v6423_v34, %v4983_v35 }
0x105f   :  { %4993 = vst [vmem:[%s8137_s5] sm:$0xff] %v4984_v19 }
0x1064   :  { %v4985_v32 = vpop.f32.mrf.mxu2 }
0x1065   :  { %v4986_v16 = vadd.f32 %v6423_v34, %v4985_v32 }
0x1067   :  { %4994 = vst [vmem:[%s8137_s5 + $0x8] sm:$0xff] %v4986_v16 }
0x106c   :  { %v4988_v17 = vpop.f32.mrf.mxu2 }
0x106d   :  { %v4989_v24 = vadd.f32 %v6423_v34, %v4988_v17 }
0x106f   :  { %4995 = vst [vmem:[%s8137_s5 + $0x10] sm:$0xff] %v4989_v24 }
0x1074   :  { %v4990_v57 = vpop.f32.mrf.mxu2 }
0x1075   :  { %v4991_v7 = vadd.f32 %v6423_v34, %v4990_v57 }
0x1077   :  { %4996 = vst [vmem:[%s8137_s5 + $0x18] sm:$0xff] %v4991_v7 }

</bundles_post_ra>
